<compile_context>
chip_gen: v7x
topology: tpu7x:2x2x1
jax: 0.10.0
libtpu: 0.0.40
codegen_flags: <defaults>
</compile_context>

<pallas_src>
import functools

import jax
import jax.numpy as jnp
from jax.experimental import pallas as pl
from jax.experimental.pallas import tpu as pltpu


# ---------------------------------------------------------------------------
# In-kernel helpers
# ---------------------------------------------------------------------------
def _layernorm(x, g, b, eps=1e-5):
    mu = jnp.mean(x, axis=-1, keepdims=True)
    xc = x - mu
    var = jnp.mean(xc * xc, axis=-1, keepdims=True)
    return xc * jax.lax.rsqrt(var + eps) * g + b


# ---------------------------------------------------------------------------
# Kernel: transformer stack + ln_final + EOT gather + text projection.
# Grid = (B // Bt, L).  Axis 0 = batch tile ("parallel"), axis 1 = layer
# ("arbitrary").  The activation carry is a VMEM scratch seeded at layer 0;
# only the [Bt, E] projected EOT features are written to HBM (at layer L-1).
# ---------------------------------------------------------------------------
def tower_kernel(x_ref, oh_ref,
                 ln1g_ref, ln1b_ref, wqkv_ref, bqkv_ref, wo_ref, bo_ref,
                 ln2g_ref, ln2b_ref, w1_ref, b1_ref, w2_ref, b2_ref,
                 lnfg_ref, lnfb_ref, proj_ref,
                 o_ref, carry_ref, *, num_heads):
    layer = pl.program_id(1)
    n_layers = pl.num_programs(1)

    # Seed the VMEM carry with the embedded input once per batch tile.
    @pl.when(layer == 0)
    def _():
        carry_ref[...] = x_ref[...]

    x = carry_ref[...]                               # [Bt, S, W] f32 carry
    Bt, S, W = x.shape
    H = num_heads
    Dh = W // H
    scale = Dh ** -0.5
    bf16 = jnp.bfloat16
    rows = Bt * S

    x2 = x.reshape(rows, W)                          # rows for the big GEMMs

    # ---- attention sub-block (pre-LN, causal) ----
    h = _layernorm(x2, ln1g_ref[...], ln1b_ref[...])
    qkv = jnp.dot(h.astype(bf16), wqkv_ref[...],
                  preferred_element_type=jnp.float32) + bqkv_ref[...]

    # causal mask: query q attends to keys <= q (also excludes seq-padding,
    # since pad positions come after every real token).
    row_ids = jax.lax.broadcasted_iota(jnp.int32, (S, S), 0)
    col_ids = jax.lax.broadcasted_iota(jnp.int32, (S, S), 1)
    causal = col_ids <= row_ids

    wo = wo_ref[...]                                 # [W, W] bf16
    attn = jnp.zeros((rows, W), jnp.float32)
    for hd in range(H):                              # per-head lane slices:
        q = qkv[:, hd * Dh:(hd + 1) * Dh].reshape(Bt, S, Dh)
        k = qkv[:, W + hd * Dh:W + (hd + 1) * Dh].reshape(Bt, S, Dh)
        v = qkv[:, 2 * W + hd * Dh:2 * W + (hd + 1) * Dh].reshape(Bt, S, Dh)
        s = jnp.einsum('bqd,bkd->bqk', q.astype(bf16), k.astype(bf16),
                       preferred_element_type=jnp.float32) * scale
        s = jnp.where(causal, s, -1e30)
        s = s - jnp.max(s, axis=-1, keepdims=True)
        p = jnp.exp(s)
        p = p * pl.reciprocal(jnp.sum(p, axis=-1, keepdims=True), approx=True)
        ctx = jnp.einsum('bqk,bkd->bqd', p.astype(bf16), v.astype(bf16),
                         preferred_element_type=jnp.float32)
        # fold the head-merge into per-head slices of the output projection
        attn = attn + jnp.dot(ctx.reshape(rows, Dh).astype(bf16),
                              wo[hd * Dh:(hd + 1) * Dh, :],
                              preferred_element_type=jnp.float32)
    x2 = x2 + attn + bo_ref[...]

    # ---- MLP sub-block (pre-LN, QuickGELU as in CLIP) ----
    h2 = _layernorm(x2, ln2g_ref[...], ln2b_ref[...])
    m = jnp.dot(h2.astype(bf16), w1_ref[...],
                preferred_element_type=jnp.float32) + b1_ref[...]
    m = (m * jax.nn.sigmoid(1.702 * m)).astype(bf16)   # QuickGELU, cast early
    x2 = x2 + jnp.dot(m, w2_ref[...],
                      preferred_element_type=jnp.float32) + b2_ref[...]

    x_new = x2.reshape(Bt, S, W)
    carry_ref[...] = x_new                            # carry to next layer

    # ---- epilogue at the last layer: EOT gather + ln_final + projection ----
    @pl.when(layer == n_layers - 1)
    def _():
        sel = oh_ref[...]                             # [Bt, S, 1] one-hot (EOT)
        feat = jnp.sum(x_new * sel, axis=1)           # [Bt, W]
        hf = _layernorm(feat, lnfg_ref[...], lnfb_ref[...])
        o_ref[...] = jnp.dot(hf.astype(bf16), proj_ref[...],
                             preferred_element_type=jnp.float32)


# ---------------------------------------------------------------------------
# VMEM-aware batch-tile / vmem-limit selection
# ---------------------------------------------------------------------------
def _tpu_budget():
    vmem_cap = 64 * 1024 * 1024                       # conservative default
    num_cores = 1
    try:
        info = pltpu.get_tpu_info()
        vmem_cap = int(getattr(info, "vmem_capacity_bytes", vmem_cap))
        for name in ("num_cores", "core_count", "tensorcore_count"):
            if hasattr(info, name):
                num_cores = max(1, int(getattr(info, name)))
                break
    except Exception:
        pass
    # leave ~20% headroom for Mosaic scratch / semaphores / internal buffers
    vmem_limit = int(vmem_cap * 0.8)
    return vmem_limit, num_cores


def _pick_block_batch(B, S, W, FF, vmem_limit_bytes, num_cores):
    # Double-buffered bf16 per-layer matmul weights streamed over the L axis.
    w_bytes = 2 * 2 * (4 * W * W + 2 * W * FF)
    # f32 per-row live set: x input (double-buffered) + carry + qkv +
    # FF tensor + scores/misc, with ~1.5x slack for compiler temps.
    per_row = int(4 * (7 * W + FF + S) * 1.5)
    budget = int(vmem_limit_bytes * 0.9) - w_bytes
    rows = max(S, budget // max(per_row, 1))
    rows = min(rows, 2048)                            # v6e sweet spot cap
    bt = max(1, min(B, rows // max(S, 1)))
    if num_cores > 1 and B >= 2:
        bt = min(bt, max(1, B // 2))                  # keep both TCs busy (v7x)
    while B % bt:
        bt -= 1
    return bt


# ---------------------------------------------------------------------------
# Wrapper: one pallas_call for the whole text tower
# ---------------------------------------------------------------------------
def clip_text_tower(x, onehot, params, num_heads):
    B, S, W = x.shape
    stacked = params["layers"]
    L = stacked["wqkv"].shape[0]
    FF = stacked["w1"].shape[-1]
    E = params["text_projection"].shape[-1]

    vmem_limit, num_cores = _tpu_budget()
    Bt = _pick_block_batch(B, S, W, FF, vmem_limit, num_cores)
    kernel = functools.partial(tower_kernel, num_heads=num_heads)

    def wspec(shape):
        # Per-layer params: leading L axis selected by the layer grid axis and
        # squeezed; double-buffered pipelining prefetches layer l+1 weights
        # during layer l compute.
        zeros = (0,) * len(shape)
        return pl.BlockSpec((None,) + shape, lambda b, l, z=zeros: (l,) + z)

    def cspec(shape):
        # Grid-constant params (head): fetched once, stay VMEM-resident.
        zeros = (0,) * len(shape)
        return pl.BlockSpec(shape, lambda b, l, z=zeros: z)

    out = pl.pallas_call(
        kernel,
        out_shape=jax.ShapeDtypeStruct((B // Bt, Bt, E), jnp.float32),
        grid=(B // Bt, L),
        in_specs=[
            pl.BlockSpec((Bt, S, W), lambda b, l: (b, 0, 0)),   # embedded x
            pl.BlockSpec((Bt, S, 1), lambda b, l: (b, 0, 0)),   # EOT one-hot
            wspec((1, W)), wspec((1, W)),                       # ln1 gamma/beta
            wspec((W, 3 * W)), wspec((1, 3 * W)),               # qkv proj
            wspec((W, W)), wspec((1, W)),                       # out proj
            wspec((1, W)), wspec((1, W)),                       # ln2 gamma/beta
            wspec((W, FF)), wspec((1, FF)),                     # mlp fc1
            wspec((FF, W)), wspec((1, W)),                      # mlp fc2
            cspec((1, W)), cspec((1, W)),                       # ln_final
            cspec((W, E)),                                      # text_projection
        ],
        out_specs=pl.BlockSpec((None, Bt, E), lambda b, l: (b, 0, 0)),
        scratch_shapes=[pltpu.VMEM((Bt, S, W), jnp.float32)],   # layer carry
        compiler_params=pltpu.CompilerParams(
            dimension_semantics=("parallel", "arbitrary"),
            vmem_limit_bytes=vmem_limit),
    )(x, onehot,
      stacked["ln1_g"], stacked["ln1_b"], stacked["wqkv"], stacked["bqkv"],
      stacked["wo"], stacked["bo"], stacked["ln2_g"], stacked["ln2_b"],
      stacked["w1"], stacked["b1"], stacked["w2"], stacked["b2"],
      params["ln_final_g"], params["ln_final_b"], params["text_projection"])
    return out.reshape(B, E)


# ---------------------------------------------------------------------------
# Full encode_text (== TextCLIP.forward)
# ---------------------------------------------------------------------------
def encode_text(text, params, num_heads):
    B, S = text.shape
    # embedding gather + positional embedding (glue; no clean Pallas gather)
    x = params["token_embedding"][text] + params["positional_embedding"][None, :, :]
    x = x.astype(jnp.float32)

    # Pad S to a multiple of 8 (sublane alignment).  Pad positions sit after
    # every real token, so causality alone keeps them out of real queries'
    # softmax; their rows are never read by the EOT gather.
    S_pad = ((S + 7) // 8) * 8
    if S_pad != S:
        x = jnp.pad(x, ((0, 0), (0, S_pad - S), (0, 0)))

    # EOT token position (CLIP convention: largest token id) as a one-hot
    # selector so the kernel emits only the [B, W] EOT rows.
    eot = jnp.argmax(text, axis=-1)                                  # [B]
    onehot = (jnp.arange(S_pad)[None, :] == eot[:, None]).astype(jnp.float32)
    onehot = onehot[:, :, None]                                      # [B,S_pad,1]

    return clip_text_tower(x, onehot, params, num_heads)


# ---------------------------------------------------------------------------
# Deterministic synthetic parameters (per-layer weights stacked along L)
# ---------------------------------------------------------------------------
def init_params(key, vocab, seq, width, layers, embed_dim):
    def nrm(k, shape, std=0.02, dtype=jnp.float32):
        return (std * jax.random.normal(k, shape)).astype(dtype)

    W, L, FF = width, layers, 4 * width
    keys = jax.random.split(key, 7)
    return {
        "token_embedding": nrm(keys[0], (vocab, W)),
        "positional_embedding": nrm(keys[1], (seq, W), std=0.01),
        "ln_final_g": jnp.ones((1, W), jnp.float32),
        "ln_final_b": jnp.zeros((1, W), jnp.float32),
        # matmul weights stored in bf16 (MXU-native, halves weight DMA bytes);
        # biases / LN params stay f32.
        "text_projection": nrm(keys[2], (W, embed_dim), std=W ** -0.5,
                               dtype=jnp.bfloat16),
        "layers": {
            "ln1_g": jnp.ones((L, 1, W), jnp.float32),
            "ln1_b": jnp.zeros((L, 1, W), jnp.float32),
            "wqkv": nrm(keys[3], (L, W, 3 * W), dtype=jnp.bfloat16),
            "bqkv": jnp.zeros((L, 1, 3 * W), jnp.float32),
            "wo": nrm(keys[4], (L, W, W), dtype=jnp.bfloat16),
            "bo": jnp.zeros((L, 1, W), jnp.float32),
            "ln2_g": jnp.ones((L, 1, W), jnp.float32),
            "ln2_b": jnp.zeros((L, 1, W), jnp.float32),
            "w1": nrm(keys[5], (L, W, FF), dtype=jnp.bfloat16),
            "b1": jnp.zeros((L, 1, FF), jnp.float32),
            "w2": nrm(keys[6], (L, FF, W), dtype=jnp.bfloat16),
            "b2": jnp.zeros((L, 1, W), jnp.float32),
        },
    }


if __name__ == "__main__":
    # Small shapes consistent with a CLIP text tower (seq intentionally not a
    # multiple of 8 so the padding path is exercised).
    VOCAB, BATCH, SEQ, WIDTH, HEADS, LAYERS, EMBED = 128, 4, 13, 128, 4, 2, 64

    key = jax.random.PRNGKey(0)
    pkey, tkey = jax.random.split(key)
    params = init_params(pkey, VOCAB, SEQ, WIDTH, LAYERS, EMBED)
    text = jax.random.randint(tkey, (BATCH, SEQ), 0, VOCAB, dtype=jnp.int32)

    out = encode_text(text, params, HEADS)
    out = jax.block_until_ready(out)
    assert out.shape == (BATCH, EMBED) and out.dtype == jnp.float32
    assert bool(jnp.all(jnp.isfinite(out)))
    print("KERNEL_OK")
</pallas_src>

<mosaic_0001>
module attributes {stable_mosaic.version = 11 : i64} {
  func.func @tower_kernel(%arg0: i32, %arg1: i32, %arg2: memref<4x16x128xf32, #tpu.memory_space<vmem>>, %arg3: memref<4x16x1xf32, #tpu.memory_space<vmem>>, %arg4: memref<1x1x128xf32, #tpu.memory_space<vmem>>, %arg5: memref<1x1x128xf32, #tpu.memory_space<vmem>>, %arg6: memref<1x128x384xbf16, #tpu.memory_space<vmem>>, %arg7: memref<1x1x384xf32, #tpu.memory_space<vmem>>, %arg8: memref<1x128x128xbf16, #tpu.memory_space<vmem>>, %arg9: memref<1x1x128xf32, #tpu.memory_space<vmem>>, %arg10: memref<1x1x128xf32, #tpu.memory_space<vmem>>, %arg11: memref<1x1x128xf32, #tpu.memory_space<vmem>>, %arg12: memref<1x128x512xbf16, #tpu.memory_space<vmem>>, %arg13: memref<1x1x512xf32, #tpu.memory_space<vmem>>, %arg14: memref<1x512x128xbf16, #tpu.memory_space<vmem>>, %arg15: memref<1x1x128xf32, #tpu.memory_space<vmem>>, %arg16: memref<1x128xf32, #tpu.memory_space<vmem>>, %arg17: memref<1x128xf32, #tpu.memory_space<vmem>>, %arg18: memref<128x64xbf16, #tpu.memory_space<vmem>>, %arg19: memref<1x4x64xf32, #tpu.memory_space<vmem>>, %arg20: memref<4x16x128xf32, #tpu.memory_space<vmem>>) attributes {dimension_semantics = [#tpu.dimension_semantics<parallel>, #tpu.dimension_semantics<arbitrary>], iteration_bounds = array<i64: 1, 2>, scalar_prefetch = 0 : i64, scratch_operands = 1 : i64, tpu.core_type = #tpu.core_type<tc>, window_params = [{transform_indices = @transform_0, window_bounds = array<i64: 4, 16, 128>}, {transform_indices = @transform_1, window_bounds = array<i64: 4, 16, 1>}, {transform_indices = @transform_2, window_bounds = array<i64: 1, 1, 128>}, {transform_indices = @transform_3, window_bounds = array<i64: 1, 1, 128>}, {transform_indices = @transform_4, window_bounds = array<i64: 1, 128, 384>}, {transform_indices = @transform_5, window_bounds = array<i64: 1, 1, 384>}, {transform_indices = @transform_6, window_bounds = array<i64: 1, 128, 128>}, {transform_indices = @transform_7, window_bounds = array<i64: 1, 1, 128>}, {transform_indices = @transform_8, window_bounds = array<i64: 1, 1, 128>}, {transform_indices = @transform_9, window_bounds = array<i64: 1, 1, 128>}, {transform_indices = @transform_10, window_bounds = array<i64: 1, 128, 512>}, {transform_indices = @transform_11, window_bounds = array<i64: 1, 1, 512>}, {transform_indices = @transform_12, window_bounds = array<i64: 1, 512, 128>}, {transform_indices = @transform_13, window_bounds = array<i64: 1, 1, 128>}, {pipeline_mode = #tpu.pipeline_mode<synchronous>, transform_indices = @transform_14, window_bounds = array<i64: 1, 128>}, {pipeline_mode = #tpu.pipeline_mode<synchronous>, transform_indices = @transform_15, window_bounds = array<i64: 1, 128>}, {pipeline_mode = #tpu.pipeline_mode<synchronous>, transform_indices = @transform_16, window_bounds = array<i64: 128, 64>}, {transform_indices = @transform_17, window_bounds = array<i64: 1, 4, 64>}]} {
    %c0_i32 = arith.constant 0 : i32
    %0 = arith.cmpi eq, %arg1, %c0_i32 : i32
    %1 = arith.extui %0 : i1 to i32
    %c0_i32_0 = arith.constant 0 : i32
    %2 = arith.cmpi ne, %1, %c0_i32_0 : i32
    scf.if %2 {
      %c0_86 = arith.constant 0 : index
      %c0_87 = arith.constant 0 : index
      %c0_88 = arith.constant 0 : index
      %234 = vector.load %arg2[%c0_86, %c0_87, %c0_88] : memref<4x16x128xf32, #tpu.memory_space<vmem>>, vector<4x16x128xf32>
      %c0_89 = arith.constant 0 : index
      %c0_90 = arith.constant 0 : index
      %c0_91 = arith.constant 0 : index
      %235 = vector.load %arg20[%c0_89, %c0_90, %c0_91] : memref<4x16x128xf32, #tpu.memory_space<vmem>>, vector<4x16x128xf32>
      tpu.vector_store %arg20[%c0_89, %c0_90, %c0_91], %234 {strides = array<i32>} : memref<4x16x128xf32, #tpu.memory_space<vmem>>, vector<4x16x128xf32>,
    } else {
    }
    %c0 = arith.constant 0 : index
    %c0_1 = arith.constant 0 : index
    %c0_2 = arith.constant 0 : index
    %3 = vector.load %arg20[%c0, %c0_1, %c0_2] : memref<4x16x128xf32, #tpu.memory_space<vmem>>, vector<4x16x128xf32>
    %4 = vector.shape_cast %3 : vector<4x16x128xf32> to vector<64x128xf32>
    %c0_3 = arith.constant 0 : index
    %c0_4 = arith.constant 0 : index
    %c0_5 = arith.constant 0 : index
    %5 = vector.load %arg4[%c0_3, %c0_4, %c0_5] : memref<1x1x128xf32, #tpu.memory_space<vmem>>, vector<1x1x128xf32>
    %6 = vector.shape_cast %5 : vector<1x1x128xf32> to vector<1x128xf32>
    %c0_6 = arith.constant 0 : index
    %c0_7 = arith.constant 0 : index
    %c0_8 = arith.constant 0 : index
    %7 = vector.load %arg5[%c0_6, %c0_7, %c0_8] : memref<1x1x128xf32, #tpu.memory_space<vmem>>, vector<1x1x128xf32>
    %8 = vector.shape_cast %7 : vector<1x1x128xf32> to vector<1x128xf32>
    %cst = arith.constant dense<0.000000e+00> : vector<64xf32>
    %9 = vector.multi_reduction <add>, %4, %cst [1] : vector<64x128xf32> to vector<64xf32>
    %10 = vector.shape_cast %9 : vector<64xf32> to vector<64x1xf32>
    %cst_9 = arith.constant 1.280000e+02 : f32
    %11 = vector.broadcast %cst_9 : f32 to vector<64x1xf32>
    %12 = arith.divf %10, %11 : vector<64x1xf32>
    %13 = vector.broadcast %12 : vector<64x1xf32> to vector<64x128xf32>
    %14 = arith.subf %4, %13 : vector<64x128xf32>
    %15 = arith.mulf %14, %14 : vector<64x128xf32>
    %cst_10 = arith.constant dense<0.000000e+00> : vector<64xf32>
    %16 = vector.multi_reduction <add>, %15, %cst_10 [1] : vector<64x128xf32> to vector<64xf32>
    %17 = vector.shape_cast %16 : vector<64xf32> to vector<64x1xf32>
    %cst_11 = arith.constant 1.280000e+02 : f32
    %18 = vector.broadcast %cst_11 : f32 to vector<64x1xf32>
    %19 = arith.divf %17, %18 : vector<64x1xf32>
    %cst_12 = arith.constant 9.99999974E-6 : f32
    %20 = vector.broadcast %cst_12 : f32 to vector<64x1xf32>
    %21 = arith.addf %19, %20 : vector<64x1xf32>
    %22 = math.rsqrt %21 : vector<64x1xf32>
    %23 = vector.broadcast %22 : vector<64x1xf32> to vector<64x128xf32>
    %24 = arith.mulf %14, %23 : vector<64x128xf32>
    %25 = vector.broadcast %6 : vector<1x128xf32> to vector<64x128xf32>
    %26 = arith.mulf %24, %25 : vector<64x128xf32>
    %27 = vector.broadcast %8 : vector<1x128xf32> to vector<64x128xf32>
    %28 = arith.addf %26, %27 : vector<64x128xf32>
    %29 = arith.truncf %28 : vector<64x128xf32> to vector<64x128xbf16>
    %c0_13 = arith.constant 0 : index
    %c0_14 = arith.constant 0 : index
    %c0_15 = arith.constant 0 : index
    %30 = vector.load %arg6[%c0_13, %c0_14, %c0_15] : memref<1x128x384xbf16, #tpu.memory_space<vmem>>, vector<1x128x384xbf16>
    %31 = vector.shape_cast %30 : vector<1x128x384xbf16> to vector<128x384xbf16>
    %cst_16 = arith.constant dense<0.000000e+00> : vector<64x384xf32>
    %32 = tpu.matmul %29, %31, %cst_16 {dimension_numbers = #tpu.dot_dimension_numbers<[1], [0], [0], [1], [0, 0, 1, 1], [], []>} : vector<64x128xbf16>, vector<128x384xbf16>, vector<64x384xf32> -> vector<64x384xf32>
    %c0_17 = arith.constant 0 : index
    %c0_18 = arith.constant 0 : index
    %c0_19 = arith.constant 0 : index
    %33 = vector.load %arg7[%c0_17, %c0_18, %c0_19] : memref<1x1x384xf32, #tpu.memory_space<vmem>>, vector<1x1x384xf32>
    %34 = vector.shape_cast %33 : vector<1x1x384xf32> to vector<1x384xf32>
    %35 = vector.broadcast %34 : vector<1x384xf32> to vector<64x384xf32>
    %36 = arith.addf %32, %35 : vector<64x384xf32>
    %37 = tpu.iota {dimensions = array<i32: 0>} : vector<16x16xi32>
    %38 = tpu.iota {dimensions = array<i32: 1>} : vector<16x16xi32>
    %39 = arith.cmpi sle, %38, %37 : vector<16x16xi32>
    %c0_20 = arith.constant 0 : index
    %c0_21 = arith.constant 0 : index
    %c0_22 = arith.constant 0 : index
    %40 = vector.load %arg8[%c0_20, %c0_21, %c0_22] : memref<1x128x128xbf16, #tpu.memory_space<vmem>>, vector<1x128x128xbf16>
    %41 = vector.shape_cast %40 : vector<1x128x128xbf16> to vector<128x128xbf16>
    %cst_23 = arith.constant 0.000000e+00 : f32
    %42 = vector.broadcast %cst_23 : f32 to vector<64x128xf32>
    %43 = vector.extract_strided_slice %36 {offsets = [0, 0], sizes = [64, 32], strides = [1, 1]} : vector<64x384xf32> to vector<64x32xf32>
    %44 = vector.shape_cast %43 : vector<64x32xf32> to vector<4x16x32xf32>
    %45 = vector.extract_strided_slice %36 {offsets = [0, 128], sizes = [64, 32], strides = [1, 1]} : vector<64x384xf32> to vector<64x32xf32>
    %46 = vector.shape_cast %45 : vector<64x32xf32> to vector<4x16x32xf32>
    %47 = vector.extract_strided_slice %36 {offsets = [0, 256], sizes = [64, 32], strides = [1, 1]} : vector<64x384xf32> to vector<64x32xf32>
    %48 = vector.shape_cast %47 : vector<64x32xf32> to vector<4x16x32xf32>
    %49 = arith.truncf %44 : vector<4x16x32xf32> to vector<4x16x32xbf16>
    %50 = arith.truncf %46 : vector<4x16x32xf32> to vector<4x16x32xbf16>
    "tpu.trace_start"() <{level = 10 : i32, message = "bqd,bkd->bqk"}> : () -> ()
    %cst_24 = arith.constant dense<0.000000e+00> : vector<4x16x16xf32>
    %51 = tpu.matmul %49, %50, %cst_24 {dimension_numbers = #tpu.dot_dimension_numbers<[2], [2], [1], [1], [0, 0, 0, 1, 1, 1], [0], [0]>} : vector<4x16x32xbf16>, vector<4x16x32xbf16>, vector<4x16x16xf32> -> vector<4x16x16xf32>
    "tpu.trace_stop"() : () -> ()
    %cst_25 = arith.constant 0.176776692 : f32
    %52 = vector.broadcast %cst_25 : f32 to vector<4x16x16xf32>
    %53 = arith.mulf %51, %52 : vector<4x16x16xf32>
    %cst_26 = arith.constant -1.000000e+30 : f32
    %54 = vector.shape_cast %39 : vector<16x16xi1> to vector<1x16x16xi1>
    %55 = vector.broadcast %54 : vector<1x16x16xi1> to vector<4x16x16xi1>
    %56 = vector.broadcast %cst_26 : f32 to vector<4x16x16xf32>
    %57 = arith.select %55, %53, %56 : vector<4x16x16xi1>, vector<4x16x16xf32>
    %cst_27 = arith.constant dense<0xFF800000> : vector<4x16xf32>
    %58 = vector.multi_reduction <maximumf>, %57, %cst_27 [2] : vector<4x16x16xf32> to vector<4x16xf32>
    %59 = vector.shape_cast %58 : vector<4x16xf32> to vector<4x16x1xf32>
    %60 = vector.broadcast %59 : vector<4x16x1xf32> to vector<4x16x16xf32>
    %61 = arith.subf %57, %60 : vector<4x16x16xf32>
    %62 = math.exp %61 : vector<4x16x16xf32>
    %cst_28 = arith.constant dense<0.000000e+00> : vector<4x16xf32>
    %63 = vector.multi_reduction <add>, %62, %cst_28 [2] : vector<4x16x16xf32> to vector<4x16xf32>
    %64 = vector.shape_cast %63 : vector<4x16xf32> to vector<4x16x1xf32>
    %65 = tpu.reciprocal %64 {approx = true} : vector<4x16x1xf32> -> vector<4x16x1xf32>
    %66 = vector.broadcast %65 : vector<4x16x1xf32> to vector<4x16x16xf32>
    %67 = arith.mulf %62, %66 : vector<4x16x16xf32>
    %68 = arith.truncf %67 : vector<4x16x16xf32> to vector<4x16x16xbf16>
    %69 = arith.truncf %48 : vector<4x16x32xf32> to vector<4x16x32xbf16>
    "tpu.trace_start"() <{level = 10 : i32, message = "bqk,bkd->bqd"}> : () -> ()
    %cst_29 = arith.constant dense<0.000000e+00> : vector<4x16x32xf32>
    %70 = tpu.matmul %68, %69, %cst_29 {dimension_numbers = #tpu.dot_dimension_numbers<[2], [1], [1], [2], [0, 0, 0, 1, 1, 2], [0], [0]>} : vector<4x16x16xbf16>, vector<4x16x32xbf16>, vector<4x16x32xf32> -> vector<4x16x32xf32>
    "tpu.trace_stop"() : () -> ()
    %71 = vector.shape_cast %70 : vector<4x16x32xf32> to vector<64x32xf32>
    %72 = arith.truncf %71 : vector<64x32xf32> to vector<64x32xbf16>
    %73 = vector.extract_strided_slice %41 {offsets = [0, 0], sizes = [32, 128], strides = [1, 1]} : vector<128x128xbf16> to vector<32x128xbf16>
    %cst_30 = arith.constant dense<0.000000e+00> : vector<64x128xf32>
    %74 = tpu.matmul %72, %73, %cst_30 {dimension_numbers = #tpu.dot_dimension_numbers<[1], [0], [0], [1], [0, 0, 1, 1], [], []>} : vector<64x32xbf16>, vector<32x128xbf16>, vector<64x128xf32> -> vector<64x128xf32>
    %75 = arith.addf %42, %74 : vector<64x128xf32>
    %76 = vector.extract_strided_slice %36 {offsets = [0, 32], sizes = [64, 32], strides = [1, 1]} : vector<64x384xf32> to vector<64x32xf32>
    %77 = vector.shape_cast %76 : vector<64x32xf32> to vector<4x16x32xf32>
    %78 = vector.extract_strided_slice %36 {offsets = [0, 160], sizes = [64, 32], strides = [1, 1]} : vector<64x384xf32> to vector<64x32xf32>
    %79 = vector.shape_cast %78 : vector<64x32xf32> to vector<4x16x32xf32>
    %80 = vector.extract_strided_slice %36 {offsets = [0, 288], sizes = [64, 32], strides = [1, 1]} : vector<64x384xf32> to vector<64x32xf32>
    %81 = vector.shape_cast %80 : vector<64x32xf32> to vector<4x16x32xf32>
    %82 = arith.truncf %77 : vector<4x16x32xf32> to vector<4x16x32xbf16>
    %83 = arith.truncf %79 : vector<4x16x32xf32> to vector<4x16x32xbf16>
    "tpu.trace_start"() <{level = 10 : i32, message = "bqd,bkd->bqk"}> : () -> ()
    %cst_31 = arith.constant dense<0.000000e+00> : vector<4x16x16xf32>
    %84 = tpu.matmul %82, %83, %cst_31 {dimension_numbers = #tpu.dot_dimension_numbers<[2], [2], [1], [1], [0, 0, 0, 1, 1, 1], [0], [0]>} : vector<4x16x32xbf16>, vector<4x16x32xbf16>, vector<4x16x16xf32> -> vector<4x16x16xf32>
    "tpu.trace_stop"() : () -> ()
    %cst_32 = arith.constant 0.176776692 : f32
    %85 = vector.broadcast %cst_32 : f32 to vector<4x16x16xf32>
    %86 = arith.mulf %84, %85 : vector<4x16x16xf32>
    %cst_33 = arith.constant -1.000000e+30 : f32
    %87 = vector.shape_cast %39 : vector<16x16xi1> to vector<1x16x16xi1>
    %88 = vector.broadcast %87 : vector<1x16x16xi1> to vector<4x16x16xi1>
    %89 = vector.broadcast %cst_33 : f32 to vector<4x16x16xf32>
    %90 = arith.select %88, %86, %89 : vector<4x16x16xi1>, vector<4x16x16xf32>
    %cst_34 = arith.constant dense<0xFF800000> : vector<4x16xf32>
    %91 = vector.multi_reduction <maximumf>, %90, %cst_34 [2] : vector<4x16x16xf32> to vector<4x16xf32>
    %92 = vector.shape_cast %91 : vector<4x16xf32> to vector<4x16x1xf32>
    %93 = vector.broadcast %92 : vector<4x16x1xf32> to vector<4x16x16xf32>
    %94 = arith.subf %90, %93 : vector<4x16x16xf32>
    %95 = math.exp %94 : vector<4x16x16xf32>
    %cst_35 = arith.constant dense<0.000000e+00> : vector<4x16xf32>
    %96 = vector.multi_reduction <add>, %95, %cst_35 [2] : vector<4x16x16xf32> to vector<4x16xf32>
    %97 = vector.shape_cast %96 : vector<4x16xf32> to vector<4x16x1xf32>
    %98 = tpu.reciprocal %97 {approx = true} : vector<4x16x1xf32> -> vector<4x16x1xf32>
    %99 = vector.broadcast %98 : vector<4x16x1xf32> to vector<4x16x16xf32>
    %100 = arith.mulf %95, %99 : vector<4x16x16xf32>
    %101 = arith.truncf %100 : vector<4x16x16xf32> to vector<4x16x16xbf16>
    %102 = arith.truncf %81 : vector<4x16x32xf32> to vector<4x16x32xbf16>
    "tpu.trace_start"() <{level = 10 : i32, message = "bqk,bkd->bqd"}> : () -> ()
    %cst_36 = arith.constant dense<0.000000e+00> : vector<4x16x32xf32>
    %103 = tpu.matmul %101, %102, %cst_36 {dimension_numbers = #tpu.dot_dimension_numbers<[2], [1], [1], [2], [0, 0, 0, 1, 1, 2], [0], [0]>} : vector<4x16x16xbf16>, vector<4x16x32xbf16>, vector<4x16x32xf32> -> vector<4x16x32xf32>
    "tpu.trace_stop"() : () -> ()
    %104 = vector.shape_cast %103 : vector<4x16x32xf32> to vector<64x32xf32>
    %105 = arith.truncf %104 : vector<64x32xf32> to vector<64x32xbf16>
    %106 = vector.extract_strided_slice %41 {offsets = [32, 0], sizes = [32, 128], strides = [1, 1]} : vector<128x128xbf16> to vector<32x128xbf16>
    %cst_37 = arith.constant dense<0.000000e+00> : vector<64x128xf32>
    %107 = tpu.matmul %105, %106, %cst_37 {dimension_numbers = #tpu.dot_dimension_numbers<[1], [0], [0], [1], [0, 0, 1, 1], [], []>} : vector<64x32xbf16>, vector<32x128xbf16>, vector<64x128xf32> -> vector<64x128xf32>
    %108 = arith.addf %75, %107 : vector<64x128xf32>
    %109 = vector.extract_strided_slice %36 {offsets = [0, 64], sizes = [64, 32], strides = [1, 1]} : vector<64x384xf32> to vector<64x32xf32>
    %110 = vector.shape_cast %109 : vector<64x32xf32> to vector<4x16x32xf32>
    %111 = vector.extract_strided_slice %36 {offsets = [0, 192], sizes = [64, 32], strides = [1, 1]} : vector<64x384xf32> to vector<64x32xf32>
    %112 = vector.shape_cast %111 : vector<64x32xf32> to vector<4x16x32xf32>
    %113 = vector.extract_strided_slice %36 {offsets = [0, 320], sizes = [64, 32], strides = [1, 1]} : vector<64x384xf32> to vector<64x32xf32>
    %114 = vector.shape_cast %113 : vector<64x32xf32> to vector<4x16x32xf32>
    %115 = arith.truncf %110 : vector<4x16x32xf32> to vector<4x16x32xbf16>
    %116 = arith.truncf %112 : vector<4x16x32xf32> to vector<4x16x32xbf16>
    "tpu.trace_start"() <{level = 10 : i32, message = "bqd,bkd->bqk"}> : () -> ()
    %cst_38 = arith.constant dense<0.000000e+00> : vector<4x16x16xf32>
    %117 = tpu.matmul %115, %116, %cst_38 {dimension_numbers = #tpu.dot_dimension_numbers<[2], [2], [1], [1], [0, 0, 0, 1, 1, 1], [0], [0]>} : vector<4x16x32xbf16>, vector<4x16x32xbf16>, vector<4x16x16xf32> -> vector<4x16x16xf32>
    "tpu.trace_stop"() : () -> ()
    %cst_39 = arith.constant 0.176776692 : f32
    %118 = vector.broadcast %cst_39 : f32 to vector<4x16x16xf32>
    %119 = arith.mulf %117, %118 : vector<4x16x16xf32>
    %cst_40 = arith.constant -1.000000e+30 : f32
    %120 = vector.shape_cast %39 : vector<16x16xi1> to vector<1x16x16xi1>
    %121 = vector.broadcast %120 : vector<1x16x16xi1> to vector<4x16x16xi1>
    %122 = vector.broadcast %cst_40 : f32 to vector<4x16x16xf32>
    %123 = arith.select %121, %119, %122 : vector<4x16x16xi1>, vector<4x16x16xf32>
    %cst_41 = arith.constant dense<0xFF800000> : vector<4x16xf32>
    %124 = vector.multi_reduction <maximumf>, %123, %cst_41 [2] : vector<4x16x16xf32> to vector<4x16xf32>
    %125 = vector.shape_cast %124 : vector<4x16xf32> to vector<4x16x1xf32>
    %126 = vector.broadcast %125 : vector<4x16x1xf32> to vector<4x16x16xf32>
    %127 = arith.subf %123, %126 : vector<4x16x16xf32>
    %128 = math.exp %127 : vector<4x16x16xf32>
    %cst_42 = arith.constant dense<0.000000e+00> : vector<4x16xf32>
    %129 = vector.multi_reduction <add>, %128, %cst_42 [2] : vector<4x16x16xf32> to vector<4x16xf32>
    %130 = vector.shape_cast %129 : vector<4x16xf32> to vector<4x16x1xf32>
    %131 = tpu.reciprocal %130 {approx = true} : vector<4x16x1xf32> -> vector<4x16x1xf32>
    %132 = vector.broadcast %131 : vector<4x16x1xf32> to vector<4x16x16xf32>
    %133 = arith.mulf %128, %132 : vector<4x16x16xf32>
    %134 = arith.truncf %133 : vector<4x16x16xf32> to vector<4x16x16xbf16>
    %135 = arith.truncf %114 : vector<4x16x32xf32> to vector<4x16x32xbf16>
    "tpu.trace_start"() <{level = 10 : i32, message = "bqk,bkd->bqd"}> : () -> ()
    %cst_43 = arith.constant dense<0.000000e+00> : vector<4x16x32xf32>
    %136 = tpu.matmul %134, %135, %cst_43 {dimension_numbers = #tpu.dot_dimension_numbers<[2], [1], [1], [2], [0, 0, 0, 1, 1, 2], [0], [0]>} : vector<4x16x16xbf16>, vector<4x16x32xbf16>, vector<4x16x32xf32> -> vector<4x16x32xf32>
    "tpu.trace_stop"() : () -> ()
    %137 = vector.shape_cast %136 : vector<4x16x32xf32> to vector<64x32xf32>
    %138 = arith.truncf %137 : vector<64x32xf32> to vector<64x32xbf16>
    %139 = vector.extract_strided_slice %41 {offsets = [64, 0], sizes = [32, 128], strides = [1, 1]} : vector<128x128xbf16> to vector<32x128xbf16>
    %cst_44 = arith.constant dense<0.000000e+00> : vector<64x128xf32>
    %140 = tpu.matmul %138, %139, %cst_44 {dimension_numbers = #tpu.dot_dimension_numbers<[1], [0], [0], [1], [0, 0, 1, 1], [], []>} : vector<64x32xbf16>, vector<32x128xbf16>, vector<64x128xf32> -> vector<64x128xf32>
    %141 = arith.addf %108, %140 : vector<64x128xf32>
    %142 = vector.extract_strided_slice %36 {offsets = [0, 96], sizes = [64, 32], strides = [1, 1]} : vector<64x384xf32> to vector<64x32xf32>
    %143 = vector.shape_cast %142 : vector<64x32xf32> to vector<4x16x32xf32>
    %144 = vector.extract_strided_slice %36 {offsets = [0, 224], sizes = [64, 32], strides = [1, 1]} : vector<64x384xf32> to vector<64x32xf32>
    %145 = vector.shape_cast %144 : vector<64x32xf32> to vector<4x16x32xf32>
    %146 = vector.extract_strided_slice %36 {offsets = [0, 352], sizes = [64, 32], strides = [1, 1]} : vector<64x384xf32> to vector<64x32xf32>
    %147 = vector.shape_cast %146 : vector<64x32xf32> to vector<4x16x32xf32>
    %148 = arith.truncf %143 : vector<4x16x32xf32> to vector<4x16x32xbf16>
    %149 = arith.truncf %145 : vector<4x16x32xf32> to vector<4x16x32xbf16>
    "tpu.trace_start"() <{level = 10 : i32, message = "bqd,bkd->bqk"}> : () -> ()
    %cst_45 = arith.constant dense<0.000000e+00> : vector<4x16x16xf32>
    %150 = tpu.matmul %148, %149, %cst_45 {dimension_numbers = #tpu.dot_dimension_numbers<[2], [2], [1], [1], [0, 0, 0, 1, 1, 1], [0], [0]>} : vector<4x16x32xbf16>, vector<4x16x32xbf16>, vector<4x16x16xf32> -> vector<4x16x16xf32>
    "tpu.trace_stop"() : () -> ()
    %cst_46 = arith.constant 0.176776692 : f32
    %151 = vector.broadcast %cst_46 : f32 to vector<4x16x16xf32>
    %152 = arith.mulf %150, %151 : vector<4x16x16xf32>
    %cst_47 = arith.constant -1.000000e+30 : f32
    %153 = vector.shape_cast %39 : vector<16x16xi1> to vector<1x16x16xi1>
    %154 = vector.broadcast %153 : vector<1x16x16xi1> to vector<4x16x16xi1>
    %155 = vector.broadcast %cst_47 : f32 to vector<4x16x16xf32>
    %156 = arith.select %154, %152, %155 : vector<4x16x16xi1>, vector<4x16x16xf32>
    %cst_48 = arith.constant dense<0xFF800000> : vector<4x16xf32>
    %157 = vector.multi_reduction <maximumf>, %156, %cst_48 [2] : vector<4x16x16xf32> to vector<4x16xf32>
    %158 = vector.shape_cast %157 : vector<4x16xf32> to vector<4x16x1xf32>
    %159 = vector.broadcast %158 : vector<4x16x1xf32> to vector<4x16x16xf32>
    %160 = arith.subf %156, %159 : vector<4x16x16xf32>
    %161 = math.exp %160 : vector<4x16x16xf32>
    %cst_49 = arith.constant dense<0.000000e+00> : vector<4x16xf32>
    %162 = vector.multi_reduction <add>, %161, %cst_49 [2] : vector<4x16x16xf32> to vector<4x16xf32>
    %163 = vector.shape_cast %162 : vector<4x16xf32> to vector<4x16x1xf32>
    %164 = tpu.reciprocal %163 {approx = true} : vector<4x16x1xf32> -> vector<4x16x1xf32>
    %165 = vector.broadcast %164 : vector<4x16x1xf32> to vector<4x16x16xf32>
    %166 = arith.mulf %161, %165 : vector<4x16x16xf32>
    %167 = arith.truncf %166 : vector<4x16x16xf32> to vector<4x16x16xbf16>
    %168 = arith.truncf %147 : vector<4x16x32xf32> to vector<4x16x32xbf16>
    "tpu.trace_start"() <{level = 10 : i32, message = "bqk,bkd->bqd"}> : () -> ()
    %cst_50 = arith.constant dense<0.000000e+00> : vector<4x16x32xf32>
    %169 = tpu.matmul %167, %168, %cst_50 {dimension_numbers = #tpu.dot_dimension_numbers<[2], [1], [1], [2], [0, 0, 0, 1, 1, 2], [0], [0]>} : vector<4x16x16xbf16>, vector<4x16x32xbf16>, vector<4x16x32xf32> -> vector<4x16x32xf32>
    "tpu.trace_stop"() : () -> ()
    %170 = vector.shape_cast %169 : vector<4x16x32xf32> to vector<64x32xf32>
    %171 = arith.truncf %170 : vector<64x32xf32> to vector<64x32xbf16>
    %172 = vector.extract_strided_slice %41 {offsets = [96, 0], sizes = [32, 128], strides = [1, 1]} : vector<128x128xbf16> to vector<32x128xbf16>
    %cst_51 = arith.constant dense<0.000000e+00> : vector<64x128xf32>
    %173 = tpu.matmul %171, %172, %cst_51 {dimension_numbers = #tpu.dot_dimension_numbers<[1], [0], [0], [1], [0, 0, 1, 1], [], []>} : vector<64x32xbf16>, vector<32x128xbf16>, vector<64x128xf32> -> vector<64x128xf32>
    %174 = arith.addf %141, %173 : vector<64x128xf32>
    %175 = arith.addf %4, %174 : vector<64x128xf32>
    %c0_52 = arith.constant 0 : index
    %c0_53 = arith.constant 0 : index
    %c0_54 = arith.constant 0 : index
    %176 = vector.load %arg9[%c0_52, %c0_53, %c0_54] : memref<1x1x128xf32, #tpu.memory_space<vmem>>, vector<1x1x128xf32>
    %177 = vector.shape_cast %176 : vector<1x1x128xf32> to vector<1x128xf32>
    %178 = vector.broadcast %177 : vector<1x128xf32> to vector<64x128xf32>
    %179 = arith.addf %175, %178 : vector<64x128xf32>
    %c0_55 = arith.constant 0 : index
    %c0_56 = arith.constant 0 : index
    %c0_57 = arith.constant 0 : index
    %180 = vector.load %arg10[%c0_55, %c0_56, %c0_57] : memref<1x1x128xf32, #tpu.memory_space<vmem>>, vector<1x1x128xf32>
    %181 = vector.shape_cast %180 : vector<1x1x128xf32> to vector<1x128xf32>
    %c0_58 = arith.constant 0 : index
    %c0_59 = arith.constant 0 : index
    %c0_60 = arith.constant 0 : index
    %182 = vector.load %arg11[%c0_58, %c0_59, %c0_60] : memref<1x1x128xf32, #tpu.memory_space<vmem>>, vector<1x1x128xf32>
    %183 = vector.shape_cast %182 : vector<1x1x128xf32> to vector<1x128xf32>
    %cst_61 = arith.constant dense<0.000000e+00> : vector<64xf32>
    %184 = vector.multi_reduction <add>, %179, %cst_61 [1] : vector<64x128xf32> to vector<64xf32>
    %185 = vector.shape_cast %184 : vector<64xf32> to vector<64x1xf32>
    %cst_62 = arith.constant 1.280000e+02 : f32
    %186 = vector.broadcast %cst_62 : f32 to vector<64x1xf32>
    %187 = arith.divf %185, %186 : vector<64x1xf32>
    %188 = vector.broadcast %187 : vector<64x1xf32> to vector<64x128xf32>
    %189 = arith.subf %179, %188 : vector<64x128xf32>
    %190 = arith.mulf %189, %189 : vector<64x128xf32>
    %cst_63 = arith.constant dense<0.000000e+00> : vector<64xf32>
    %191 = vector.multi_reduction <add>, %190, %cst_63 [1] : vector<64x128xf32> to vector<64xf32>
    %192 = vector.shape_cast %191 : vector<64xf32> to vector<64x1xf32>
    %cst_64 = arith.constant 1.280000e+02 : f32
    %193 = vector.broadcast %cst_64 : f32 to vector<64x1xf32>
    %194 = arith.divf %192, %193 : vector<64x1xf32>
    %cst_65 = arith.constant 9.99999974E-6 : f32
    %195 = vector.broadcast %cst_65 : f32 to vector<64x1xf32>
    %196 = arith.addf %194, %195 : vector<64x1xf32>
    %197 = math.rsqrt %196 : vector<64x1xf32>
    %198 = vector.broadcast %197 : vector<64x1xf32> to vector<64x128xf32>
    %199 = arith.mulf %189, %198 : vector<64x128xf32>
    %200 = vector.broadcast %181 : vector<1x128xf32> to vector<64x128xf32>
    %201 = arith.mulf %199, %200 : vector<64x128xf32>
    %202 = vector.broadcast %183 : vector<1x128xf32> to vector<64x128xf32>
    %203 = arith.addf %201, %202 : vector<64x128xf32>
    %204 = arith.truncf %203 : vector<64x128xf32> to vector<64x128xbf16>
    %c0_66 = arith.constant 0 : index
    %c0_67 = arith.constant 0 : index
    %c0_68 = arith.constant 0 : index
    %205 = vector.load %arg12[%c0_66, %c0_67, %c0_68] : memref<1x128x512xbf16, #tpu.memory_space<vmem>>, vector<1x128x512xbf16>
    %206 = vector.shape_cast %205 : vector<1x128x512xbf16> to vector<128x512xbf16>
    %cst_69 = arith.constant dense<0.000000e+00> : vector<64x512xf32>
    %207 = tpu.matmul %204, %206, %cst_69 {dimension_numbers = #tpu.dot_dimension_numbers<[1], [0], [0], [1], [0, 0, 1, 1], [], []>} : vector<64x128xbf16>, vector<128x512xbf16>, vector<64x512xf32> -> vector<64x512xf32>
    %c0_70 = arith.constant 0 : index
    %c0_71 = arith.constant 0 : index
    %c0_72 = arith.constant 0 : index
    %208 = vector.load %arg13[%c0_70, %c0_71, %c0_72] : memref<1x1x512xf32, #tpu.memory_space<vmem>>, vector<1x1x512xf32>
    %209 = vector.shape_cast %208 : vector<1x1x512xf32> to vector<1x512xf32>
    %210 = vector.broadcast %209 : vector<1x512xf32> to vector<64x512xf32>
    %211 = arith.addf %207, %210 : vector<64x512xf32>
    %cst_73 = arith.constant 1.702000e+00 : f32
    %212 = vector.broadcast %cst_73 : f32 to vector<64x512xf32>
    %213 = arith.mulf %212, %211 : vector<64x512xf32>
    %214 = arith.negf %213 : vector<64x512xf32>
    %215 = math.exp %214 : vector<64x512xf32>
    %cst_74 = arith.constant 1.000000e+00 : f32
    %216 = vector.broadcast %cst_74 : f32 to vector<64x512xf32>
    %217 = arith.addf %216, %215 : vector<64x512xf32>
    %218 = arith.divf %216, %217 : vector<64x512xf32>
    %219 = arith.mulf %211, %218 : vector<64x512xf32>
    %220 = arith.truncf %219 : vector<64x512xf32> to vector<64x512xbf16>
    %c0_75 = arith.constant 0 : index
    %c0_76 = arith.constant 0 : index
    %c0_77 = arith.constant 0 : index
    %221 = vector.load %arg14[%c0_75, %c0_76, %c0_77] : memref<1x512x128xbf16, #tpu.memory_space<vmem>>, vector<1x512x128xbf16>
    %222 = vector.shape_cast %221 : vector<1x512x128xbf16> to vector<512x128xbf16>
    %cst_78 = arith.constant dense<0.000000e+00> : vector<64x128xf32>
    %223 = tpu.matmul %220, %222, %cst_78 {dimension_numbers = #tpu.dot_dimension_numbers<[1], [0], [0], [1], [0, 0, 1, 1], [], []>} : vector<64x512xbf16>, vector<512x128xbf16>, vector<64x128xf32> -> vector<64x128xf32>
    %224 = arith.addf %179, %223 : vector<64x128xf32>
    %c0_79 = arith.constant 0 : index
    %c0_80 = arith.constant 0 : index
    %c0_81 = arith.constant 0 : index
    %225 = vector.load %arg15[%c0_79, %c0_80, %c0_81] : memref<1x1x128xf32, #tpu.memory_space<vmem>>, vector<1x1x128xf32>
    %226 = vector.shape_cast %225 : vector<1x1x128xf32> to vector<1x128xf32>
    %227 = vector.broadcast %226 : vector<1x128xf32> to vector<64x128xf32>
    %228 = arith.addf %224, %227 : vector<64x128xf32>
    %229 = vector.shape_cast %228 : vector<64x128xf32> to vector<4x16x128xf32>
    %c0_82 = arith.constant 0 : index
    %c0_83 = arith.constant 0 : index
    %c0_84 = arith.constant 0 : index
    %230 = vector.load %arg20[%c0_82, %c0_83, %c0_84] : memref<4x16x128xf32, #tpu.memory_space<vmem>>, vector<4x16x128xf32>
    tpu.vector_store %arg20[%c0_82, %c0_83, %c0_84], %229 {strides = array<i32>} : memref<4x16x128xf32, #tpu.memory_space<vmem>>, vector<4x16x128xf32>,
    %c1_i32 = arith.constant 1 : i32
    %231 = arith.cmpi eq, %arg1, %c1_i32 : i32
    %232 = arith.extui %231 : i1 to i32
    %c0_i32_85 = arith.constant 0 : i32
    %233 = arith.cmpi ne, %232, %c0_i32_85 : i32
    scf.if %233 {
      %c0_86 = arith.constant 0 : index
      %c0_87 = arith.constant 0 : index
      %c0_88 = arith.constant 0 : index
      %234 = vector.load %arg3[%c0_86, %c0_87, %c0_88] : memref<4x16x1xf32, #tpu.memory_space<vmem>>, vector<4x16x1xf32>
      %235 = vector.broadcast %234 : vector<4x16x1xf32> to vector<4x16x128xf32>
      %236 = arith.mulf %229, %235 : vector<4x16x128xf32>
      %cst_89 = arith.constant dense<0.000000e+00> : vector<4x128xf32>
      %237 = vector.multi_reduction <add>, %236, %cst_89 [1] : vector<4x16x128xf32> to vector<4x128xf32>
      %c0_90 = arith.constant 0 : index
      %c0_91 = arith.constant 0 : index
      %238 = vector.load %arg16[%c0_90, %c0_91] : memref<1x128xf32, #tpu.memory_space<vmem>>, vector<1x128xf32>
      %c0_92 = arith.constant 0 : index
      %c0_93 = arith.constant 0 : index
      %239 = vector.load %arg17[%c0_92, %c0_93] : memref<1x128xf32, #tpu.memory_space<vmem>>, vector<1x128xf32>
      %cst_94 = arith.constant dense<0.000000e+00> : vector<4xf32>
      %240 = vector.multi_reduction <add>, %237, %cst_94 [1] : vector<4x128xf32> to vector<4xf32>
      %241 = vector.shape_cast %240 : vector<4xf32> to vector<4x1xf32>
      %cst_95 = arith.constant 1.280000e+02 : f32
      %242 = vector.broadcast %cst_95 : f32 to vector<4x1xf32>
      %243 = arith.divf %241, %242 : vector<4x1xf32>
      %244 = vector.broadcast %243 : vector<4x1xf32> to vector<4x128xf32>
      %245 = arith.subf %237, %244 : vector<4x128xf32>
      %246 = arith.mulf %245, %245 : vector<4x128xf32>
      %cst_96 = arith.constant dense<0.000000e+00> : vector<4xf32>
      %247 = vector.multi_reduction <add>, %246, %cst_96 [1] : vector<4x128xf32> to vector<4xf32>
      %248 = vector.shape_cast %247 : vector<4xf32> to vector<4x1xf32>
      %cst_97 = arith.constant 1.280000e+02 : f32
      %249 = vector.broadcast %cst_97 : f32 to vector<4x1xf32>
      %250 = arith.divf %248, %249 : vector<4x1xf32>
      %cst_98 = arith.constant 9.99999974E-6 : f32
      %251 = vector.broadcast %cst_98 : f32 to vector<4x1xf32>
      %252 = arith.addf %250, %251 : vector<4x1xf32>
      %253 = math.rsqrt %252 : vector<4x1xf32>
      %254 = vector.broadcast %253 : vector<4x1xf32> to vector<4x128xf32>
      %255 = arith.mulf %245, %254 : vector<4x128xf32>
      %256 = vector.broadcast %238 : vector<1x128xf32> to vector<4x128xf32>
      %257 = arith.mulf %255, %256 : vector<4x128xf32>
      %258 = vector.broadcast %239 : vector<1x128xf32> to vector<4x128xf32>
      %259 = arith.addf %257, %258 : vector<4x128xf32>
      %260 = arith.truncf %259 : vector<4x128xf32> to vector<4x128xbf16>
      %c0_99 = arith.constant 0 : index
      %c0_100 = arith.constant 0 : index
      %261 = vector.load %arg18[%c0_99, %c0_100] : memref<128x64xbf16, #tpu.memory_space<vmem>>, vector<128x64xbf16>
      %cst_101 = arith.constant dense<0.000000e+00> : vector<4x64xf32>
      %262 = tpu.matmul %260, %261, %cst_101 {dimension_numbers = #tpu.dot_dimension_numbers<[1], [0], [0], [1], [0, 0, 1, 1], [], []>} : vector<4x128xbf16>, vector<128x64xbf16>, vector<4x64xf32> -> vector<4x64xf32>
      %c0_102 = arith.constant 0 : index
      %c0_103 = arith.constant 0 : index
      %c0_104 = arith.constant 0 : index
      %263 = vector.load %arg19[%c0_102, %c0_103, %c0_104] : memref<1x4x64xf32, #tpu.memory_space<vmem>>, vector<1x4x64xf32>
      %264 = vector.shape_cast %263 : vector<1x4x64xf32> to vector<4x64xf32>
      %265 = vector.shape_cast %262 : vector<4x64xf32> to vector<1x4x64xf32>
      tpu.vector_store %arg19[%c0_102, %c0_103, %c0_104], %265 {strides = array<i32>} : memref<1x4x64xf32, #tpu.memory_space<vmem>>, vector<1x4x64xf32>,
    } else {
    }
    return
  }
  func.func @transform_0(%arg0: i32, %arg1: i32) -> (i32, i32, i32) {
    %c0_i32 = arith.constant 0 : i32
    %c0_i32_0 = arith.constant 0 : i32
    %c0_i32_1 = arith.constant 0 : i32
    return %arg0, %c0_i32, %c0_i32_0 : i32, i32, i32
  }
  func.func @transform_1(%arg0: i32, %arg1: i32) -> (i32, i32, i32) {
    %c0_i32 = arith.constant 0 : i32
    %c0_i32_0 = arith.constant 0 : i32
    %c0_i32_1 = arith.constant 0 : i32
    return %arg0, %c0_i32, %c0_i32_0 : i32, i32, i32
  }
  func.func @transform_2(%arg0: i32, %arg1: i32) -> (i32, i32, i32) {
    %c0_i32 = arith.constant 0 : i32
    %c0_i32_0 = arith.constant 0 : i32
    %c0_i32_1 = arith.constant 0 : i32
    return %arg1, %c0_i32, %c0_i32_0 : i32, i32, i32
  }
  func.func @transform_3(%arg0: i32, %arg1: i32) -> (i32, i32, i32) {
    %c0_i32 = arith.constant 0 : i32
    %c0_i32_0 = arith.constant 0 : i32
    %c0_i32_1 = arith.constant 0 : i32
    return %arg1, %c0_i32, %c0_i32_0 : i32, i32, i32
  }
  func.func @transform_4(%arg0: i32, %arg1: i32) -> (i32, i32, i32) {
    %c0_i32 = arith.constant 0 : i32
    %c0_i32_0 = arith.constant 0 : i32
    %c0_i32_1 = arith.constant 0 : i32
    return %arg1, %c0_i32, %c0_i32_0 : i32, i32, i32
  }
  func.func @transform_5(%arg0: i32, %arg1: i32) -> (i32, i32, i32) {
    %c0_i32 = arith.constant 0 : i32
    %c0_i32_0 = arith.constant 0 : i32
    %c0_i32_1 = arith.constant 0 : i32
    return %arg1, %c0_i32, %c0_i32_0 : i32, i32, i32
  }
  func.func @transform_6(%arg0: i32, %arg1: i32) -> (i32, i32, i32) {
    %c0_i32 = arith.constant 0 : i32
    %c0_i32_0 = arith.constant 0 : i32
    %c0_i32_1 = arith.constant 0 : i32
    return %arg1, %c0_i32, %c0_i32_0 : i32, i32, i32
  }
  func.func @transform_7(%arg0: i32, %arg1: i32) -> (i32, i32, i32) {
    %c0_i32 = arith.constant 0 : i32
    %c0_i32_0 = arith.constant 0 : i32
    %c0_i32_1 = arith.constant 0 : i32
    return %arg1, %c0_i32, %c0_i32_0 : i32, i32, i32
  }
  func.func @transform_8(%arg0: i32, %arg1: i32) -> (i32, i32, i32) {
    %c0_i32 = arith.constant 0 : i32
    %c0_i32_0 = arith.constant 0 : i32
    %c0_i32_1 = arith.constant 0 : i32
    return %arg1, %c0_i32, %c0_i32_0 : i32, i32, i32
  }
  func.func @transform_9(%arg0: i32, %arg1: i32) -> (i32, i32, i32) {
    %c0_i32 = arith.constant 0 : i32
    %c0_i32_0 = arith.constant 0 : i32
    %c0_i32_1 = arith.constant 0 : i32
    return %arg1, %c0_i32, %c0_i32_0 : i32, i32, i32
  }
  func.func @transform_10(%arg0: i32, %arg1: i32) -> (i32, i32, i32) {
    %c0_i32 = arith.constant 0 : i32
    %c0_i32_0 = arith.constant 0 : i32
    %c0_i32_1 = arith.constant 0 : i32
    return %arg1, %c0_i32, %c0_i32_0 : i32, i32, i32
  }
  func.func @transform_11(%arg0: i32, %arg1: i32) -> (i32, i32, i32) {
    %c0_i32 = arith.constant 0 : i32
    %c0_i32_0 = arith.constant 0 : i32
    %c0_i32_1 = arith.constant 0 : i32
    return %arg1, %c0_i32, %c0_i32_0 : i32, i32, i32
  }
  func.func @transform_12(%arg0: i32, %arg1: i32) -> (i32, i32, i32) {
    %c0_i32 = arith.constant 0 : i32
    %c0_i32_0 = arith.constant 0 : i32
    %c0_i32_1 = arith.constant 0 : i32
    return %arg1, %c0_i32, %c0_i32_0 : i32, i32, i32
  }
  func.func @transform_13(%arg0: i32, %arg1: i32) -> (i32, i32, i32) {
    %c0_i32 = arith.constant 0 : i32
    %c0_i32_0 = arith.constant 0 : i32
    %c0_i32_1 = arith.constant 0 : i32
    return %arg1, %c0_i32, %c0_i32_0 : i32, i32, i32
  }
  func.func @transform_14(%arg0: i32, %arg1: i32) -> (i32, i32) {
    %c0_i32 = arith.constant 0 : i32
    %c0_i32_0 = arith.constant 0 : i32
    %c0_i32_1 = arith.constant 0 : i32
    return %c0_i32, %c0_i32_0 : i32, i32
  }
  func.func @transform_15(%arg0: i32, %arg1: i32) -> (i32, i32) {
    %c0_i32 = arith.constant 0 : i32
    %c0_i32_0 = arith.constant 0 : i32
    %c0_i32_1 = arith.constant 0 : i32
    return %c0_i32, %c0_i32_0 : i32, i32
  }
  func.func @transform_16(%arg0: i32, %arg1: i32) -> (i32, i32) {
    %c0_i32 = arith.constant 0 : i32
    %c0_i32_0 = arith.constant 0 : i32
    %c0_i32_1 = arith.constant 0 : i32
    return %c0_i32, %c0_i32_0 : i32, i32
  }
  func.func @transform_17(%arg0: i32, %arg1: i32) -> (i32, i32, i32) {
    %c0_i32 = arith.constant 0 : i32
    %c0_i32_0 = arith.constant 0 : i32
    %c0_i32_1 = arith.constant 0 : i32
    return %arg0, %c0_i32, %c0_i32_0 : i32, i32, i32
  }
}

</mosaic_0001>

<bundles_post_ra>
// kernel: tpu_custom_call.1
= control target key start
LH: loop header
LB: loop body
LE: loop exit
PB: predicated region body
PF: predicated region fallthrough
CT: control target
= control target key end

     0   :  { %s8442_s0 = inlined_call_operand.hbm [shape: f32[4,16,128], index: 0, kind: input, shape index: {}]   ;;  %s8443_s1 = inlined_call_operand.vmem [shape: f32[4,16,1], index: 1, kind: input, shape index: {}]   ;;  %s8444_s2 = inlined_call_operand.vmem [shape: f32[2,1,128], index: 2, kind: input, shape index: {}]   ;;  %s8445_s3 = inlined_call_operand.vmem [shape: f32[2,1,128], index: 3, kind: input, shape index: {}]   ;;  %s8446_s4 = inlined_call_operand.hbm [shape: bf16[2,128,384], index: 4, kind: input, shape index: {}]   ;;  %s8447_s5 = inlined_call_operand.vmem [shape: f32[2,1,384], index: 5, kind: input, shape index: {}]   ;;  %s8448_s6 = inlined_call_operand.vmem [shape: bf16[2,128,128], index: 6, kind: input, shape index: {}]   ;;  %s8449_s7 = inlined_call_operand.vmem [shape: f32[2,1,128], index: 7, kind: input, shape index: {}]   ;;  %s8450_s8 = inlined_call_operand.vmem [shape: f32[2,1,128], index: 8, kind: input, shape index: {}]   ;;  %s8451_s9 = inlined_call_operand.vmem [shape: f32[2,1,128], index: 9, kind: input, shape index: {}]   ;;  %s8452_s10 = inlined_call_operand.hbm [shape: bf16[2,128,512], index: 10, kind: input, shape index: {}]   ;;  %s8453_s11 = inlined_call_operand.vmem [shape: f32[2,1,512], index: 11, kind: input, shape index: {}]   ;;  %s8454_s12 = inlined_call_operand.hbm [shape: bf16[2,512,128], index: 12, kind: input, shape index: {}]   ;;  %s8455_s13 = inlined_call_operand.vmem [shape: f32[2,1,128], index: 13, kind: input, shape index: {}]   ;;  %s8456_s14 = inlined_call_operand.vmem [shape: f32[1,128], index: 14, kind: input, shape index: {}]   ;;  %s8457_s15 = inlined_call_operand.vmem [shape: f32[1,128], index: 15, kind: input, shape index: {}]   ;;  %s8458_s16 = inlined_call_operand.vmem [shape: bf16[128,64], index: 16, kind: input, shape index: {}]   ;;  %s8459_s17 = inlined_call_operand.hbm [shape: f32[1,4,64], index: 17, kind: output, shape index: {}]  }
   0x1   :  { %8479 = sst [smem:[#allocation22_spill]] %s8442_s0 }
   0x2   :  { %8480 = sst [smem:[#allocation23_spill]] %s8443_s1 }
   0x3   :  { %8481 = sst [smem:[#allocation24_spill]] %s8446_s4 }
   0x4   :  { %8482 = sst [smem:[#allocation25_spill]] %s8447_s5 }
   0x5   :  { %8483 = sst [smem:[#allocation26_spill]] %s8448_s6 }
   0x6   :  { %8484 = sst [smem:[#allocation27_spill]] %s8450_s8 }
   0x7   :  { %8485 = sst [smem:[#allocation28_spill]] %s8451_s9 }
   0x8   :  { %8486 = sst [smem:[#allocation29_spill]] %s8452_s10 }
   0x9   :  { %8487 = sst [smem:[#allocation30_spill]] %s8453_s11 }
   0xa   :  { %8488 = sst [smem:[#allocation31_spill]] %s8454_s12 }
   0xb   :  { %8489 = sst [smem:[#allocation32_spill]] %s8455_s13 }
   0xc   :  { %8490 = sst [smem:[#allocation33_spill]] %s8456_s14 }
   0xd   :  { %8491 = sst [smem:[#allocation34_spill]] %s8457_s15 }
   0xe   :  { %8492 = sst [smem:[#allocation35_spill]] %s8458_s16 }
   0xf   :  { %8493 = sst [smem:[#allocation36_spill]] %s8459_s17 }
  0x10   :  { %22 = vsyncpa [#allocation4], 0 }
  0x11   :  { %23 = vsyncpa [#allocation7], 0 }
  0x12   :  { %25 = vsyncpa [#allocation7 + $0x1], 0 }
  0x13   :  { %26 = vsyncpa [#allocation10], 0 }
  0x14   :  { %28 = vsyncpa [#allocation10 + $0x1], 0 }
  0x15   :  { %29 = vsyncpa [#allocation5], 0  ;;  %s7009_s24 = smov 0   ;;  %s7011_s25 = smov 0  }
  0x16   :  { %s7013_s26 = smov 0   ;;  %s7015_s27 = smov 0  }
  0x17   :  { %s7017_s28 = smov 0   ;;  %s7019_s29 = smov 0  }
  0x18 LB: > { %8494 = sst [smem:[#allocation16_spill]] %s6879_s25  ;;  %s44_s0 = sadd.s32 1, %s6891_s28  ;;  %s6895_s29 = sphi %s7019_s29, %s35_s29   ;;  %s6891_s28 = sphi %s7017_s28, %s8544_s28   ;;  %s6887_s27 = sphi %s7015_s27, %s8543_s27   ;;  %s6883_s26 = sphi %s7013_s26, %s8542_s26   ;;  %s6879_s25 = sphi %s7011_s25, %s8541_s25   ;;  %s6875_s24 = sphi %s7009_s24, %s8540_s24  }
  0x19   : > { %8495 = sst [smem:[#allocation17_spill]] %s6883_s26  ;;  %s158_s30 = sadd.s32 1, %s6883_s26 }
  0x1a   : > { %8496 = sst [smem:[#allocation18_spill]] %s6891_s28  ;;  %p45_p0 = scmp.ge.s32.totalorder %s44_s0, 2 }
  0x1b   : > { %8497 = sst [smem:[#allocation19_spill]] %s6895_s29  ;;  %p165_p1 = scmp.ne.s32.totalorder %s6883_s26, %s6879_s25 }
  0x1c   : > { %p166_p2 = scmp.eq.s32.totalorder %s6895_s29, 0  ;;  %s8546_s0 = smov (%p45_p0, %s44_s0), 0 }
  0x1d   : > { %8498 = sst [smem:[#allocation20_spill]] %s8546_s0  ;;  %p6190_p4 = scmp.lt.s32.totalorder %s6895_s29, 2 }
  0x1e   : > { %p167_p3 = por %p166_p2, %p165_p1  ;;  %s155_s18 = ssub.s32 %s6891_s28, %s8546_s0 }
  0x1f   : > { %s566_s19 = sand.u32 1, %s6895_s29   ;;  %p156_p5 = scmp.eq.s32.totalorder %s155_s18, 0 }
  0x20   : > { %s7051_s1 = sand.u32 1, %s6883_s26   ;;  %s6158_s20 = smul.u32 3072, %s6891_s28 }
  0x21   : > { %s7055_s21 = scalar_select %p156_p5, %s6883_s26, %s158_s30  }
  0x22   : > { %s6157_s22 = smul.u32 192, %s7051_s1  ;;  %s8500_s4 = sld [smem:[#allocation24_spill]] }
  0x23   : > { %8499 = sst [smem:[#allocation21_spill]] %s7055_s21  ;;  %p7063_p6 = pnand %p6190_p4, %p167_p3 }
  0x24   : > { %s570_s18 = scalar_lea.vmem [#allocation6], %s6157_s22  ;;  %s7069_s30 = scalar_lea.sflag [#allocation7], %s566_s19 }
  0x25   : > { %s8501_s0 = scalar_select %p7063_p6, 1, 0 }
  0x26   : > { %s577_s14 = sshll.u32 %s570_s18, 4  ;;  %p7075_p8 = pneg %p7063_p6  ;;  %s7067_s14 = int_to_ptr.vmem [resolvable:$true] %s577_s14 }
  0x28   : > { %s7061_s15 = scalar_lea.hbm %s8500_s4, %s6158_s20  ;;  %s6694_s22 = scalar_lea.hbm %s8500_s4, 6144 }
  0x29   : > { %s6689_s21 = scalar_lea.hbm %s7061_s15, 3072  ;;  %p6695_p11 = scmp.lt.u32.totalorder %s7061_s15, %s8500_s4 }
  0x2a   : > { %p6690_p7 = scmp.ne.s32.totalorder %s7061_s15, %s6689_s21  ;;  %p6696_p12 = scmp.lt.u32.totalorder %s6694_s22, %s6689_s21 }
  0x2b   : > { %s8502_s17 = scalar_select %p7075_p8, 1, 0 }
  0x2c   : > { %p6692_p9 = pnand %p7075_p8, %p6690_p7  ;;  %p6697_p13 = por %p6696_p12, %p6695_p11 }
  0x2d   : > { %p6698_p0 = scmp.lt.u32.totalorder %s6689_s21, %s7061_s15 }
  0x2e   : > { %p6693_p10 = pneg %p6692_p9 }
  0x2f   : > { %p6699_p1 = por %p6698_p0, %p6697_p13 }
  0x31   : > { %p6700_p2 = pnand %p6699_p1, %p6693_p10 }
  0x33   : > { %6703 = shalt.err (!%p6700_p2)
}
  0x34   : > { %s6704_s19 = scalar_lea.vmem %s7067_s14, 3072  ;;  %s6897_s20 = smov [#allocation6]  }
  0x35   : > { %p6705_p3 = scmp.ne.s32.totalorder %s7067_s14, %s6704_s19  ;;  %s6709_s23 = sshll.u32 %s6897_s20, 4  ;;  %s6710_s23 = int_to_ptr.vmem [resolvable:$false] %s6709_s23 }
  0x36   : > { %s6711_s26 = scalar_lea.vmem %s6710_s23, 6144  ;;  %p6712_p7 = scmp.lt.s32.totalorder %s7067_s14, %s6710_s23 }
  0x37   : > { %p6707_p4 = pnand %p6705_p3, %p7075_p8  ;;  %p6713_p9 = scmp.lt.s32.totalorder %s6711_s26, %s6704_s19 }
  0x39   : > { %p6708_p5 = pneg %p6707_p4  ;;  %p6714_p11 = por %p6713_p9, %p6712_p7 }
  0x3b   : > { %p6715_p12 = pnand %p6714_p11, %p6708_p5 }
  0x3d   : > { %6718 = shalt.err (!%p6715_p12)
}
  0x3e   : > { %s6898_s21 = smov 192   ;;  %s6899_s22 = smov 12  }
  0x3f   : > { %6182 = dma.hbm_to_vmem [thread:$0]  (!%p7063_p6), %s7061_s15, 3072, %s7067_s14, %s7069_s30, %s6898_s21, %s6898_s21, %s6899_s22  }
  0x40   : > { %s7100_s18 = sadd.s32 4294967295, %s6895_s29   ;;  %p171_p10 = scmp.ne.s32.totalorder %s6879_s25, %s6875_s24 }
  0x41   : > { %p8468_p13 = scmp.eq.s32.totalorder %s7100_s18, 0  ;;  %p5441_p0 = scmp.ge.s32.totalorder %s6895_s29, 1 }
  0x42   : > { %p505_p1 = scmp.lt.s32.totalorder %s6895_s29, 3  ;;  %s6900_s14 = smov [#allocation3]  }
  0x43   : > { %p7109_p2 = por %p8468_p13, %p171_p10  ;;  %s521_s15 = sshll.u32 %s6900_s14, 4  ;;  %s7119_s15 = int_to_ptr.vmem [resolvable:$true] %s521_s15 }
  0x44   : > { %p7113_p3 = pnand %p5441_p0, %p505_p1  ;;  %s8467_s24 = sshll.u32 %s7051_s1, 8 }
  0x45   : > { %s8503_s19 = scalar_select %p7109_p2, 1, 0 }
  0x46   : > { %s8504_s20 = scalar_select %p7113_p3, 1, 0 }
  0x47   : > { %p6175_p4 = pneg %p7113_p3  ;;  %s8475_s26 = sshll.u32 %s6891_s28, 12 }
  0x48   : > { %s624_s21 = scalar_lea.vmem [#allocation8], %s8467_s24  ;;  %s8506_s10 = sld [smem:[#allocation29_spill]] }
  0x49   : > { %p7124_p5 = pnand %p6175_p4, %p8468_p13  ;;  %s631_s22 = sshll.u32 %s624_s21, 4  ;;  %s7159_s22 = int_to_ptr.vmem [resolvable:$true] %s631_s22 }
  0x4a   : > { %s8507_s11 = sld [smem:[#allocation22_spill]] }
  0x4b   : > { %p6721_p9 = pneg %p7124_p5 }
  0x4e   : > { %s7136_s14 = scalar_lea.hbm %s8506_s10, %s8475_s26 }
  0x50   : > { %s6719_s9 = scalar_lea.hbm %s8507_s11, 1024 }
  0x51   : > { %p6720_p7 = scmp.ne.s32.totalorder %s8507_s11, %s6719_s9  ;;  %p6726_p10 = scmp.lt.u32.totalorder %s6719_s9, %s8507_s11 }
  0x53   : > { %p6722_p11 = pnand %p6721_p9, %p6720_p7 }
  0x55   : > { %p6723_p12 = pneg %p6722_p11 }
  0x57   : > { %p6728_p0 = pnand %p6726_p10, %p6723_p12 }
  0x59   : > { %6731 = shalt.err (!%p6728_p0)
}
  0x5a   : > { %s6732_s4 = scalar_lea.vmem %s7119_s15, 1024  ;;  %p6740_p2 = scmp.lt.s32.totalorder %s7119_s15, %s7119_s15 }
  0x5b   : > { %p6733_p1 = scmp.ne.s32.totalorder %s7119_s15, %s6732_s4  ;;  %p6741_p3 = scmp.lt.s32.totalorder %s6732_s4, %s6732_s4 }
  0x5d   : > { %p6735_p4 = pnand %p6733_p1, %p6721_p9  ;;  %p6742_p6 = por %p6741_p3, %p6740_p2 }
  0x5f   : > { %p6736_p13 = pneg %p6735_p4 }
  0x61   : > { %p6743_p8 = pnand %p6742_p6, %p6736_p13 }
  0x63   : > { %6746 = shalt.err (!%p6743_p8)
}
  0x64   : > { %s6901_s5 = smov 128   ;;  %s6902_s8 = smov 8  }
  0x65   : > { %6178 = dma.hbm_to_vmem [thread:$0]  (!%p7124_p5), %s8507_s11, 1024, %s7119_s15, [#allocation4], %s6901_s5, %s6901_s5, %s6902_s8  }
  0x66   : > { %s6747_s16 = scalar_lea.hbm %s7136_s14, 4096  ;;  %p8508_p6 = scmp.ne.s32.totalorder %s8502_s17, 0 }
  0x67   : > { %p6748_p2 = scmp.ne.s32.totalorder %s7136_s14, %s6747_s16  ;;  %s6752_s21 = scalar_lea.hbm %s8506_s10, 8192 }
  0x68   : > { %p6753_p3 = scmp.lt.u32.totalorder %s7136_s14, %s8506_s10  ;;  %p6754_p7 = scmp.lt.u32.totalorder %s6752_s21, %s6747_s16 }
  0x69   : > { %p6750_p8 = pnand %p6748_p2, %p8508_p6  ;;  %p6756_p11 = scmp.lt.u32.totalorder %s6747_s16, %s7136_s14 }
  0x6a   : > { %p6755_p9 = por %p6754_p7, %p6753_p3 }
  0x6b   : > { %p6751_p13 = pneg %p6750_p8 }
  0x6c   : > { %p6757_p12 = por %p6756_p11, %p6755_p9 }
  0x6e   : > { %p6758_p5 = pnand %p6757_p12, %p6751_p13 }
  0x70   : > { %6761 = shalt.err (!%p6758_p5)
}
  0x71   : > { %s6762_s15 = scalar_lea.vmem %s7159_s22, 4096  ;;  %s6903_s23 = smov [#allocation8]  }
  0x72   : > { %p6763_p10 = scmp.ne.s32.totalorder %s7159_s22, %s6762_s15  ;;  %s6767_s5 = sshll.u32 %s6903_s23, 4  ;;  %s6768_s5 = int_to_ptr.vmem [resolvable:$false] %s6767_s5 }
  0x73   : > { %s6769_s26 = scalar_lea.vmem %s6768_s5, 8192  ;;  %p6770_p4 = scmp.lt.s32.totalorder %s7159_s22, %s6768_s5 }
  0x74   : > { %p6765_p0 = pnand %p6763_p10, %p8508_p6  ;;  %p6771_p2 = scmp.lt.s32.totalorder %s6769_s26, %s6762_s15 }
  0x76   : > { %p6766_p1 = pneg %p6765_p0  ;;  %p6772_p8 = por %p6771_p2, %p6770_p4 }
  0x78   : > { %p6773_p3 = pnand %p6772_p8, %p6766_p1 }
  0x7a   : > { %6776 = shalt.err (!%p6773_p3)
}
  0x7b   : > { %s6904_s8 = smov 256   ;;  %s6905_s9 = smov 16  }
  0x7c   : > { %p8509_p13 = scmp.ne.s32.totalorder %s8501_s0, 0  ;;  %s8510_s13 = sshll.u32 %s6891_s28, 12 }
  0x7d   : > { %s8511_s12 = sld [smem:[#allocation31_spill]]  ;;  %s8512_s21 = sshll.u32 %s7051_s1, 8 }
  0x7e   : > { %6185 = dma.hbm_to_vmem [thread:$0]  (!%p8509_p13), %s7136_s14, 4096, %s7159_s22, %s7069_s30, %s6904_s8, %s6904_s8, %s6905_s9  }
  0x7f   : > { %s652_s4 = scalar_lea.vmem [#allocation9], %s8512_s21  ;;  %s649_s23 = scalar_lea.sflag [#allocation10], %s7051_s1 }
  0x80   : > { %s659_s15 = sshll.u32 %s652_s4, 4  ;;  %s7192_s15 = int_to_ptr.vmem [resolvable:$true] %s659_s15 }
  0x83   : > { %s7188_s24 = scalar_lea.hbm %s8511_s12, %s8510_s13  ;;  %s6782_s14 = scalar_lea.hbm %s8511_s12, 8192 }
  0x84   : > { %s6777_s5 = scalar_lea.hbm %s7188_s24, 4096  ;;  %p6783_p12 = scmp.lt.u32.totalorder %s7188_s24, %s8511_s12 }
  0x85   : > { %p6778_p7 = scmp.ne.s32.totalorder %s7188_s24, %s6777_s5  ;;  %p6784_p5 = scmp.lt.u32.totalorder %s6782_s14, %s6777_s5 }
  0x86   : > { %p6786_p0 = scmp.lt.u32.totalorder %s6777_s5, %s7188_s24 }
  0x87   : > { %p6780_p9 = pnand %p6778_p7, %p8508_p6  ;;  %p6785_p10 = por %p6784_p5, %p6783_p12 }
  0x89   : > { %p6781_p11 = pneg %p6780_p9  ;;  %p6787_p1 = por %p6786_p0, %p6785_p10 }
  0x8b   : > { %p6788_p4 = pnand %p6787_p1, %p6781_p11 }
  0x8d   : > { %6791 = shalt.err (!%p6788_p4)
}
  0x8e   : > { %s6792_s9 = scalar_lea.vmem %s7192_s15, 4096  ;;  %s6906_s13 = smov [#allocation9]  }
  0x8f   : > { %p6793_p2 = scmp.ne.s32.totalorder %s7192_s15, %s6792_s9  ;;  %s6797_s16 = sshll.u32 %s6906_s13, 4  ;;  %s6798_s16 = int_to_ptr.vmem [resolvable:$false] %s6797_s16 }
  0x90   : > { %s6799_s29 = scalar_lea.vmem %s6798_s16, 8192  ;;  %p6800_p7 = scmp.lt.s32.totalorder %s7192_s15, %s6798_s16 }
  0x91   : > { %p6795_p8 = pnand %p6793_p2, %p8508_p6  ;;  %p6801_p9 = scmp.lt.s32.totalorder %s6799_s29, %s6792_s9 }
  0x93   : > { %p6796_p3 = pneg %p6795_p8  ;;  %p6802_p12 = por %p6801_p9, %p6800_p7 }
  0x95   : > { %p6803_p5 = pnand %p6802_p12, %p6796_p3 }
  0x97   : > { %6806 = shalt.err (!%p6803_p5)
}
  0x98   : > { %s6907_s21 = smov 64   ;;  %s6908_s4 = smov 4  }
  0x99   : > { %6188 = dma.hbm_to_vmem [thread:$0]  (!%p8509_p13), %s7188_s24, 4096, %s7192_s15, %s649_s23, %s6907_s21, %s6907_s21, %s6908_s4  }
  0x9a   : > { %p8513_p6 = scmp.ne.s32.totalorder %s8504_s20, 0 }
  0x9b   : > { %p8514_p11 = scmp.eq.s32.totalorder (!%p8513_p6), %s7100_s18, 0 }
  0x9c   : > { %677 = sbr.rel (%p8513_p6) target bundleno = 5292 (0x14ac), region = 88 }
  0xa3   : > { %6858 = dma.done.wait (%p8514_p11), [#allocation4], 1024   ;;  %p8515_p10 = pmov %p8514_p11 }
  0xa4   : > { %s683_s17 = sand.u32 1, %s7100_s18   ;;  %s685_s5 = sand.u32 1, %s6879_s25  }
  0xa5   : > { %6860 = vsyncadd (%p8515_p10), [#allocation4], 4294966272  ;;  %s6159_s30 = smul.u32 192, %s685_s5  ;;  %s684_s22 = scalar_lea.sflag [#allocation7], %s683_s17 }
  0xa6   : > { %p8516_p0 = scmp.ne.s32.totalorder %s8503_s19, 0 }
  0xa7   : > { %s7226_s14 = scalar_lea.vmem [#allocation6], %s6159_s30 }
  0xa8   : > { %6862 = dma.done.wait (%p8516_p0), %s684_s22, 7168  }
  0xa9   : > { %6864 = vsyncadd (%p8516_p0), %s684_s22, 4294960128  ;;  %s5454_s0 = sshll.u32 %s685_s5, 8  ;;  %s702_s20 = scalar_lea.sflag [#allocation10], %s685_s5 }
  0xaa   : > { %s7232_s1 = scalar_lea.vmem [#allocation8], %s5454_s0  ;;  %s7234_s24 = scalar_lea.vmem [#allocation9], %s5454_s0 }
  0xab   : > { %6866 = dma.done.wait (%p8516_p0), %s702_s20, 4096  }
  0xac   : > { %6868 = vsyncadd (%p8516_p0), %s702_s20, 4294963200  ;;  %p806_p13 = scmp.lt.s32.totalorder %s6887_s27, 1  ;;  %s8517_s6 = sld [smem:[#allocation26_spill]] }
  0xad   : > { %s8518_s23 = sld [smem:[#allocation25_spill]]  ;;  %s8519_s19 = sld [smem:[#allocation27_spill]] }
  0xae   : > { %s7242_s15 = scalar_select %p806_p13, %s6887_s27, 1 }
  0xaf   : > { %s8520_s12 = sld [smem:[#allocation28_spill]]  ;;  %s8522_s22 = sld [smem:[#allocation32_spill]] }
  0xb0   : > { %s6160_s16 = smul.u32 3, %s7242_s15  ;;  %s5659_s29 = sshll.u32 %s7242_s15, 6 }
  0xb1   : > { %s5458_s21 = sshll.u32 %s7242_s15, 2  ;;  %p5459_p1 = scmp.ne.s32.totalorder %s6887_s27, 0 }
  0xb2   : > { %s7257_s17 = scalar_lea.vmem %s8517_s6, %s5659_s29  ;;  %s8521_s6 = sld [smem:[#allocation30_spill]]  ;;  %v842_v0 = vld [vmem:[#allocation3] sm:$0xff] (!%p5459_p1)  ;;  %v843_v1 = vld [vmem:[#allocation3 + $0x8] sm:$0xff] (!%p5459_p1)  ;;  %v844_v2 = vld [vmem:[#allocation3 + $0x10] sm:$0xff] (!%p5459_p1) }
  0xb3   : > { %s7266_s26 = scalar_lea.vmem %s8518_s23, %s6160_s16  ;;  %s826_s9 = scalar_lea.vmem %s8519_s19, %s7242_s15  ;;  %850 = vst [vmem:[#allocation2] sm:$0xff] (!%p5459_p1), %v842_v0  ;;  %851 = vst [vmem:[#allocation2 + $0x8] sm:$0xff] (!%p5459_p1), %v843_v1  ;;  %v845_v3 = vld [vmem:[#allocation3 + $0x18] sm:$0xff] (!%p5459_p1)  ;;  %v846_v4 = vld [vmem:[#allocation3 + $0x20] sm:$0xff] (!%p5459_p1) }
  0xb4   : > { %841 = sbr.rel (%p5459_p1) target bundleno = 187 (0xbb), region = 108  ;;  %852 = vst [vmem:[#allocation2 + $0x10] sm:$0xff] (!%p5459_p1), %v844_v2  ;;  %v847_v5 = vld [vmem:[#allocation3 + $0x28] sm:$0xff] (!%p5459_p1)  ;;  %853 = vst [vmem:[#allocation2 + $0x18] sm:$0xff] (!%p5459_p1), %v845_v3  ;;  %v848_v6 = vld [vmem:[#allocation3 + $0x30] sm:$0xff] (!%p5459_p1) }
  0xb5   : > { %s829_s28 = scalar_lea.vmem %s8520_s12, %s7242_s15  ;;  %s836_s0 = scalar_lea.vmem %s8522_s22, %s7242_s15  ;;  %854 = vst [vmem:[#allocation2 + $0x20] sm:$0xff] (!%p5459_p1), %v846_v4  ;;  %855 = vst [vmem:[#allocation2 + $0x28] sm:$0xff] (!%p5459_p1), %v847_v5  ;;  %v849_v7 = vld [vmem:[#allocation3 + $0x38] sm:$0xff] (!%p5459_p1) }
  0xb6   : > { %856 = vst [vmem:[#allocation2 + $0x30] sm:$0xff] (!%p5459_p1), %v848_v6  ;;  %857 = vst [vmem:[#allocation2 + $0x38] sm:$0xff] (!%p5459_p1), %v849_v7 }
  0xb8   : > { %s7280_s25 = scalar_lea.vmem %s8521_s6, %s5458_s21 }
  0xbb PF: > { %v858_v8 = vld [vmem:[#allocation2] sm:$0xff]  ;;  %v860_v9 = vld [vmem:[#allocation2 + $0x10] sm:$0xff]  ;;  %v859_v10 = vld [vmem:[#allocation2 + $0x8] sm:$0xff]  ;;  %v6909_v7 = vmov 0   ;;  %s8523_s11 = scalar_lea.vmem %s8444_s2, %s7242_s15  ;;  %s8524_s8 = scalar_lea.vmem %s8445_s3, %s7242_s15  ;;  %vm6911_vm0 = vmmov 0   ;;  %vm1335_vm1 = vcmask 261120  }
  0xbc   : > { %868 = vadd.xlane.f32.xlu0 %v858_v8  ;;  %872 = vadd.xlane.f32.xlu1 %v860_v9  ;;  %v861_v11 = vld [vmem:[#allocation2 + $0x18] sm:$0xff]  ;;  %v862_v12 = vld [vmem:[#allocation2 + $0x20] sm:$0xff]  ;;  %v863_v13 = vld [vmem:[#allocation2 + $0x28] sm:$0xff]  ;;  %vm1544_vm3 = vcmask 130048   ;;  %s6912_s13 = smov 96   ;;  %s6913_s16 = smov 64  }
  0xbd   : > { %v864_v14 = vld [vmem:[#allocation2 + $0x30] sm:$0xff]  ;;  %v865_v15 = vld [vmem:[#allocation2 + $0x38] sm:$0xff]  ;;  %v6263_v17 = vld [vmem:[%s7226_s14] ss:$12 sps:$4 sm:$0xff]   ;;  %1198 = vmatprep.mubr.bf16.mxu0 %v6909_v7  ;;  %s6914_s22 = smov 32   ;;  %s8529_s23 = scalar_lea.vmem %s8449_s7, %s7242_s15 }
  0xbe   : > { %v6261_v16 = vld [vmem:[%s7226_s14 + $0x4] ss:$12 sps:$4 sm:$0xff]   ;;  %v6264_v18 = vld [vmem:[%s7226_s14 + $0x1c] ss:$12 sps:$4 sm:$0xff]   ;;  %v6268_v53 = vld [vmem:[%s7226_s14 + $0x34] ss:$12 sps:$4 sm:$0xff]  }
  0xbf   : > { %v6266_v19 = vld [vmem:[%s7226_s14 + $0x8] ss:$12 sps:$4 sm:$0xff]   ;;  %1166 = vmatprep.subr.bf16.mxu0 %v6261_v16  ;;  %v6267_v52 = vld [vmem:[%s7226_s14 + $0x18] ss:$12 sps:$4 sm:$0xff]   ;;  %v6270_v54 = vld [vmem:[%s7226_s14 + $0x20] ss:$12 sps:$4 sm:$0xff]  }
  0xc0   : > { %870 = vadd.xlane.f32.xlu0 %v859_v10  ;;  %874 = vadd.xlane.f32.xlu1 %v861_v11  ;;  %v6271_v55 = vld [vmem:[%s7226_s14 + $0x30] ss:$12 sps:$4 sm:$0xff]   ;;  %v6272_v56 = vld [vmem:[%s7226_s14 + $0x4c] ss:$12 sps:$4 sm:$0xff]   ;;  %v6275_v58 = vld [vmem:[%s7226_s14 + $0x48] ss:$12 sps:$4 sm:$0xff]  }
  0xc1   : > { %1167 = vmatpush1.bf16.msra.mxu0 %v6263_v17  ;;  %5849 = vmatprep.subr.bf16.mxu1 %v6266_v19  ;;  %v6274_v57 = vld [vmem:[%s7226_s14 + $0x38] ss:$12 sps:$4 sm:$0xff]   ;;  %v6278_v60 = vld [vmem:[%s7226_s14 + $0x50] ss:$12 sps:$4 sm:$0xff]   ;;  %v6279_v61 = vld [vmem:[%s7226_s14 + $0x60] ss:$12 sps:$4 sm:$0xff]  }
  0xc2   : > { %1168 = vmatprep.subr.bf16.mxu0 %v6264_v18  ;;  %5850 = vmatpush3.bf16.msra.mxu1 %v6266_v19  ;;  %v6276_v59 = vld [vmem:[%s7226_s14 + $0x64] ss:$12 sps:$4 sm:$0xff]   ;;  %v6280_v62 = vld [vmem:[%s7226_s14 + $0x7c] ss:$12 sps:$4 sm:$0xff]   ;;  %v6284_v1 = vld [vmem:[%s7226_s14 + $0x94] ss:$12 sps:$4 sm:$0xff]  }
  0xc3   : > { %5851 = vmatprep.subr.bf16.mxu1 %v6270_v54  ;;  %v6282_v63 = vld [vmem:[%s7226_s14 + $0x68] ss:$12 sps:$4 sm:$0xff]   ;;  %v6283_v0 = vld [vmem:[%s7226_s14 + $0x78] ss:$12 sps:$4 sm:$0xff]   ;;  %v6286_v2 = vld [vmem:[%s7226_s14 + $0x80] ss:$12 sps:$4 sm:$0xff]  }
  0xc4   : > { %876 = vadd.xlane.f32.xlu0 %v862_v12  ;;  %878 = vadd.xlane.f32.xlu1 %v863_v13  ;;  %v6287_v3 = vld [vmem:[%s7226_s14 + $0x90] ss:$12 sps:$4 sm:$0xff]   ;;  %v6288_v4 = vld [vmem:[%s7226_s14 + $0xac] ss:$12 sps:$4 sm:$0xff]   ;;  %v6291_v6 = vld [vmem:[%s7226_s14 + $0xa8] ss:$12 sps:$4 sm:$0xff]  }
  0xc5   : > { %1169 = vmatpush1.bf16.msra.mxu0 %v6267_v52  ;;  %v6290_v5 = vld [vmem:[%s7226_s14 + $0x98] ss:$12 sps:$4 sm:$0xff]   ;;  %p5642_p4 = scmp.ne.s32.totalorder %s6887_s27, 1 }
  0xc6   : > { %1170 = vmatprep.subr.bf16.mxu0 %v6268_v53  ;;  %5852 = vmatpush3.bf16.msra.mxu1 %v6270_v54  ;;  %s8533_s5 = sld [smem:[#allocation23_spill]] (!%p5642_p4)  ;;  %vm5005_vm5 = vcmask (!%p5642_p4), 1041409   ;;  %vm5007_vm6 = vcmask (!%p5642_p4), 1042434   ;;  %vm5009_vm7 = vcmask (!%p5642_p4), 1043459   ;;  %vm5012_vm8 = vcmask (!%p5642_p4), 1043456  }
  0xc7   : > { %5853 = vmatprep.subr.bf16.mxu1 %v6274_v57  ;;  %vm6917_vm9 = vmmov (!%p5642_p4), 0   ;;  %vm5206_vm10 = vcmask (!%p5642_p4), 519168  }
  0xc8   : > { %880 = vadd.xlane.f32.xlu0 %v864_v14  ;;  %882 = vadd.xlane.f32.xlu1 %v865_v15 }
  0xc9   : > { %1171 = vmatpush1.bf16.msra.mxu0 %v6271_v55 }
  0xca   : > { %1172 = vmatprep.subr.bf16.mxu0 %v6272_v56  ;;  %5854 = vmatpush3.bf16.msra.mxu1 %v6274_v57 }
  0xcb   : > { %5855 = vmatprep.subr.bf16.mxu1 %v6278_v60 }
  0xcd   : > { %1173 = vmatpush1.bf16.msra.mxu0 %v6275_v58 }
  0xce   : > { %1174 = vmatprep.subr.bf16.mxu0 %v6276_v59  ;;  %5856 = vmatpush3.bf16.msra.mxu1 %v6278_v60 }
  0xcf   : > { %5857 = vmatprep.subr.bf16.mxu1 %v6282_v63 }
  0xd1   : > { %1175 = vmatpush1.bf16.msra.mxu0 %v6279_v61 }
  0xd2   : > { %1176 = vmatprep.subr.bf16.mxu0 %v6280_v62  ;;  %5858 = vmatpush3.bf16.msra.mxu1 %v6282_v63 }
  0xd3   : > { %5859 = vmatprep.subr.bf16.mxu1 %v6286_v2 }
  0xd5   : > { %1177 = vmatpush1.bf16.msra.mxu0 %v6283_v0 }
  0xd6   : > { %1178 = vmatprep.subr.bf16.mxu0 %v6284_v1  ;;  %5860 = vmatpush3.bf16.msra.mxu1 %v6286_v2 }
  0xd7   : > { %5861 = vmatprep.subr.bf16.mxu1 %v6290_v5 }
  0xd9   : > { %1179 = vmatpush1.bf16.msra.mxu0 %v6287_v3 }
  0xda   : > { %1180 = vmatprep.subr.bf16.mxu0 %v6288_v4  ;;  %5862 = vmatpush3.bf16.msra.mxu1 %v6290_v5 }
  0xdd   : > { %1181 = vmatpush1.bf16.msra.mxu0 %v6291_v6 }
 0x149   : > { %v869_v20 = vpop.xlane.xlu0 %868  ;;  %v873_v21 = vpop.xlane.xlu1 %872 }
 0x14a   : > { %v885_v22 = vmul.f32 0.0078125, %v869_v20  ;;  %v887_v23 = vmul.f32 0.0078125, %v873_v21 }
 0x14c   : > { %v7291_v24 = vsub.f32 %v858_v8, %v885_v22  ;;  %v7293_v25 = vsub.f32 %v860_v9, %v887_v23  ;;  %v6292_v8 = vld [vmem:[%s7226_s14 + $0xb0] ss:$12 sps:$4 sm:$0xff]  }
 0x14d   : > { %v871_v26 = vpop.xlane.xlu0 %870  ;;  %v875_v27 = vpop.xlane.xlu1 %874  ;;  %5863 = vmatprep.subr.bf16.mxu1 %v6292_v8 }
 0x14e   : > { %v886_v28 = vmul.f32 0.0078125, %v871_v26  ;;  %v901_v29 = vmul.f32 %v7291_v24, %v7291_v24  ;;  %v888_v30 = vmul.f32 0.0078125, %v875_v27  ;;  %v903_v31 = vmul.f32 %v7293_v25, %v7293_v25  ;;  %5864 = vmatpush3.bf16.msra.mxu1 %v6292_v8 }
 0x150   : > { %909 = vadd.xlane.f32.xlu0 %v901_v29  ;;  %v7299_v32 = vsub.f32 %v859_v10, %v886_v28  ;;  %v7301_v33 = vsub.f32 %v861_v11, %v888_v30 }
 0x151   : > { %v877_v34 = vpop.xlane.xlu0 %876  ;;  %v879_v35 = vpop.xlane.xlu1 %878 }
 0x152   : > { %v889_v36 = vmul.f32 0.0078125, %v877_v34  ;;  %v902_v37 = vmul.f32 %v7299_v32, %v7299_v32  ;;  %v890_v38 = vmul.f32 0.0078125, %v879_v35  ;;  %v904_v39 = vmul.f32 %v7301_v33, %v7301_v33 }
 0x154   : > { %913 = vadd.xlane.f32.xlu0 %v903_v31  ;;  %911 = vadd.xlane.f32.xlu1 %v902_v37  ;;  %v7307_v40 = vsub.f32 %v862_v12, %v889_v36  ;;  %v7309_v41 = vsub.f32 %v863_v13, %v890_v38  ;;  %v5460_v38 = vld [vmem:[%s8523_s11] ss:$0 sm:$0xff] }
 0x155   : > { %v881_v42 = vpop.xlane.xlu0 %880  ;;  %v883_v43 = vpop.xlane.xlu1 %882 }
 0x156   : > { %v891_v44 = vmul.f32 0.0078125, %v881_v42  ;;  %v905_v45 = vmul.f32 %v7307_v40, %v7307_v40  ;;  %v892_v46 = vmul.f32 0.0078125, %v883_v43  ;;  %v906_v47 = vmul.f32 %v7309_v41, %v7309_v41 }
 0x158   : > { %915 = vadd.xlane.f32.xlu1 %v904_v39  ;;  %917 = vadd.xlane.f32.xlu0 %v905_v45  ;;  %v7315_v48 = vsub.f32 %v864_v14, %v891_v44  ;;  %v7317_v49 = vsub.f32 %v865_v15, %v892_v46 }
 0x15a   : > { %v907_v50 = vmul.f32 %v7315_v48, %v7315_v48  ;;  %v908_v51 = vmul.f32 %v7317_v49, %v7317_v49 }
 0x15c   : > { %919 = vadd.xlane.f32.xlu1 %v906_v47  ;;  %921 = vadd.xlane.f32.xlu0 %v907_v50 }
 0x160   : > { %923 = vadd.xlane.f32.xlu1 %v908_v51 }
 0x1dd   : > { %v910_v9 = vpop.xlane.xlu0 %909 }
 0x1de   : > { %v925_v10 = vmul.f32 0.0078125, %v910_v9 }
 0x1e0   : > { %v933_v11 = vadd.f32 1e-05, %v925_v10 }
 0x1e1   : > { %v912_v12 = vpop.xlane.xlu1 %911  ;;  %v914_v13 = vpop.xlane.xlu0 %913 }
 0x1e2   : > { %6381 = vrsqrt.f32 %v933_v11  ;;  %v926_v14 = vmul.f32 0.0078125, %v912_v12  ;;  %v927_v15 = vmul.f32 0.0078125, %v914_v13  ;;  %v1021_v12 = vld [vmem:[%s7266_s26] sm:$0x7]  ;;  %s8534_s26 = sld [smem:[#allocation35_spill]] (!%p5642_p4) }
 0x1e4   : > { %v934_v16 = vadd.f32 1e-05, %v926_v14  ;;  %v935_v17 = vadd.f32 1e-05, %v927_v15 }
 0x1e5   : > { %v916_v18 = vpop.xlane.xlu1 %915  ;;  %v918_v19 = vpop.xlane.xlu0 %917 }
 0x1e6   : > { %6383 = vrsqrt.f32 %v934_v16  ;;  %v928_v20 = vmul.f32 0.0078125, %v916_v18  ;;  %v929_v21 = vmul.f32 0.0078125, %v918_v19 }
 0x1e7   : > { %6385 = vrsqrt.f32 %v935_v17 }
 0x1e8   : > { %v936_v22 = vadd.f32 1e-05, %v928_v20  ;;  %v937_v23 = vadd.f32 1e-05, %v929_v21  ;;  %s8535_s19 = smov (!%p5642_p4), %s8534_s26 }
 0x1e9   : > { %v920_v26 = vpop.xlane.xlu1 %919  ;;  %v922_v27 = vpop.xlane.xlu0 %921 }
 0x1ea   : > { %6387 = vrsqrt.f32 %v936_v22  ;;  %v930_v28 = vmul.f32 0.0078125, %v920_v26  ;;  %v931_v29 = vmul.f32 0.0078125, %v922_v27 }
 0x1eb   : > { %6389 = vrsqrt.f32 %v937_v23 }
 0x1ec   : > { %v6382_v30 = vpop.eup %6381  ;;  %v938_v31 = vadd.f32 1e-05, %v930_v28  ;;  %v939_v34 = vadd.f32 1e-05, %v931_v29 }
 0x1ed   : > { %v924_v35 = vpop.xlane.xlu1 %923  ;;  %v949_v36 = vmul.f32 %v6382_v30, %v7291_v24  ;;  %v5461_v24 = vld [vmem:[%s8524_s8] ss:$0 sm:$0xff]  ;;  %s8536_s8 = sld [smem:[#allocation33_spill]] (!%p5642_p4) }
 0x1ee   : > { %6391 = vrsqrt.f32 %v938_v31  ;;  %v932_v37 = vmul.f32 0.0078125, %v924_v35 }
 0x1ef   : > { %6393 = vrsqrt.f32 %v939_v34  ;;  %v963_v45 = vmul.f32 %v5460_v38, %v949_v36 }
 0x1f0   : > { %v6384_v39 = vpop.eup %6383  ;;  %v940_v42 = vadd.f32 1e-05, %v932_v37 }
 0x1f1   : > { %v6386_v43 = vpop.eup %6385  ;;  %v950_v44 = vmul.f32 %v6384_v39, %v7299_v32  ;;  %v977_v53 = vadd.f32 %v5461_v24, %v963_v45 }
 0x1f2   : > { %6395 = vrsqrt.f32 %v940_v42  ;;  %v951_v46 = vmul.f32 %v6386_v43, %v7293_v25 }
 0x1f3   : > { %v964_v47 = vmul.f32 %v5460_v38, %v950_v44 }
 0x1f4   : > { %v6388_v50 = vpop.eup %6387  ;;  %v965_v51 = vmul.f32 %v5460_v38, %v951_v46 }
 0x1f5   : > { %v6390_v52 = vpop.eup %6389  ;;  %v978_v54 = vadd.f32 %v5461_v24, %v964_v47  ;;  %v952_v55 = vmul.f32 %v6388_v50, %v7301_v33 }
 0x1f6   : > { %v953_v56 = vmul.f32 %v6390_v52, %v7307_v40  ;;  %v979_v59 = vadd.f32 %v5461_v24, %v965_v51 }
 0x1f7   : > { %v985_v32 = vpack.c.bf16 %v978_v54, %v977_v53  ;;  %v966_v57 = vmul.f32 %v5460_v38, %v952_v55 }
 0x1f8   : > { %v6392_v58 = vpop.eup %6391  ;;  %v967_v62 = vmul.f32 %v5460_v38, %v953_v56 }
 0x1f9   : > { %v6394_v60 = vpop.eup %6393  ;;  %1199 = vmatmul.mubr.bf16.vlgmr.msra.gmra.mrb[0].mxu0 %v985_v32  ;;  %5865 = vmatprep.mubr.bf16.mxu1 %v985_v32  ;;  %v980_v61 = vadd.f32 %v5461_v24, %v966_v57  ;;  %v954_v25 = vmul.f32 %v6392_v58, %v7309_v41 }
 0x1fa   : > { %1208 = vmatprep.mubr.bf16.mxu0 %v6909_v7  ;;  %v955_v63 = vmul.f32 %v6394_v60, %v7315_v48  ;;  %v981_v40 = vadd.f32 %v5461_v24, %v967_v62  ;;  %v6910_v48 = vmov 0.0  }
 0x1fb   : > { %v986_v0 = vpack.c.bf16 %v980_v61, %v979_v59  ;;  %v968_v1 = vmul.f32 %v5460_v38, %v954_v25  ;;  %5873 = vmatprep.subr.bf16.mxu1 %v6910_v48  ;;  %5885 = vmatprep.subr.bf16.mxu0 %v6910_v48 }
 0x1fc   : > { %v6396_v33 = vpop.eup %6395  ;;  %v969_v4 = vmul.f32 %v5460_v38, %v955_v63 }
 0x1fd   : > { %5866 = vmatmul.mubr.bf16.vlgmr.msra.gmra.mrb[0].mxu1 %v986_v0  ;;  %v982_v2 = vadd.f32 %v5461_v24, %v968_v1  ;;  %v956_v3 = vmul.f32 %v6396_v33, %v7317_v49  ;;  %v1023_v49 = vlaneseq }
 0x1fe   : > { %v983_v8 = vadd.f32 %v5461_v24, %v969_v4 }
 0x1ff   : > { %v987_v5 = vpack.c.bf16 %v982_v2, %v981_v40  ;;  %v970_v6 = vmul.f32 %v5460_v38, %v956_v3  ;;  %v7372_v10 = vshrl.u32 %v1023_v49, 7 }
 0x201   : > { %1209 = vmatmul.mubr.bf16.gmra.mrb[4].mxu0 %v986_v0  ;;  %5869 = vmatprep.mubr.bf16.mxu1 %v987_v5  ;;  %v984_v41 = vadd.f32 %v5461_v24, %v970_v6  ;;  %v1025_v11 = vsub.s32 0, %v7372_v10  ;;  %v1029_v13 = vsub.s32 1, %v7372_v10  ;;  %v1033_v15 = vsub.s32 2, %v7372_v10 }
 0x202   : > { %1218 = vmatprep.mubr.bf16.mxu0 %v6909_v7 }
 0x203   : > { %v988_v9 = vpack.c.bf16 %v984_v41, %v983_v8  ;;  %v7379_v14 = vrot.slane %v1021_v12, %v1025_v11  ;;  %v7384_v17 = vrot.slane %v1021_v12, %v1029_v13  ;;  %v1034_v23 = vrot.slane %v1021_v12, %v1033_v15 }
 0x205   : > { %5870 = vmatmul.mubr.bf16.gmra.mrb[4].mxu1 %v988_v9 }
 0x206   : > { %5875 = vmatprep.mubr.msk.bf16.mxu1 %vm6911_vm0, %v6910_v48 }
 0x209   : > { %1219 = vmatmul.mubr.bf16.gmra.mrb[8].mxu0 %v987_v5 }
 0x20a   : > { %1228 = vmatprep.mubr.bf16.mxu0 %v6909_v7 }
 0x211   : > { %1229 = vmatmul.mubr.bf16.gmra.mrb[12].mxu0 %v988_v9 }
 0x212   : > { %5887 = vmatprep.mubr.msk.bf16.mxu0 %vm6911_vm0, %v6910_v48 }
 0x2cc   : > { %v1200_v16 = vpop.f32.mrb[0].mxu0 }
 0x2cd   : > { %v1202_v18 = vpop.f32.mrb[1].mxu0  ;;  %v1201_v20 = vadd.f32 %v1200_v16, %v7379_v14 }
 0x2ce   : > { %v1204_v19 = vpop.f32.mrb[2].mxu0  ;;  %v1203_v26 = vadd.f32 %v1202_v18, %v7384_v17 }
 0x2cf   : > { %v1205_v21 = vadd.f32 %v1204_v19, %v7379_v14  ;;  %v1206_v22 = vpop.f32.mrb[3].mxu0 }
 0x2d0   : > { %v1207_v27 = vadd.f32 %v1206_v22, %v7384_v17  ;;  %v5867_v28 = vpop.f32.mrb[0].mxu1 }
 0x2d1   : > { %v7392_v29 = vpack.c.bf16 %v1205_v21, %v1201_v20  ;;  %v1273_v30 = vpop.f32.mrb[1].mxu1  ;;  %v1282_v35 = vadd.f32 %v5867_v28, %v1034_v23 }
 0x2d2   : > { %v7394_v31 = vpack.c.bf16 %v1207_v27, %v1203_v26  ;;  %v5868_v34 = vpop.f32.mrb[2].mxu1  ;;  %v1274_v38 = vadd.f32 %v1273_v30, %v1034_v23 }
 0x2d3   : > { %v1285_v36 = vadd.f32 %v5868_v34, %v1034_v23  ;;  %v1276_v37 = vpop.f32.mrb[3].mxu1 }
 0x2d4   : > { %v1277_v39 = vadd.f32 %v1276_v37, %v1034_v23  ;;  %v1210_v42 = vpop.f32.mrb[4].mxu0  ;;  %v1340_v43 = vsel %vm1335_vm1, %v7394_v31, 0 }
 0x2d5   : > { %v7398_v44 = vpack.c.bf16 %v1285_v36, %v1282_v35  ;;  %v1212_v45 = vpop.f32.mrb[5].mxu0  ;;  %5874 = vmatpush3.bf16.xpose.msra.mxu1 %v1340_v43  ;;  %v1211_v47 = vadd.f32 %v1210_v42, %v7379_v14  ;;  %v1308_v35 = vand.u32 127, %v1023_v49  ;;  %v1306_v36 = vadd.s32 8, %v7372_v10 }
 0x2d6   : > { %v7400_v24 = vpack.c.bf16 %v1277_v39, %v1274_v38  ;;  %v1214_v46 = vpop.f32.mrb[6].mxu0  ;;  %5879 = vmatprep.subr.bf16.mxu1 %v6910_v48  ;;  %v1213_v52 = vadd.f32 %v1212_v45, %v7384_v17 }
 0x2d7   : > { %v1215_v50 = vadd.f32 %v1214_v46, %v7379_v14  ;;  %v1216_v51 = vpop.f32.mrb[7].mxu0  ;;  %vm7467_vm2 = vcmp.le.s32.totalorder %v1308_v35, %v7372_v10  ;;  %vm7473_vm4 = vcmp.le.s32.totalorder %v1308_v35, %v1306_v36 }
 0x2d8   : > { %v1217_v53 = vadd.f32 %v1216_v51, %v7384_v17  ;;  %v5871_v54 = vpop.f32.mrb[4].mxu1 }
 0x2d9   : > { %v7407_v55 = vpack.c.bf16 %v1215_v50, %v1211_v47  ;;  %v1298_v56 = vadd.f32 %v5871_v54, %v1034_v23  ;;  %v1289_v32 = vpop.f32.mrb[5].mxu1 }
 0x2da   : > { %v7409_v57 = vpack.c.bf16 %v1217_v53, %v1213_v52  ;;  %v1290_v58 = vadd.f32 %v1289_v32, %v1034_v23  ;;  %v5872_v59 = vpop.f32.mrb[6].mxu1 }
 0x2db   : > { %v1301_v60 = vadd.f32 %v5872_v59, %v1034_v23  ;;  %v1292_v61 = vpop.f32.mrb[7].mxu1 }
 0x2dc   : > { %v1293_v25 = vadd.f32 %v1292_v61, %v1034_v23  ;;  %v1220_v62 = vpop.f32.mrb[8].mxu0  ;;  %5876 = vmatmul.mubr.msk.bf16.vlgmr.msra.gmra.mrb[8].mxu1 %vm1335_vm1, %v7392_v29  ;;  %v1387_v63 = vsel %vm1335_vm1, %v7409_v57, 0 }
 0x2dd   : > { %v7415_v0 = vpack.c.bf16 %v1301_v60, %v1298_v56  ;;  %v1222_v1 = vpop.f32.mrb[9].mxu0  ;;  %5880 = vmatpush3.bf16.xpose.msra.mxu1 %v1387_v63  ;;  %5881 = vmatprep.mubr.msk.bf16.mxu1 %vm6911_vm0, %v6910_v48  ;;  %v1221_v2 = vadd.f32 %v1220_v62, %v7379_v14 }
 0x2de   : > { %v7419_v33 = vpack.c.bf16 %v1293_v25, %v1290_v58  ;;  %v1224_v40 = vpop.f32.mrb[10].mxu0  ;;  %5891 = vmatprep.subr.bf16.mxu1 %v6910_v48  ;;  %v1223_v5 = vadd.f32 %v1222_v1, %v7384_v17 }
 0x2df   : > { %v1225_v3 = vadd.f32 %v1224_v40, %v7379_v14  ;;  %v1226_v4 = vpop.f32.mrb[11].mxu0 }
 0x2e0   : > { %v1227_v6 = vadd.f32 %v1226_v4, %v7384_v17 }
 0x2e1   : > { %v7426_v8 = vpack.c.bf16 %v1225_v3, %v1221_v2 }
 0x2e2   : > { %v7428_v41 = vpack.c.bf16 %v1227_v6, %v1223_v5 }
 0x2e4   : > { %v1230_v9 = vpop.f32.mrb[12].mxu0  ;;  %5882 = vmatmul.mubr.msk.bf16.vlgmr.msra.gmra.mrb[12].mxu1 %vm1335_vm1, %v7407_v55  ;;  %v1434_v12 = vsel %vm1335_vm1, %v7428_v41, 0 }
 0x2e5   : > { %v1232_v16 = vpop.f32.mrb[13].mxu0  ;;  %5886 = vmatpush3.bf16.xpose.msra.mxu0 %v1434_v12  ;;  %5893 = vmatprep.mubr.msk.bf16.mxu1 %vm6911_vm0, %v6910_v48  ;;  %v1231_v19 = vadd.f32 %v1230_v9, %v7379_v14 }
 0x2e6   : > { %v1234_v18 = vpop.f32.mrb[14].mxu0  ;;  %5897 = vmatprep.subr.bf16.mxu0 %v6910_v48  ;;  %v1233_v22 = vadd.f32 %v1232_v16, %v7384_v17 }
 0x2e7   : > { %v1235_v20 = vadd.f32 %v1234_v18, %v7379_v14  ;;  %v1236_v21 = vpop.f32.mrb[15].mxu0 }
 0x2e8   : > { %v1237_v23 = vadd.f32 %v1236_v21, %v7384_v17 }
 0x2e9   : > { %v7441_v26 = vpack.c.bf16 %v1235_v20, %v1231_v19 }
 0x2ea   : > { %v7443_v27 = vpack.c.bf16 %v1237_v23, %v1233_v22 }
 0x2ec   : > { %5888 = vmatmul.mubr.msk.bf16.vlgmr.msra.gmra.mrb[16].mxu0 %vm1335_vm1, %v7426_v8  ;;  %v1481_v28 = vsel %vm1335_vm1, %v7443_v27, 0 }
 0x2ed   : > { %5892 = vmatpush3.bf16.xpose.msra.mxu1 %v1481_v28  ;;  %5898 = vmatpush3.bf16.msra.mxu0 %v7400_v24 }
 0x2ee   : > { %5903 = vmatprep.subr.bf16.mxu1 %v6910_v48  ;;  %5899 = vmatprep.mubr.msk.bf16.mxu0 %vm6911_vm0, %v6910_v48 }
 0x2ef   : > { %5909 = vmatprep.subr.bf16.mxu0 %v6910_v48 }
 0x2f4   : > { %5894 = vmatmul.mubr.msk.bf16.vlgmr.msra.gmra.mrb[16].mxu1 %vm1335_vm1, %v7441_v26 }
 0x2f5   : > { %5904 = vmatpush3.bf16.msra.mxu1 %v7398_v44  ;;  %5905 = vmatprep.mubr.msk.bf16.mxu1 %vm6911_vm0, %v6910_v48 }
 0x2f6   : > { %5915 = vmatprep.subr.bf16.mxu1 %v6910_v48 }
 0x3af   : > { %v7460_v14 = vpop.f32.mrb[8].mxu1 }
 0x3b0   : > { %v5877_v17 = vpop.f32.mrb[9].mxu1 }
 0x3b1   : > { %v7462_v30 = vpop.f32.mrb[10].mxu1 }
 0x3b2   : > { %v5878_v34 = vpop.f32.mrb[11].mxu1 }
 0x3b7   : > { %v1423_v37 = vpop.f32.mrb[12].mxu1 }
 0x3b8   : > { %v1526_v38 = vmul.f32 0.17677669, %v1423_v37  ;;  %v5883_v39 = vpop.f32.mrb[13].mxu1 }
 0x3b9   : > { %v1426_v43 = vpop.f32.mrb[14].mxu1  ;;  %v1524_v39 = vmul.f32 0.17677669, %v7460_v14 }
 0x3ba   : > { %v1527_v45 = vmul.f32 0.17677669, %v1426_v43  ;;  %v5884_v46 = vpop.f32.mrb[15].mxu1  ;;  %v1538_v47 = vsel %vm7467_vm2, %v1526_v38, -1e+30 }
 0x3bb   : > { %v1551_v49 = vsel %vm1544_vm3, %v1538_v47, -inf }
 0x3bc   : > { %1552 = vmax.xlane.f32.xlu0 %v1551_v49  ;;  %v1539_v51 = vsel %vm7473_vm4, %v1527_v45, -1e+30  ;;  %v1536_v45 = vsel %vm7467_vm2, %v1524_v39, -1e+30 }
 0x3bd   : > { %v1554_v52 = vsel %vm1544_vm3, %v1539_v51, -inf  ;;  %v1545_v46 = vsel %vm1544_vm3, %v1536_v45, -inf }
 0x3be   : > { %1555 = vmax.xlane.f32.xlu1 %v1554_v52 }
 0x3bf   : > { %v1470_v53 = vpop.f32.mrb[16].mxu0 }
 0x3c0   : > { %v5889_v54 = vpop.f32.mrb[17].mxu0  ;;  %v1528_v43 = vmul.f32 0.17677669, %v1470_v53 }
 0x3c1   : > { %v1473_v56 = vpop.f32.mrb[18].mxu0 }
 0x3c2   : > { %v5890_v32 = vpop.f32.mrb[19].mxu0  ;;  %v1540_v49 = vsel %vm7467_vm2, %v1528_v43, -1e+30 }
 0x3c3   : > { %v1557_v52 = vsel %vm1544_vm3, %v1540_v49, -inf }
 0x3c7   : > { %v1517_v58 = vpop.f32.mrb[16].mxu1 }
 0x3c8   : > { %v1530_v59 = vmul.f32 0.17677669, %v1517_v58  ;;  %v5895_v60 = vpop.f32.mrb[17].mxu1 }
 0x3c9   : > { %v1520_v61 = vpop.f32.mrb[18].mxu1 }
 0x3ca   : > { %v1531_v25 = vmul.f32 0.17677669, %v1520_v61  ;;  %v5896_v62 = vpop.f32.mrb[19].mxu1  ;;  %v1542_v63 = vsel %vm7467_vm2, %v1530_v59, -1e+30 }
 0x3cb   : > { %v1563_v1 = vsel %vm1544_vm3, %v1542_v63, -inf }
 0x3cc   : > { %1564 = vmax.xlane.f32.xlu0 %v1563_v1  ;;  %v1543_v40 = vsel %vm7473_vm4, %v1531_v25, -1e+30 }
 0x3cd   : > { %v1566_v2 = vsel %vm1544_vm3, %v1543_v40, -inf }
 0x3ce   : > { %1567 = vmax.xlane.f32.xlu1 %v1566_v2 }
 0x449   : > { %v1553_v3 = vpop.xlane.xlu0 %1552 }
 0x44a   : > { %v1571_v4 = vsub.f32 %v1538_v47, %v1553_v3  ;;  %v1529_v47 = vmul.f32 0.17677669, %v1473_v56 }
 0x44b   : > { %v1556_v5 = vpop.xlane.xlu1 %1555 }
 0x44c   : > { %v1581_v6 = vmul.f32 1.442695, %v1571_v4  ;;  %v1572_v9 = vsub.f32 %v1539_v51, %v1556_v5  ;;  %v1525_v51 = vmul.f32 0.17677669, %v7462_v30  ;;  %v1541_v54 = vsel %vm7473_vm4, %v1529_v47, -1e+30 }
 0x44d   : > { %v1560_v53 = vsel %vm1544_vm3, %v1541_v54, -inf }
 0x44e   : > { %6397 = vpow2.f32 %v1581_v6  ;;  %v1583_v12 = vmul.f32 1.442695, %v1572_v9  ;;  %v1537_v14 = vsel %vm7473_vm4, %v1525_v51, -1e+30 }
 0x44f   : > { %v1548_v56 = vsel %vm1544_vm3, %v1537_v14, -inf }
 0x450   : > { %6399 = vpow2.f32 %v1583_v12 }
 0x458   : > { %v6398_v16 = vpop.eup %6397 }
 0x459   : > { %v1565_v18 = vpop.xlane.xlu0 %1564  ;;  %v1599_v19 = vsel %vm1544_vm3, %v6398_v16, 0.0 }
 0x45a   : > { %v6400_v20 = vpop.eup %6399  ;;  %v1575_v21 = vsub.f32 %v1542_v63, %v1565_v18  ;;  %1600 = vadd.xlane.f32.xlu0 %v1599_v19 }
 0x45b   : > { %v1568_v22 = vpop.xlane.xlu1 %1567  ;;  %v1602_v23 = vsel %vm1544_vm3, %v6400_v20, 0.0 }
 0x45c   : > { %v1589_v28 = vmul.f32 1.442695, %v1575_v21  ;;  %v1576_v17 = vsub.f32 %v1543_v40, %v1568_v22  ;;  %1603 = vadd.xlane.f32.xlu1 %v1602_v23 }
 0x45e   : > { %6401 = vpow2.f32 %v1589_v28  ;;  %v1591_v34 = vmul.f32 1.442695, %v1576_v17 }
 0x460   : > { %6403 = vpow2.f32 %v1591_v34 }
 0x468   : > { %v6402_v35 = vpop.eup %6401 }
 0x469   : > { %v1611_v36 = vsel %vm1544_vm3, %v6402_v35, 0.0 }
 0x46a   : > { %v6404_v37 = vpop.eup %6403  ;;  %1612 = vadd.xlane.f32.xlu0 %v1611_v36 }
 0x46b   : > { %v1614_v38 = vsel %vm1544_vm3, %v6404_v37, 0.0 }
 0x46c   : > { %1615 = vadd.xlane.f32.xlu1 %v1614_v38 }
 0x47d   : > { %1875 = vrot.lane.b32.xlu1 %v7407_v55, %s6912_s13 }
 0x480   : > { %1878 = vrot.lane.b32.xlu0 %v7409_v57, %s6912_s13 }
 0x481   : > { %1984 = vrot.lane.b32.xlu1 %v7443_v27, %s6912_s13 }
 0x485   : > { %1981 = vrot.lane.b32.xlu1 %v7441_v26, %s6912_s13 }
 0x49f   : > { %1546 = vmax.xlane.f32.xlu0 %v1545_v46 }
 0x4a3   : > { %1558 = vmax.xlane.f32.xlu0 %v1557_v52 }
 0x4a7   : > { %1561 = vmax.xlane.f32.xlu0 %v1560_v53 }
 0x4a9   : > { %1549 = vmax.xlane.f32.xlu1 %v1548_v56 }
 0x4e7   : > { %v1601_v32 = vpop.xlane.xlu0 %1600 }
 0x4e8   : > { %6405 = vrcp.f32 %v1601_v32 }
 0x4e9   : > { %v1604_v58 = vpop.xlane.xlu1 %1603 }
 0x4ea   : > { %6407 = vrcp.f32 %v1604_v58 }
 0x4f2   : > { %v6406_v30 = vpop.eup %6405 }
 0x4f3   : > { %v1627_v60 = vmul.f32 %v6406_v30, %v6398_v16 }
 0x4f4   : > { %v6408_v59 = vpop.eup %6407 }
 0x4f5   : > { %v1628_v61 = vmul.f32 %v6408_v59, %v6400_v20 }
 0x4f7   : > { %v1613_v25 = vpop.xlane.xlu0 %1612  ;;  %v1634_v62 = vpack.c.bf16 %v1628_v61, %v1627_v60 }
 0x4f8   : > { %6409 = vrcp.f32 %v1613_v25 }
 0x4f9   : > { %5906 = vmatmul.mubr.msk.bf16.vlgmr.msra.gmra.mrb[20].mxu1 %vm1544_vm3, %v1634_v62  ;;  %v1616_v63 = vpop.xlane.xlu1 %1615 }
 0x4fa   : > { %5916 = vmatpush3.bf16.msra.mxu1 %v7415_v0  ;;  %6411 = vrcp.f32 %v1616_v63  ;;  %5917 = vmatprep.mubr.msk.bf16.mxu1 %vm6911_vm0, %v6910_v48 }
 0x4fb   : > { %5927 = vmatprep.subr.bf16.mxu1 %v6910_v48  ;;  %v1879_v4 = vpop.permute.xlu0 %1878 }
 0x4fc   : > { %v1884_v9 = vsel %vm1335_vm1, %v1879_v4, 0 }
 0x4fd   : > { %v1876_v6 = vpop.permute.xlu1 %1875 }
 0x501   : > { %v1985_v12 = vpop.permute.xlu1 %1984 }
 0x502   : > { %v6410_v1 = vpop.eup %6409  ;;  %v1990_v16 = vsel %vm1335_vm1, %v1985_v12, 0 }
 0x503   : > { %v1631_v2 = vmul.f32 %v6410_v1, %v6402_v35 }
 0x504   : > { %v6412_v40 = vpop.eup %6411 }
 0x505   : > { %v1632_v3 = vmul.f32 %v6412_v40, %v6404_v37  ;;  %v1982_v18 = vpop.permute.xlu1 %1981 }
 0x507   : > { %v1636_v5 = vpack.c.bf16 %v1632_v3, %v1631_v2 }
 0x509   : > { %5918 = vmatmul.mubr.msk.bf16.vlgmr.msra.gmra.mrb[24].mxu1 %vm1544_vm3, %v1636_v5 }
 0x50a   : > { %5928 = vmatpush3.bf16.xpose.msra.mxu1 %v1884_v9  ;;  %5929 = vmatprep.mubr.msk.bf16.mxu1 %vm6911_vm0, %v6910_v48 }
 0x50b   : > { %5939 = vmatprep.subr.bf16.mxu1 %v6910_v48 }
 0x511   : > { %5930 = vmatmul.mubr.msk.bf16.vlgmr.msra.gmra.mrb[28].mxu1 %vm1335_vm1, %v1876_v6 }
 0x512   : > { %5940 = vmatpush3.bf16.xpose.msra.mxu1 %v1990_v16  ;;  %5941 = vmatprep.mubr.msk.bf16.mxu1 %vm6911_vm0, %v6910_v48 }
 0x513   : > { %5951 = vmatprep.subr.bf16.mxu1 %v6910_v48 }
 0x519   : > { %5942 = vmatmul.mubr.msk.bf16.vlgmr.msra.gmra.mrb[32].mxu1 %vm1335_vm1, %v1982_v18 }
 0x51a   : > { %5953 = vmatprep.mubr.msk.bf16.mxu1 %vm6911_vm0, %v6910_v48 }
 0x52c   : > { %v1547_v19 = vpop.xlane.xlu0 %1546 }
 0x52d   : > { %v1569_v20 = vsub.f32 %v1536_v45, %v1547_v19 }
 0x52f   : > { %v1577_v21 = vmul.f32 1.442695, %v1569_v20 }
 0x530   : > { %v1559_v22 = vpop.xlane.xlu0 %1558 }
 0x531   : > { %6413 = vpow2.f32 %v1577_v21  ;;  %v1573_v23 = vsub.f32 %v1540_v49, %v1559_v22 }
 0x533   : > { %v1585_v28 = vmul.f32 1.442695, %v1573_v23 }
 0x534   : > { %v1562_v17 = vpop.xlane.xlu0 %1561 }
 0x535   : > { %6415 = vpow2.f32 %v1585_v28  ;;  %v1574_v34 = vsub.f32 %v1541_v54, %v1562_v17 }
 0x536   : > { %v1550_v35 = vpop.xlane.xlu1 %1549 }
 0x537   : > { %v1570_v36 = vsub.f32 %v1537_v14, %v1550_v35  ;;  %v1587_v37 = vmul.f32 1.442695, %v1574_v34 }
 0x539   : > { %v1579_v38 = vmul.f32 1.442695, %v1570_v36 }
 0x53b   : > { %v6414_v39 = vpop.eup %6413  ;;  %6417 = vpow2.f32 %v1579_v38 }
 0x53c   : > { %v1593_v43 = vsel %vm1544_vm3, %v6414_v39, 0.0  ;;  %6419 = vpow2.f32 %v1587_v37 }
 0x53d   : > { %1594 = vadd.xlane.f32.xlu0 %v1593_v43 }
 0x53f   : > { %v6416_v46 = vpop.eup %6415 }
 0x540   : > { %v1605_v45 = vsel %vm1544_vm3, %v6416_v46, 0.0 }
 0x541   : > { %1606 = vadd.xlane.f32.xlu0 %v1605_v45 }
 0x545   : > { %v6418_v47 = vpop.eup %6417 }
 0x546   : > { %v1596_v49 = vsel %vm1544_vm3, %v6418_v47, 0.0  ;;  %v6420_v51 = vpop.eup %6419 }
 0x547   : > { %1597 = vadd.xlane.f32.xlu1 %v1596_v49  ;;  %v1608_v52 = vsel %vm1544_vm3, %v6420_v51, 0.0 }
 0x54b   : > { %1609 = vadd.xlane.f32.xlu1 %v1608_v52 }
 0x557   : > { %1825 = vrot.lane.b32.xlu0 %v7394_v31, %s6912_s13 }
 0x55c   : > { %1822 = vrot.lane.b32.xlu1 %v7392_v29, %s6912_s13 }
 0x560   : > { %1931 = vrot.lane.b32.xlu1 %v7428_v41, %s6912_s13 }
 0x564   : > { %1928 = vrot.lane.b32.xlu1 %v7426_v8, %s6912_s13 }
 0x5ca   : > { %v1595_v58 = vpop.xlane.xlu0 %1594 }
 0x5cb   : > { %6421 = vrcp.f32 %v1595_v58 }
 0x5cc   : > { %v7543_v54 = vpop.f32.mrb[20].mxu1 }
 0x5cd   : > { %v5907_v14 = vpop.f32.mrb[21].mxu1 }
 0x5ce   : > { %v7545_v53 = vpop.f32.mrb[22].mxu1  ;;  %v1607_v59 = vpop.xlane.xlu0 %1606 }
 0x5cf   : > { %v1818_v56 = vpack.c.bf16 %v7545_v53, %v7543_v54  ;;  %v5908_v32 = vpop.f32.mrb[23].mxu1 }
 0x5d2   : > { %v1826_v35 = vpop.permute.xlu0 %1825 }
 0x5d3   : > { %v1831_v43 = vsel %vm1335_vm1, %v1826_v35, 0 }
 0x5d4   : > { %v1598_v30 = vpop.xlane.xlu1 %1597 }
 0x5d5   : > { %6423 = vrcp.f32 %v1598_v30  ;;  %v6422_v25 = vpop.eup %6421 }
 0x5d6   : > { %v1625_v3 = vmul.f32 %v6422_v25, %v6414_v39 }
 0x5d8   : > { %v1610_v60 = vpop.xlane.xlu1 %1609 }
 0x5d9   : > { %6425 = vrcp.f32 %v1610_v60 }
 0x5da   : > { %6427 = vrcp.f32 %v1607_v59 }
 0x5dc   : > { %v7549_v61 = vpop.f32.mrb[24].mxu1  ;;  %v1823_v38 = vpop.permute.xlu1 %1822 }
 0x5dd   : > { %v5919_v62 = vpop.f32.mrb[25].mxu1 }
 0x5de   : > { %v7551_v63 = vpop.f32.mrb[26].mxu1 }
 0x5df   : > { %v6424_v1 = vpop.eup %6423  ;;  %v1820_v40 = vpack.c.bf16 %v7551_v63, %v7549_v61  ;;  %v5920_v2 = vpop.f32.mrb[27].mxu1 }
 0x5e0   : > { %v1626_v4 = vmul.f32 %v6424_v1, %v6418_v47  ;;  %v1932_v58 = vpop.permute.xlu1 %1931 }
 0x5e1   : > { %v1937_v59 = vsel %vm1335_vm1, %v1932_v58, 0 }
 0x5e2   : > { %v1633_v5 = vpack.c.bf16 %v1626_v4, %v1625_v3 }
 0x5e3   : > { %v6426_v6 = vpop.eup %6425 }
 0x5e4   : > { %5900 = vmatmul.mubr.msk.bf16.vlgmr.msra.gmra.mrb[20].mxu0 %vm1544_vm3, %v1633_v5  ;;  %v1920_v9 = vpop.f32.mrb[28].mxu1  ;;  %v6428_v12 = vpop.eup %6427  ;;  %v1630_v19 = vmul.f32 %v6426_v6, %v6420_v51 }
 0x5e5   : > { %5910 = vmatpush3.bf16.msra.mxu0 %v7419_v33  ;;  %v2035_v16 = vmul.f32 0.17677669, %v1920_v9  ;;  %v5931_v18 = vpop.f32.mrb[29].mxu1  ;;  %5911 = vmatprep.mubr.msk.bf16.mxu0 %vm6911_vm0, %v6910_v48  ;;  %v1629_v28 = vmul.f32 %v6428_v12, %v6416_v46  ;;  %v1929_v60 = vpop.permute.xlu1 %1928 }
 0x5e6   : > { %v1923_v20 = vpop.f32.mrb[30].mxu1  ;;  %5921 = vmatprep.subr.bf16.mxu0 %v6910_v48 }
 0x5e7   : > { %v2036_v21 = vmul.f32 0.17677669, %v1923_v20  ;;  %v5932_v22 = vpop.f32.mrb[31].mxu1  ;;  %v2043_v23 = vsel %vm7467_vm2, %v2035_v16, -1e+30  ;;  %v1635_v37 = vpack.c.bf16 %v1630_v19, %v1629_v28 }
 0x5e8   : > { %v2055_v17 = vsel %vm1544_vm3, %v2043_v23, -inf }
 0x5e9   : > { %2056 = vmax.xlane.f32.xlu0 %v2055_v17  ;;  %v2044_v34 = vsel %vm7473_vm4, %v2036_v21, -1e+30 }
 0x5ea   : > { %v2058_v36 = vsel %vm1544_vm3, %v2044_v34, -inf }
 0x5eb   : > { %2059 = vmax.xlane.f32.xlu1 %v2058_v36 }
 0x5ec   : > { %5912 = vmatmul.mubr.msk.bf16.vlgmr.msra.gmra.mrb[24].mxu0 %vm1544_vm3, %v1635_v37  ;;  %v2026_v39 = vpop.f32.mrb[32].mxu1 }
 0x5ed   : > { %v2039_v45 = vmul.f32 0.17677669, %v2026_v39  ;;  %v5943_v47 = vpop.f32.mrb[33].mxu1  ;;  %5923 = vmatprep.mubr.msk.bf16.mxu0 %vm6911_vm0, %v6910_v48 }
 0x5ee   : > { %5922 = vmatpush3.bf16.xpose.msra.mxu0 %v1831_v43  ;;  %v2029_v46 = vpop.f32.mrb[34].mxu1 }
 0x5ef   : > { %v2040_v49 = vmul.f32 0.17677669, %v2029_v46  ;;  %v5944_v51 = vpop.f32.mrb[35].mxu1  ;;  %v2047_v52 = vsel %vm7467_vm2, %v2039_v45, -1e+30  ;;  %5933 = vmatprep.subr.bf16.mxu0 %v6910_v48 }
 0x5f0   : > { %v2067_v14 = vsel %vm1544_vm3, %v2047_v52, -inf }
 0x5f1   : > { %2068 = vmax.xlane.f32.xlu0 %v2067_v14  ;;  %v2048_v32 = vsel %vm7473_vm4, %v2040_v49, -1e+30 }
 0x5f2   : > { %v2070_v30 = vsel %vm1544_vm3, %v2048_v32, -inf }
 0x5f5   : > { %5924 = vmatmul.mubr.msk.bf16.vlgmr.msra.gmra.mrb[28].mxu0 %vm1335_vm1, %v1823_v38  ;;  %2071 = vmax.xlane.f32.xlu0 %v2070_v30 }
 0x5f6   : > { %5934 = vmatpush3.bf16.xpose.msra.mxu0 %v1937_v59  ;;  %5935 = vmatprep.mubr.msk.bf16.mxu0 %vm6911_vm0, %v6910_v48 }
 0x5f7   : > { %5945 = vmatprep.subr.bf16.mxu0 %v6910_v48 }
 0x5fd   : > { %5936 = vmatmul.mubr.msk.bf16.vlgmr.msra.gmra.mrb[32].mxu0 %vm1335_vm1, %v1929_v60 }
 0x5fe   : > { %5947 = vmatprep.mubr.msk.bf16.mxu0 %vm6911_vm0, %v6910_v48 }
 0x676   : > { %v2057_v25 = vpop.xlane.xlu0 %2056 }
 0x677   : > { %v2075_v62 = vsub.f32 %v2043_v23, %v2057_v25 }
 0x678   : > { %v2060_v1 = vpop.xlane.xlu1 %2059 }
 0x679   : > { %v2085_v2 = vmul.f32 1.442695, %v2075_v62  ;;  %v2076_v3 = vsub.f32 %v2044_v34, %v2060_v1 }
 0x67b   : > { %6429 = vpow2.f32 %v2085_v2  ;;  %v2087_v4 = vmul.f32 1.442695, %v2076_v3 }
 0x67d   : > { %6431 = vpow2.f32 %v2087_v4 }
 0x67e   : > { %v2069_v5 = vpop.xlane.xlu0 %2068 }
 0x67f   : > { %v2079_v6 = vsub.f32 %v2047_v52, %v2069_v5 }
 0x681   : > { %v2093_v9 = vmul.f32 1.442695, %v2079_v6 }
 0x682   : > { %v2072_v22 = vpop.xlane.xlu0 %2071 }
 0x683   : > { %6433 = vpow2.f32 %v2093_v9  ;;  %v2080_v23 = vsub.f32 %v2048_v32, %v2072_v22 }
 0x685   : > { %v7585_v12 = vpop.eup %6429  ;;  %v2095_v28 = vmul.f32 1.442695, %v2080_v23 }
 0x686   : > { %v2103_v16 = vsel %vm1544_vm3, %v7585_v12, 0.0 }
 0x687   : > { %v7589_v18 = vpop.eup %6431  ;;  %2104 = vadd.xlane.f32.xlu0 %v2103_v16  ;;  %6435 = vpow2.f32 %v2095_v28 }
 0x688   : > { %v2106_v19 = vsel %vm1544_vm3, %v7589_v18, 0.0 }
 0x689   : > { %2107 = vadd.xlane.f32.xlu1 %v2106_v19 }
 0x68d   : > { %v7593_v20 = vpop.eup %6433 }
 0x68e   : > { %v2115_v21 = vsel %vm1544_vm3, %v7593_v20, 0.0 }
 0x68f   : > { %2116 = vadd.xlane.f32.xlu0 %v2115_v21 }
 0x691   : > { %v7611_v36 = vpop.eup %6435 }
 0x692   : > { %v2118_v39 = vsel %vm1544_vm3, %v7611_v36, 0.0 }
 0x69a   : > { %2286 = vrot.lane.b32.xlu1 %v7415_v0, %s6912_s13 }
 0x6a5   : > { %2190 = vrot.lane.b32.xlu0 %v7398_v44, %s6912_s13 }
 0x6a9   : > { %2568 = vrot.lane.b32.xlu0 %v7409_v57, %s6913_s16 }
 0x6ad   : > { %2619 = vrot.lane.b32.xlu0 %v7428_v41, %s6913_s16 }
 0x6b1   : > { %2670 = vrot.lane.b32.xlu0 %v7443_v27, %s6913_s16 }
 0x6b7   : > { %v7607_v17 = vpop.f32.mrb[20].mxu0 }
 0x6b8   : > { %v5901_v34 = vpop.f32.mrb[21].mxu0 }
 0x6b9   : > { %v7609_v35 = vpop.f32.mrb[22].mxu0 }
 0x6ba   : > { %v1817_v37 = vpack.c.bf16 %v7609_v35, %v7607_v17  ;;  %v5902_v38 = vpop.f32.mrb[23].mxu0 }
 0x6be   : > { %2119 = vadd.xlane.f32.xlu1 %v2118_v39 }
 0x6bf   : > { %v7617_v43 = vpop.f32.mrb[24].mxu0 }
 0x6c0   : > { %v5913_v45 = vpop.f32.mrb[25].mxu0 }
 0x6c1   : > { %v7619_v47 = vpop.f32.mrb[26].mxu0 }
 0x6c2   : > { %v1819_v46 = vpack.c.bf16 %v7619_v47, %v7617_v43  ;;  %v5914_v49 = vpop.f32.mrb[27].mxu0 }
 0x6c8   : > { %v1867_v51 = vpop.f32.mrb[28].mxu0 }
 0x6c9   : > { %v2033_v52 = vmul.f32 0.17677669, %v1867_v51  ;;  %v5925_v14 = vpop.f32.mrb[29].mxu0 }
 0x6ca   : > { %v1870_v32 = vpop.f32.mrb[30].mxu0 }
 0x6cb   : > { %v5926_v58 = vpop.f32.mrb[31].mxu0  ;;  %v2041_v30 = vsel %vm7467_vm2, %v2033_v52, -1e+30  ;;  %v2034_v16 = vmul.f32 0.17677669, %v1870_v32 }
 0x6cc   : > { %v2049_v59 = vsel %vm1544_vm3, %v2041_v30, -inf }
 0x6cd   : > { %v7647_v19 = vsel %vm7473_vm4, %v2034_v16, -1e+30 }
 0x6ce   : > { %v2052_v21 = vsel %vm1544_vm3, %v7647_v19, -inf }
 0x6cf   : > { %2517 = vrot.lane.b32.xlu1 %v7394_v31, %s6913_s16 }
 0x6d0   : > { %v1973_v60 = vpop.f32.mrb[32].mxu0  ;;  %2050 = vmax.xlane.f32.xlu0 %v2049_v59 }
 0x6d1   : > { %v2037_v25 = vmul.f32 0.17677669, %v1973_v60  ;;  %v5937_v62 = vpop.f32.mrb[33].mxu0 }
 0x6d2   : > { %v1976_v1 = vpop.f32.mrb[34].mxu0 }
 0x6d3   : > { %v2038_v2 = vmul.f32 0.17677669, %v1976_v1  ;;  %v5938_v3 = vpop.f32.mrb[35].mxu0  ;;  %2515 = vrot.lane.b32.xlu1 %v7392_v29, %s6913_s16  ;;  %v2045_v4 = vsel %vm7467_vm2, %v2037_v25, -1e+30 }
 0x6d4   : > { %v2061_v5 = vsel %vm1544_vm3, %v2045_v4, -inf }
 0x6d5   : > { %2062 = vmax.xlane.f32.xlu0 %v2061_v5  ;;  %v7635_v6 = vsel %vm7473_vm4, %v2038_v2, -1e+30 }
 0x6d6   : > { %v2064_v9 = vsel %vm1544_vm3, %v7635_v6, -inf }
 0x6d7   : > { %2566 = vrot.lane.b32.xlu1 %v7407_v55, %s6913_s16 }
 0x6d9   : > { %2065 = vmax.xlane.f32.xlu0 %v2064_v9 }
 0x6db   : > { %2617 = vrot.lane.b32.xlu1 %v7426_v8, %s6913_s16 }
 0x6df   : > { %2668 = vrot.lane.b32.xlu1 %v7441_v26, %s6913_s16 }
 0x703   : > { %2053 = vmax.xlane.f32.xlu1 %v2052_v21 }
 0x714   : > { %v2105_v22 = vpop.xlane.xlu0 %2104 }
 0x715   : > { %6437 = vrcp.f32 %v2105_v22 }
 0x716   : > { %v2108_v23 = vpop.xlane.xlu1 %2107 }
 0x717   : > { %6439 = vrcp.f32 %v2108_v23 }
 0x71a   : > { %v2287_v52 = vpop.permute.xlu1 %2286 }
 0x71c   : > { %v2117_v28 = vpop.xlane.xlu0 %2116 }
 0x71d   : > { %6441 = vrcp.f32 %v2117_v28 }
 0x71f   : > { %v6438_v34 = vpop.eup %6437 }
 0x720   : > { %v2191_v38 = vpop.permute.xlu0 %2190  ;;  %v2131_v45 = vmul.f32 %v6438_v34, %v7585_v12 }
 0x721   : > { %v6440_v39 = vpop.eup %6439  ;;  %5952 = vmatpush3.bf16.msra.mxu1 %v2191_v38 }
 0x722   : > { %v2132_v49 = vmul.f32 %v6440_v39, %v7589_v18  ;;  %5963 = vmatprep.subr.bf16.mxu1 %v6910_v48 }
 0x724   : > { %v2138_v51 = vpack.c.bf16 %v2132_v49, %v2131_v45  ;;  %v2569_v32 = vpop.permute.xlu0 %2568 }
 0x726   : > { %5954 = vmatmul.mubr.msk.bf16.vlgmr.msra.gmra.mrb[36].mxu1 %vm1544_vm3, %v2138_v51 }
 0x727   : > { %5964 = vmatpush3.bf16.msra.mxu1 %v2287_v52  ;;  %5965 = vmatprep.mubr.msk.bf16.mxu1 %vm6911_vm0, %v6910_v48  ;;  %v6442_v12 = vpop.eup %6441 }
 0x728   : > { %5993 = vmatprep.subr.bf16.mxu1 %v6910_v48  ;;  %v2620_v58 = vpop.permute.xlu0 %2619  ;;  %v2135_v18 = vmul.f32 %v6442_v12, %v7593_v20 }
 0x72c   : > { %v2671_v62 = vpop.permute.xlu0 %2670 }
 0x72d   : > { %v2676_v45 = vsel %vm1335_vm1, %v2671_v62, 0 }
 0x74b   : > { %v2120_v14 = vpop.xlane.xlu1 %2119 }
 0x74c   : > { %6443 = vrcp.f32 %v2120_v14 }
 0x74f   : > { %v2518_v25 = vpop.permute.xlu1 %2517 }
 0x750   : > { %v2523_v2 = vsel %vm1335_vm1, %v2518_v25, 0 }
 0x753   : > { %v2516_v16 = vpop.permute.xlu1 %2515 }
 0x756   : > { %v6444_v59 = vpop.eup %6443 }
 0x757   : > { %v2136_v60 = vmul.f32 %v6444_v59, %v7611_v36  ;;  %v2574_v36 = vsel %vm1335_vm1, %v2569_v32, 0  ;;  %v2567_v23 = vpop.permute.xlu1 %2566 }
 0x759   : > { %v2140_v1 = vpack.c.bf16 %v2136_v60, %v2135_v18 }
 0x75b   : > { %5966 = vmatmul.mubr.msk.bf16.vlgmr.msra.gmra.mrb[40].mxu1 %vm1544_vm3, %v2140_v1  ;;  %v2618_v38 = vpop.permute.xlu1 %2617 }
 0x75c   : > { %5994 = vmatpush3.bf16.xpose.msra.mxu1 %v2523_v2  ;;  %5995 = vmatprep.mubr.msk.bf16.mxu1 %vm6911_vm0, %v6910_v48 }
 0x75d   : > { %v2051_v3 = vpop.xlane.xlu0 %2050  ;;  %5999 = vmatprep.subr.bf16.mxu1 %v6910_v48 }
 0x75e   : > { %v2073_v5 = vsub.f32 %v2041_v30, %v2051_v3  ;;  %v2625_v30 = vsel %vm1335_vm1, %v2620_v58, 0 }
 0x75f   : > { %v2669_v49 = vpop.permute.xlu1 %2668 }
 0x760   : > { %v2081_v9 = vmul.f32 1.442695, %v2073_v5 }
 0x762   : > { %6445 = vpow2.f32 %v2081_v9  ;;  %v2063_v20 = vpop.xlane.xlu0 %2062 }
 0x763   : > { %v2077_v21 = vsub.f32 %v2045_v4, %v2063_v20  ;;  %5996 = vmatmul.mubr.msk.bf16.vlgmr.msra.gmra.mrb[44].mxu1 %vm1335_vm1, %v2516_v16 }
 0x764   : > { %6000 = vmatpush3.bf16.xpose.msra.mxu1 %v2574_v36  ;;  %6001 = vmatprep.mubr.msk.bf16.mxu1 %vm6911_vm0, %v6910_v48 }
 0x765   : > { %v2089_v22 = vmul.f32 1.442695, %v2077_v21  ;;  %6005 = vmatprep.subr.bf16.mxu1 %v6910_v48 }
 0x766   : > { %v2066_v51 = vpop.xlane.xlu0 %2065 }
 0x767   : > { %6447 = vpow2.f32 %v2089_v22  ;;  %v2078_v52 = vsub.f32 %v7635_v6, %v2066_v51 }
 0x769   : > { %v2091_v58 = vmul.f32 1.442695, %v2078_v52 }
 0x76b   : > { %6002 = vmatmul.mubr.msk.bf16.vlgmr.msra.gmra.mrb[48].mxu1 %vm1335_vm1, %v2567_v23 }
 0x76c   : > { %v7672_v28 = vpop.eup %6445  ;;  %6006 = vmatpush3.bf16.xpose.msra.mxu1 %v2625_v30  ;;  %6007 = vmatprep.mubr.msk.bf16.mxu1 %vm6911_vm0, %v6910_v48 }
 0x76d   : > { %v2097_v4 = vsel %vm1544_vm3, %v7672_v28, 0.0  ;;  %6011 = vmatprep.subr.bf16.mxu1 %v6910_v48 }
 0x76e   : > { %2098 = vadd.xlane.f32.xlu0 %v2097_v4 }
 0x771   : > { %v7679_v34 = vpop.eup %6447 }
 0x772   : > { %v2109_v39 = vsel %vm1544_vm3, %v7679_v34, 0.0 }
 0x773   : > { %2110 = vadd.xlane.f32.xlu0 %v2109_v39  ;;  %6008 = vmatmul.mubr.msk.bf16.vlgmr.msra.gmra.mrb[52].mxu1 %vm1335_vm1, %v2618_v38 }
 0x774   : > { %6012 = vmatpush3.bf16.xpose.msra.mxu1 %v2676_v45  ;;  %6013 = vmatprep.mubr.msk.bf16.mxu1 %vm6911_vm0, %v6910_v48 }
 0x775   : > { %6023 = vmatprep.subr.bf16.mxu1 %v6910_v48 }
 0x77b   : > { %6014 = vmatmul.mubr.msk.bf16.vlgmr.msra.gmra.mrb[56].mxu1 %vm1335_vm1, %v2669_v49 }
 0x77c   : > { %6025 = vmatprep.mubr.msk.bf16.mxu1 %vm6911_vm0, %v6910_v48 }
 0x789   : > { %2142 = vrot.lane.b32.xlu0 %v7400_v24, %s6912_s13 }
 0x790   : > { %v2054_v14 = vpop.xlane.xlu1 %2053 }
 0x791   : > { %v2074_v32 = vsub.f32 %v7647_v19, %v2054_v14 }
 0x793   : > { %v2083_v12 = vmul.f32 1.442695, %v2074_v32 }
 0x795   : > { %6449 = vpow2.f32 %v2083_v12 }
 0x796   : > { %6451 = vpow2.f32 %v2091_v58 }
 0x79f   : > { %v6450_v59 = vpop.eup %6449 }
 0x7a0   : > { %v2100_v18 = vsel %vm1544_vm3, %v6450_v59, 0.0  ;;  %v6452_v60 = vpop.eup %6451 }
 0x7a1   : > { %2101 = vadd.xlane.f32.xlu1 %v2100_v18  ;;  %v2112_v25 = vsel %vm1544_vm3, %v6452_v60, 0.0 }
 0x7a5   : > { %2113 = vadd.xlane.f32.xlu1 %v2112_v25 }
 0x7b6   : > { %2238 = vrot.lane.b32.xlu1 %v7419_v33, %s6912_s13 }
 0x7f9   : > { %v7699_v62 = vpop.f32.mrb[36].mxu1 }
 0x7fa   : > { %v5955_v6 = vpop.f32.mrb[37].mxu1 }
 0x7fb   : > { %v2099_v1 = vpop.xlane.xlu0 %2098  ;;  %v7701_v19 = vpop.f32.mrb[38].mxu1 }
 0x7fc   : > { %v2334_v2 = vpack.c.bf16 %v7701_v19, %v7699_v62  ;;  %v5956_v3 = vpop.f32.mrb[39].mxu1  ;;  %6453 = vrcp.f32 %v2099_v1 }
 0x800   : > { %v2111_v5 = vpop.xlane.xlu0 %2110 }
 0x804   : > { %v2143_v9 = vpop.permute.xlu0 %2142 }
 0x805   : > { %5946 = vmatpush3.bf16.msra.mxu0 %v2143_v9 }
 0x806   : > { %5957 = vmatprep.subr.bf16.mxu0 %v6910_v48  ;;  %v6454_v38 = vpop.eup %6453 }
 0x807   : > { %v2129_v58 = vmul.f32 %v6454_v38, %v7672_v28 }
 0x82e   : > { %v2102_v16 = vpop.xlane.xlu1 %2101  ;;  %v7706_v20 = vpop.f32.mrb[40].mxu1 }
 0x82f   : > { %6455 = vrcp.f32 %v2102_v16  ;;  %v5967_v36 = vpop.f32.mrb[41].mxu1 }
 0x830   : > { %v7708_v21 = vpop.f32.mrb[42].mxu1 }
 0x831   : > { %v2336_v22 = vpack.c.bf16 %v7708_v21, %v7706_v20  ;;  %v5968_v23 = vpop.f32.mrb[43].mxu1  ;;  %v6297_v21 = vld [vmem:[%s7257_s17 + $0x20] sm:$0xff]  }
 0x832   : > { %v2114_v30 = vpop.xlane.xlu1 %2113 }
 0x833   : > { %6457 = vrcp.f32 %v2114_v30 }
 0x834   : > { %6459 = vrcp.f32 %v2111_v5 }
 0x836   : > { %v2559_v4 = vpop.f32.mrb[44].mxu1  ;;  %v2239_v5 = vpop.permute.xlu1 %2238 }
 0x837   : > { %v2719_v39 = vmul.f32 0.17677669, %v2559_v4  ;;  %v5997_v45 = vpop.f32.mrb[45].mxu1 }
 0x838   : > { %v2562_v49 = vpop.f32.mrb[46].mxu1 }
 0x839   : > { %v6456_v51 = vpop.eup %6455  ;;  %v2720_v52 = vmul.f32 0.17677669, %v2562_v49  ;;  %v5998_v14 = vpop.f32.mrb[47].mxu1  ;;  %v7714_v32 = vsel %vm7467_vm2, %v2719_v39, -1e+30 }
 0x83a   : > { %v2130_v12 = vmul.f32 %v6456_v51, %v6450_v59  ;;  %v2735_v18 = vsel %vm1544_vm3, %v7714_v32, -inf }
 0x83b   : > { %2736 = vmax.xlane.f32.xlu1 %v2735_v18  ;;  %v7721_v25 = vsel %vm7473_vm4, %v2720_v52, -1e+30 }
 0x83c   : > { %v2738_v6 = vsel %vm1544_vm3, %v7721_v25, -inf  ;;  %v2137_v1 = vpack.c.bf16 %v2130_v12, %v2129_v58 }
 0x83d   : > { %v6458_v3 = vpop.eup %6457  ;;  %2739 = vmax.xlane.f32.xlu0 %v2738_v6 }
 0x83e   : > { %5948 = vmatmul.mubr.msk.bf16.vlgmr.msra.gmra.mrb[36].mxu0 %vm1544_vm3, %v2137_v1  ;;  %v2610_v9 = vpop.f32.mrb[48].mxu1  ;;  %v6460_v28 = vpop.eup %6459  ;;  %v2134_v36 = vmul.f32 %v6458_v3, %v6452_v60 }
 0x83f   : > { %5958 = vmatpush3.bf16.msra.mxu0 %v2239_v5  ;;  %v2721_v59 = vmul.f32 0.17677669, %v2610_v9  ;;  %v6003_v16 = vpop.f32.mrb[49].mxu1  ;;  %5959 = vmatprep.mubr.msk.bf16.mxu0 %vm6911_vm0, %v6910_v48  ;;  %v2133_v39 = vmul.f32 %v6460_v28, %v7679_v34 }
 0x840   : > { %v2613_v23 = vpop.f32.mrb[50].mxu1 }
 0x841   : > { %v2722_v30 = vmul.f32 0.17677669, %v2613_v23  ;;  %v6004_v4 = vpop.f32.mrb[51].mxu1  ;;  %v2729_v38 = vsel %vm7467_vm2, %v2721_v59, -1e+30  ;;  %v2139_v52 = vpack.c.bf16 %v2134_v36, %v2133_v39 }
 0x842   : > { %v2741_v45 = vsel %vm1544_vm3, %v2729_v38, -inf }
 0x843   : > { %2742 = vmax.xlane.f32.xlu0 %v2741_v45  ;;  %v2730_v49 = vsel %vm7473_vm4, %v2722_v30, -1e+30 }
 0x844   : > { %v2744_v51 = vsel %vm1544_vm3, %v2730_v49, -inf }
 0x845   : > { %2745 = vmax.xlane.f32.xlu1 %v2744_v51  ;;  %v6293_v51 = vld [vmem:[%s7257_s17 + $0x10] sm:$0xff]  }
 0x846   : > { %5960 = vmatmul.mubr.msk.bf16.vlgmr.msra.gmra.mrb[40].mxu0 %vm1544_vm3, %v2139_v52  ;;  %v2661_v60 = vpop.f32.mrb[52].mxu1  ;;  %5969 = vmatprep.subr.bf16.mxu0 %v6293_v51  ;;  %v6294_v52 = vld [vmem:[%s7257_s17 + $0x18] sm:$0xff]  }
 0x847   : > { %v2723_v14 = vmul.f32 0.17677669, %v2661_v60  ;;  %v6009_v58 = vpop.f32.mrb[53].mxu1  ;;  %5970 = vmatpush3.bf16.msra.mxu0 %v6293_v51  ;;  %v7754_v60 = vld [vmem:[%s7257_s17] sm:$0xff]  }
 0x848   : > { %v2664_v12 = vpop.f32.mrb[54].mxu1  ;;  %5971 = vmatprep.subr.bf16.mxu0 %v6294_v52 }
 0x849   : > { %v2724_v18 = vmul.f32 0.17677669, %v2664_v12  ;;  %v6010_v6 = vpop.f32.mrb[55].mxu1  ;;  %v2731_v34 = vsel %vm7467_vm2, %v2723_v14, -1e+30 }
 0x84a   : > { %v2747_v1 = vsel %vm1544_vm3, %v2731_v34, -inf }
 0x84b   : > { %2748 = vmax.xlane.f32.xlu0 %v2747_v1  ;;  %v2732_v3 = vsel %vm7473_vm4, %v2724_v18, -1e+30  ;;  %5972 = vmatpush3.bf16.msra.mxu0 %v6294_v52 }
 0x84c   : > { %v2750_v5 = vsel %vm1544_vm3, %v2732_v3, -inf  ;;  %5981 = vmatprep.subr.bf16.mxu0 %v7754_v60 }
 0x84d   : > { %2751 = vmax.xlane.f32.xlu1 %v2750_v5 }
 0x84e   : > { %v2712_v9 = vpop.f32.mrb[56].mxu1 }
 0x84f   : > { %v2725_v28 = vmul.f32 0.17677669, %v2712_v9  ;;  %v6015_v59 = vpop.f32.mrb[57].mxu1 }
 0x850   : > { %v2715_v16 = vpop.f32.mrb[58].mxu1 }
 0x851   : > { %v2726_v36 = vmul.f32 0.17677669, %v2715_v16  ;;  %v6016_v23 = vpop.f32.mrb[59].mxu1  ;;  %v2733_v30 = vsel %vm7467_vm2, %v2725_v28, -1e+30 }
 0x852   : > { %v2753_v4 = vsel %vm1544_vm3, %v2733_v30, -inf }
 0x853   : > { %2754 = vmax.xlane.f32.xlu0 %v2753_v4  ;;  %v7747_v39 = vsel %vm7473_vm4, %v2726_v36, -1e+30 }
 0x854   : > { %v2756_v45 = vsel %vm1544_vm3, %v7747_v39, -inf }
 0x855   : > { %2757 = vmax.xlane.f32.xlu1 %v2756_v45 }
 0x8c8   : > { %v2737_v14 = vpop.xlane.xlu1 %2736 }
 0x8c9   : > { %v2759_v58 = vsub.f32 %v7714_v32, %v2737_v14 }
 0x8ca   : > { %v2740_v12 = vpop.xlane.xlu0 %2739 }
 0x8cb   : > { %v2767_v18 = vmul.f32 1.442695, %v2759_v58  ;;  %v2760_v6 = vsub.f32 %v7721_v25, %v2740_v12 }
 0x8cd   : > { %6461 = vpow2.f32 %v2767_v18  ;;  %v2769_v1 = vmul.f32 1.442695, %v2760_v6 }
 0x8cf   : > { %6463 = vpow2.f32 %v2769_v1 }
 0x8d0   : > { %v2743_v5 = vpop.xlane.xlu0 %2742 }
 0x8d1   : > { %v2761_v9 = vsub.f32 %v2729_v38, %v2743_v5 }
 0x8d2   : > { %v2746_v28 = vpop.xlane.xlu1 %2745 }
 0x8d3   : > { %v2771_v59 = vmul.f32 1.442695, %v2761_v9  ;;  %v2762_v16 = vsub.f32 %v2730_v49, %v2746_v28 }
 0x8d5   : > { %6465 = vpow2.f32 %v2771_v59  ;;  %v2773_v36 = vmul.f32 1.442695, %v2762_v16 }
 0x8d7   : > { %v7759_v23 = vpop.eup %6461  ;;  %6467 = vpow2.f32 %v2773_v36 }
 0x8d8   : > { %v2749_v4 = vpop.xlane.xlu0 %2748  ;;  %v2783_v32 = vsel %vm1544_vm3, %v7759_v23, 0.0 }
 0x8d9   : > { %v7763_v45 = vpop.eup %6463  ;;  %v2763_v25 = vsub.f32 %v2731_v34, %v2749_v4  ;;  %2784 = vadd.xlane.f32.xlu0 %v2783_v32 }
 0x8da   : > { %v2752_v51 = vpop.xlane.xlu1 %2751  ;;  %v2786_v38 = vsel %vm1544_vm3, %v7763_v45, 0.0 }
 0x8db   : > { %v2775_v52 = vmul.f32 1.442695, %v2763_v25  ;;  %v2764_v14 = vsub.f32 %v2732_v3, %v2752_v51  ;;  %2787 = vadd.xlane.f32.xlu1 %v2786_v38 }
 0x8dd   : > { %6469 = vpow2.f32 %v2775_v52  ;;  %v2777_v49 = vmul.f32 1.442695, %v2764_v14 }
 0x8df   : > { %v7767_v58 = vpop.eup %6465  ;;  %6471 = vpow2.f32 %v2777_v49  ;;  %v6296_v49 = vld [vmem:[%s7257_s17 + $0x8] sm:$0xff]  }
 0x8e0   : > { %v2755_v12 = vpop.xlane.xlu0 %2754  ;;  %v2789_v18 = vsel %vm1544_vm3, %v7767_v58, 0.0 }
 0x8e1   : > { %v7771_v6 = vpop.eup %6467  ;;  %v2765_v34 = vsub.f32 %v2733_v30, %v2755_v12  ;;  %2790 = vadd.xlane.f32.xlu0 %v2789_v18 }
 0x8e2   : > { %v2792_v1 = vsel %vm1544_vm3, %v7771_v6, 0.0  ;;  %v2758_v36 = vpop.xlane.xlu1 %2757 }
 0x8e3   : > { %v2779_v5 = vmul.f32 1.442695, %v2765_v34  ;;  %2793 = vadd.xlane.f32.xlu1 %v2792_v1  ;;  %v2766_v4 = vsub.f32 %v7747_v39, %v2758_v36 }
 0x8e5   : > { %6473 = vpow2.f32 %v2779_v5  ;;  %v2781_v25 = vmul.f32 1.442695, %v2766_v4 }
 0x8e7   : > { %v7775_v3 = vpop.eup %6469  ;;  %6475 = vpow2.f32 %v2781_v25 }
 0x8e8   : > { %v2795_v9 = vsel %vm1544_vm3, %v7775_v3, 0.0 }
 0x8e9   : > { %v7779_v28 = vpop.eup %6471  ;;  %2796 = vadd.xlane.f32.xlu0 %v2795_v9 }
 0x8ea   : > { %v2798_v59 = vsel %vm1544_vm3, %v7779_v28, 0.0 }
 0x8eb   : > { %2799 = vadd.xlane.f32.xlu1 %v2798_v59 }
 0x8ef   : > { %v7783_v30 = vpop.eup %6473 }
 0x8f0   : > { %v2801_v16 = vsel %vm1544_vm3, %v7783_v30, 0.0 }
 0x8f1   : > { %2802 = vadd.xlane.f32.xlu0 %v2801_v16  ;;  %v7815_v62 = vpop.eup %6475 }
 0x8fc   : > { %2874 = vrot.lane.b32.xlu1 %v7398_v44, %s6913_s16 }
 0x900   : > { %2921 = vrot.lane.b32.xlu1 %v7419_v33, %s6913_s16 }
 0x907   : > { %2827 = vrot.lane.b32.xlu0 %v7400_v24, %s6913_s16 }
 0x90b   : > { %3118 = vrot.lane.b32.xlu0 %v7394_v31, %s6914_s22 }
 0x90f   : > { %3169 = vrot.lane.b32.xlu0 %v7409_v57, %s6914_s22 }
 0x911   : > { %v2182_v32 = vpop.f32.mrb[36].mxu0 }
 0x912   : > { %v5949_v51 = vpop.f32.mrb[37].mxu0 }
 0x913   : > { %v2185_v38 = vpop.f32.mrb[38].mxu0  ;;  %3220 = vrot.lane.b32.xlu0 %v7428_v41, %s6914_s22 }
 0x914   : > { %v2333_v52 = vpack.c.bf16 %v2185_v38, %v2182_v32  ;;  %v5950_v14 = vpop.f32.mrb[39].mxu0  ;;  %v6298_v38 = vld [vmem:[%s7257_s17 + $0x28] sm:$0xff]  }
 0x916   : > { %5973 = vmatprep.mubr.msk.bf16.mxu0 %vm1335_vm1, %v2333_v52 }
 0x917   : > { %5974 = vmatmul.mubr.msk.bf16.vlgmr.msra.gmra.mrb[44].mxu0 %vm1335_vm1, %v2334_v2  ;;  %3218 = vrot.lane.b32.xlu0 %v7426_v8, %s6914_s22  ;;  %v2804_v8 = vsel %vm1544_vm3, %v7815_v62, 0.0 }
 0x918   : > { %5982 = vmatpush3.bf16.msra.mxu0 %v7754_v60 }
 0x919   : > { %v2278_v31 = vpop.f32.mrb[40].mxu0  ;;  %5983 = vmatprep.subr.bf16.mxu0 %v6296_v49 }
 0x91a   : > { %v5961_v57 = vpop.f32.mrb[41].mxu0 }
 0x91b   : > { %v2281_v41 = vpop.f32.mrb[42].mxu0 }
 0x91c   : > { %v2335_v39 = vpack.c.bf16 %v2281_v41, %v2278_v31  ;;  %v5962_v12 = vpop.f32.mrb[43].mxu0  ;;  %5984 = vmatpush3.bf16.msra.mxu0 %v6296_v49 }
 0x91d   : > { %6017 = vmatprep.subr.bf16.mxu0 %v6910_v48 }
 0x91e   : > { %5977 = vmatprep.mubr.msk.bf16.mxu0 %vm1335_vm1, %v2335_v39 }
 0x91f   : > { %5978 = vmatmul.mubr.msk.bf16.gmra.mrb[48].mxu0 %vm1335_vm1, %v2336_v22 }
 0x920   : > { %5985 = vmatprep.mubr.msk.bf16.mxu0 %vm1335_vm1, %v1817_v37 }
 0x924   : > { %2805 = vadd.xlane.f32.xlu1 %v2804_v8 }
 0x927   : > { %5986 = vmatmul.mubr.msk.bf16.vlgmr.msra.gmra.mrb[44].mxu0 %vm1335_vm1, %v1818_v56 }
 0x928   : > { %5989 = vmatprep.mubr.msk.bf16.mxu0 %vm1335_vm1, %v1819_v46 }
 0x92f   : > { %5990 = vmatmul.mubr.msk.bf16.gmra.mrb[48].mxu0 %vm1335_vm1, %v1820_v40 }
 0x930   : > { %6019 = vmatprep.mubr.msk.bf16.mxu0 %vm6911_vm0, %v6910_v48 }
 0x935   : > { %2968 = vrot.lane.b32.xlu1 %v7415_v0, %s6913_s16 }
 0x939   : > { %3116 = vrot.lane.b32.xlu1 %v7392_v29, %s6914_s22 }
 0x93d   : > { %3167 = vrot.lane.b32.xlu1 %v7407_v55, %s6914_s22 }
 0x941   : > { %3271 = vrot.lane.b32.xlu1 %v7443_v27, %s6914_s22 }
 0x945   : > { %3269 = vrot.lane.b32.xlu1 %v7441_v26, %s6914_s22 }
 0x966   : > { %v2785_v54 = vpop.xlane.xlu0 %2784 }
 0x968   : > { %v2788_v53 = vpop.xlane.xlu1 %2787 }
 0x96e   : > { %v2791_v56 = vpop.xlane.xlu0 %2790 }
 0x96f   : > { %6477 = vrcp.f32 %v2791_v56 }
 0x970   : > { %v2794_v61 = vpop.xlane.xlu1 %2793 }
 0x971   : > { %6479 = vrcp.f32 %v2794_v61 }
 0x972   : > { %6481 = vrcp.f32 %v2788_v53 }
 0x973   : > { %6483 = vrcp.f32 %v2785_v54 }
 0x976   : > { %v2797_v29 = vpop.xlane.xlu0 %2796 }
 0x978   : > { %v2800_v63 = vpop.xlane.xlu1 %2799 }
 0x979   : > { %v6478_v40 = vpop.eup %6477  ;;  %6485 = vrcp.f32 %v2800_v63 }
 0x97a   : > { %v2817_v55 = vmul.f32 %v6478_v40, %v7767_v58  ;;  %6487 = vrcp.f32 %v2797_v29 }
 0x97b   : > { %v6480_v17 = vpop.eup %6479 }
 0x97c   : > { %v2818_v27 = vmul.f32 %v6480_v17, %v7771_v6  ;;  %v2875_v35 = vpop.permute.xlu1 %2874  ;;  %v6482_v26 = vpop.eup %6481 }
 0x97d   : > { %6024 = vmatpush3.bf16.msra.mxu1 %v2875_v35  ;;  %v6484_v47 = vpop.eup %6483  ;;  %v2816_v46 = vmul.f32 %v6482_v26, %v7763_v45 }
 0x97e   : > { %v2803_v37 = vpop.xlane.xlu0 %2802  ;;  %v2824_v43 = vpack.c.bf16 %v2818_v27, %v2817_v55  ;;  %6035 = vmatprep.subr.bf16.mxu1 %v6910_v48  ;;  %v2815_v19 = vmul.f32 %v6484_v47, %v7759_v23 }
 0x97f   : > { %6489 = vrcp.f32 %v2803_v37 }
 0x980   : > { %6026 = vmatmul.mubr.msk.bf16.vlgmr.msra.gmra.mrb[60].mxu1 %vm1544_vm3, %v2824_v43  ;;  %v2823_v20 = vpack.c.bf16 %v2816_v46, %v2815_v19  ;;  %v2922_v60 = vpop.permute.xlu1 %2921 }
 0x981   : > { %6037 = vmatprep.mubr.msk.bf16.mxu1 %vm6911_vm0, %v6910_v48 }
 0x982   : > { %v2828_v2 = vpop.permute.xlu0 %2827 }
 0x983   : > { %6018 = vmatpush3.bf16.msra.mxu0 %v2828_v2  ;;  %v6486_v22 = vpop.eup %6485 }
 0x984   : > { %6029 = vmatprep.subr.bf16.mxu0 %v6910_v48  ;;  %v6488_v58 = vpop.eup %6487  ;;  %v2820_v45 = vmul.f32 %v6486_v22, %v7779_v28 }
 0x985   : > { %v2819_v23 = vmul.f32 %v6488_v58, %v7775_v3 }
 0x986   : > { %6020 = vmatmul.mubr.msk.bf16.vlgmr.msra.gmra.mrb[52].mxu0 %vm1544_vm3, %v2823_v20  ;;  %v3119_v59 = vpop.permute.xlu0 %3118 }
 0x987   : > { %6030 = vmatpush3.bf16.msra.mxu0 %v2922_v60  ;;  %6031 = vmatprep.mubr.msk.bf16.mxu0 %vm6911_vm0, %v6910_v48  ;;  %v2825_v18 = vpack.c.bf16 %v2820_v45, %v2819_v23  ;;  %v3124_v3 = vsel %vm1335_vm1, %v3119_v59, 0 }
 0x988   : > { %6041 = vmatprep.subr.bf16.mxu0 %v6297_v21 }
 0x989   : > { %v6490_v1 = vpop.eup %6489 }
 0x98a   : > { %v2821_v9 = vmul.f32 %v6490_v1, %v7783_v30  ;;  %v3170_v4 = vpop.permute.xlu0 %3169 }
 0x98b   : > { %v3175_v30 = vsel %vm1335_vm1, %v3170_v4, 0 }
 0x98e   : > { %6032 = vmatmul.mubr.msk.bf16.vlgmr.msra.gmra.mrb[56].mxu0 %vm1544_vm3, %v2825_v18  ;;  %v3221_v8 = vpop.permute.xlu0 %3220 }
 0x98f   : > { %6042 = vmatpush3.bf16.msra.mxu0 %v6297_v21  ;;  %v3226_v56 = vsel %vm1335_vm1, %v3221_v8, 0 }
 0x990   : > { %6043 = vmatprep.subr.bf16.mxu0 %v6298_v38 }
 0x992   : > { %v3219_v22 = vpop.permute.xlu0 %3218 }
 0x993   : > { %6044 = vmatpush3.bf16.msra.mxu0 %v6298_v38 }
 0x994   : > { %6065 = vmatprep.subr.bf16.mxu0 %v6910_v48 }
 0x9b1   : > { %v2806_v6 = vpop.xlane.xlu1 %2805 }
 0x9b2   : > { %6491 = vrcp.f32 %v2806_v6 }
 0x9b5   : > { %v2969_v34 = vpop.permute.xlu1 %2968 }
 0x9b6   : > { %6036 = vmatpush3.bf16.msra.mxu1 %v2969_v34 }
 0x9b7   : > { %6053 = vmatprep.subr.bf16.mxu1 %v6910_v48 }
 0x9b9   : > { %v3117_v36 = vpop.permute.xlu1 %3116 }
 0x9bc   : > { %v6492_v5 = vpop.eup %6491 }
 0x9bd   : > { %v2822_v28 = vmul.f32 %v6492_v5, %v7815_v62  ;;  %v3168_v32 = vpop.permute.xlu1 %3167 }
 0x9bf   : > { %v2826_v16 = vpack.c.bf16 %v2822_v28, %v2821_v9 }
 0x9c1   : > { %6038 = vmatmul.mubr.msk.bf16.vlgmr.msra.gmra.mrb[64].mxu1 %vm1544_vm3, %v2826_v16  ;;  %v3272_v25 = vpop.permute.xlu1 %3271 }
 0x9c2   : > { %6054 = vmatpush3.bf16.xpose.msra.mxu1 %v3124_v3  ;;  %6055 = vmatprep.mubr.msk.bf16.mxu1 %vm6911_vm0, %v6910_v48  ;;  %v3277_v51 = vsel %vm1335_vm1, %v3272_v25, 0 }
 0x9c3   : > { %6059 = vmatprep.subr.bf16.mxu1 %v6910_v48 }
 0x9c5   : > { %v3270_v52 = vpop.permute.xlu1 %3269 }
 0x9c9   : > { %6056 = vmatmul.mubr.msk.bf16.vlgmr.msra.gmra.mrb[68].mxu1 %vm1335_vm1, %v3117_v36 }
 0x9ca   : > { %6060 = vmatpush3.bf16.xpose.msra.mxu1 %v3175_v30  ;;  %6061 = vmatprep.mubr.msk.bf16.mxu1 %vm6911_vm0, %v6910_v48 }
 0x9cb   : > { %6071 = vmatprep.subr.bf16.mxu1 %v6910_v48 }
 0x9d1   : > { %6062 = vmatmul.mubr.msk.bf16.vlgmr.msra.gmra.mrb[72].mxu1 %vm1335_vm1, %v3168_v32 }
 0x9d2   : > { %6072 = vmatpush3.bf16.xpose.msra.mxu1 %v3277_v51  ;;  %6073 = vmatprep.mubr.msk.bf16.mxu1 %vm6911_vm0, %v6910_v48 }
 0x9d3   : > { %6083 = vmatprep.subr.bf16.mxu1 %v6910_v48 }
 0x9d9   : > { %6074 = vmatmul.mubr.msk.bf16.vlgmr.msra.gmra.mrb[76].mxu1 %vm1335_vm1, %v3270_v52 }
 0x9da   : > { %6085 = vmatprep.mubr.msk.bf16.mxu1 %vm6911_vm0, %v6910_v48 }
 0xa53   : > { %v2914_v14 = vpop.f32.mrb[60].mxu1 }
 0xa54   : > { %v6027_v49 = vpop.f32.mrb[61].mxu1 }
 0xa55   : > { %v2917_v31 = vpop.f32.mrb[62].mxu1 }
 0xa56   : > { %v3016_v57 = vpack.c.bf16 %v2917_v31, %v2914_v14  ;;  %v6028_v41 = vpop.f32.mrb[63].mxu1 }
 0xa59   : > { %v2867_v39 = vpop.f32.mrb[52].mxu0 }
 0xa5a   : > { %v6021_v12 = vpop.f32.mrb[53].mxu0 }
 0xa5b   : > { %v2870_v62 = vpop.f32.mrb[54].mxu0 }
 0xa5c   : > { %v3015_v54 = vpack.c.bf16 %v2870_v62, %v2867_v39  ;;  %v6022_v53 = vpop.f32.mrb[55].mxu0 }
 0xa5e   : > { %6045 = vmatprep.mubr.msk.bf16.mxu0 %vm1335_vm1, %v3015_v54 }
 0xa5f   : > { %6046 = vmatmul.mubr.msk.bf16.vlgmr.msra.gmra.mrb[44].mxu0 %vm1335_vm1, %v3016_v57 }
 0xa60   : > { %6066 = vmatpush3.bf16.xpose.msra.mxu0 %v3226_v56 }
 0xa61   : > { %v2961_v61 = vpop.f32.mrb[56].mxu0  ;;  %6077 = vmatprep.subr.bf16.mxu0 %v6910_v48 }
 0xa62   : > { %v6033_v63 = vpop.f32.mrb[57].mxu0 }
 0xa63   : > { %v2964_v40 = vpop.f32.mrb[58].mxu0 }
 0xa64   : > { %v3017_v29 = vpack.c.bf16 %v2964_v40, %v2961_v61  ;;  %v6034_v17 = vpop.f32.mrb[59].mxu0 }
 0xa66   : > { %6049 = vmatprep.mubr.msk.bf16.mxu0 %vm1335_vm1, %v3017_v29 }
 0xa94   : > { %v3008_v55 = vpop.f32.mrb[64].mxu1 }
 0xa95   : > { %v6039_v27 = vpop.f32.mrb[65].mxu1 }
 0xa96   : > { %v3011_v35 = vpop.f32.mrb[66].mxu1 }
 0xa97   : > { %v3018_v26 = vpack.c.bf16 %v3011_v35, %v3008_v55  ;;  %v6040_v37 = vpop.f32.mrb[67].mxu1 }
 0xa99   : > { %6050 = vmatmul.mubr.msk.bf16.gmra.mrb[48].mxu0 %vm1335_vm1, %v3018_v26 }
 0xa9a   : > { %6067 = vmatprep.mubr.msk.bf16.mxu0 %vm6911_vm0, %v6910_v48 }
 0xa9c   : > { %v3160_v43 = vpop.f32.mrb[68].mxu1 }
 0xa9d   : > { %v3320_v47 = vmul.f32 0.17677669, %v3160_v43  ;;  %v6057_v46 = vpop.f32.mrb[69].mxu1 }
 0xa9e   : > { %v3163_v19 = vpop.f32.mrb[70].mxu1 }
 0xa9f   : > { %v3321_v2 = vmul.f32 0.17677669, %v3163_v19  ;;  %v6058_v20 = vpop.f32.mrb[71].mxu1  ;;  %v3328_v21 = vsel %vm7467_vm2, %v3320_v47, -1e+30 }
 0xaa0   : > { %v3336_v60 = vsel %vm1544_vm3, %v3328_v21, -inf }
 0xaa1   : > { %v3329_v58 = vsel %vm7473_vm4, %v3321_v2, -1e+30  ;;  %6068 = vmatmul.mubr.msk.bf16.vlgmr.msra.gmra.mrb[60].mxu0 %vm1335_vm1, %v3219_v22  ;;  %3337 = vmax.xlane.f32.xlu0 %v3336_v60 }
 0xaa2   : > { %v3339_v45 = vsel %vm1544_vm3, %v3329_v58, -inf  ;;  %6079 = vmatprep.mubr.msk.bf16.mxu0 %vm6911_vm0, %v6910_v48 }
 0xaa3   : > { %3340 = vmax.xlane.f32.xlu1 %v3339_v45 }
 0xaa4   : > { %v3211_v23 = vpop.f32.mrb[72].mxu1 }
 0xaa5   : > { %v3322_v18 = vmul.f32 0.17677669, %v3211_v23  ;;  %v6063_v6 = vpop.f32.mrb[73].mxu1 }
 0xaa6   : > { %v3214_v34 = vpop.f32.mrb[74].mxu1 }
 0xaa7   : > { %v3323_v1 = vmul.f32 0.17677669, %v3214_v34  ;;  %v6064_v5 = vpop.f32.mrb[75].mxu1  ;;  %v3330_v9 = vsel %vm7467_vm2, %v3322_v18, -1e+30 }
 0xaa8   : > { %v3342_v28 = vsel %vm1544_vm3, %v3330_v9, -inf }
 0xaa9   : > { %v3331_v59 = vsel %vm7473_vm4, %v3323_v1, -1e+30  ;;  %3343 = vmax.xlane.f32.xlu0 %v3342_v28 }
 0xaaa   : > { %v3345_v3 = vsel %vm1544_vm3, %v3331_v59, -inf }
 0xaac   : > { %v3313_v16 = vpop.f32.mrb[76].mxu1 }
 0xaad   : > { %3346 = vmax.xlane.f32.xlu0 %v3345_v3  ;;  %v6075_v36 = vpop.f32.mrb[77].mxu1  ;;  %v3326_v12 = vmul.f32 0.17677669, %v3313_v16 }
 0xaae   : > { %v3316_v4 = vpop.f32.mrb[78].mxu1 }
 0xaaf   : > { %v6076_v32 = vpop.f32.mrb[79].mxu1  ;;  %v3327_v56 = vmul.f32 0.17677669, %v3316_v4  ;;  %v3334_v55 = vsel %vm7467_vm2, %v3326_v12, -1e+30 }
 0xab0   : > { %v3354_v37 = vsel %vm1544_vm3, %v3334_v55, -inf }
 0xab1   : > { %v3335_v26 = vsel %vm7473_vm4, %v3327_v56, -1e+30 }
 0xab2   : > { %v3357_v47 = vsel %vm1544_vm3, %v3335_v26, -inf }
 0xb2e   : > { %v3338_v30 = vpop.xlane.xlu0 %3337 }
 0xb2f   : > { %v3360_v38 = vsub.f32 %v3328_v21, %v3338_v30 }
 0xb30   : > { %v3341_v51 = vpop.xlane.xlu1 %3340 }
 0xb31   : > { %v3361_v52 = vsub.f32 %v3329_v58, %v3341_v51  ;;  %v3368_v49 = vmul.f32 1.442695, %v3360_v38 }
 0xb33   : > { %v3370_v57 = vmul.f32 1.442695, %v3361_v52  ;;  %6493 = vpow2.f32 %v3368_v49 }
 0xb35   : > { %6495 = vpow2.f32 %v3370_v57 }
 0xb36   : > { %v3344_v25 = vpop.xlane.xlu0 %3343 }
 0xb37   : > { %v3362_v31 = vsub.f32 %v3330_v9, %v3344_v25 }
 0xb39   : > { %v3372_v39 = vmul.f32 1.442695, %v3362_v31 }
 0xb3a   : > { %v3347_v14 = vpop.xlane.xlu0 %3346 }
 0xb3b   : > { %v3363_v41 = vsub.f32 %v3331_v59, %v3347_v14  ;;  %6497 = vpow2.f32 %v3372_v39 }
 0xb3d   : > { %v3374_v8 = vmul.f32 1.442695, %v3363_v41  ;;  %v7920_v43 = vpop.eup %6493 }
 0xb3e   : > { %v3384_v46 = vsel %vm1544_vm3, %v7920_v43, 0.0 }
 0xb3f   : > { %6499 = vpow2.f32 %v3374_v8  ;;  %v6496_v42 = vpop.eup %6495 }
 0xb40   : > { %v3387_v2 = vsel %vm1544_vm3, %v6496_v42, 0.0 }
 0xb45   : > { %v6498_v19 = vpop.eup %6497 }
 0xb46   : > { %v3390_v50 = vsel %vm1544_vm3, %v6498_v19, 0.0 }
 0xb49   : > { %v6500_v20 = vpop.eup %6499 }
 0xb4a   : > { %v3393_v21 = vsel %vm1544_vm3, %v6500_v20, 0.0 }
 0xb74   : > { %v3262_v62 = vpop.f32.mrb[60].mxu0 }
 0xb75   : > { %v3324_v54 = vmul.f32 0.17677669, %v3262_v62  ;;  %v6069_v53 = vpop.f32.mrb[61].mxu0 }
 0xb76   : > { %v3265_v61 = vpop.f32.mrb[62].mxu0 }
 0xb77   : > { %v3332_v63 = vsel %vm7467_vm2, %v3324_v54, -1e+30  ;;  %v3325_v40 = vmul.f32 0.17677669, %v3265_v61  ;;  %v6070_v29 = vpop.f32.mrb[63].mxu0 }
 0xb78   : > { %v3348_v17 = vsel %vm1544_vm3, %v3332_v63, -inf }
 0xb79   : > { %v3333_v27 = vsel %vm7473_vm4, %v3325_v40, -1e+30  ;;  %3349 = vmax.xlane.f32.xlu0 %v3348_v17 }
 0xb7a   : > { %v3351_v35 = vsel %vm1544_vm3, %v3333_v27, -inf }
 0xb7b   : > { %3352 = vmax.xlane.f32.xlu1 %v3351_v35 }
 0xb7d   : > { %3355 = vmax.xlane.f32.xlu0 %v3354_v37 }
 0xb7f   : > { %3358 = vmax.xlane.f32.xlu1 %v3357_v47 }
 0xb81   : > { %3385 = vadd.xlane.f32.xlu0 %v3384_v46  ;;  %v6300_v46 = vld [vmem:[%s7257_s17 + $0x38] sm:$0xff]  }
 0xb83   : > { %3388 = vadd.xlane.f32.xlu1 %v3387_v2 }
 0xb85   : > { %3391 = vadd.xlane.f32.xlu0 %v3390_v50 }
 0xb87   : > { %3394 = vadd.xlane.f32.xlu1 %v3393_v21 }
 0xc06   : > { %v3350_v22 = vpop.xlane.xlu0 %3349 }
 0xc07   : > { %v3364_v60 = vsub.f32 %v3332_v63, %v3350_v22 }
 0xc08   : > { %v3353_v58 = vpop.xlane.xlu1 %3352 }
 0xc09   : > { %v3376_v18 = vmul.f32 1.442695, %v3364_v60  ;;  %v3365_v4 = vsub.f32 %v3333_v27, %v3353_v58 }
 0xc0a   : > { %v3356_v45 = vpop.xlane.xlu0 %3355 }
 0xc0b   : > { %v3366_v23 = vsub.f32 %v3334_v55, %v3356_v45  ;;  %v3378_v32 = vmul.f32 1.442695, %v3365_v4  ;;  %v5542_v4 = vld [vmem:[%s8529_s23] ss:$0 sm:$0xff] }
 0xc0c   : > { %v3359_v6 = vpop.xlane.xlu1 %3358 }
 0xc0d   : > { %v3380_v34 = vmul.f32 1.442695, %v3366_v23  ;;  %v3367_v1 = vsub.f32 %v3335_v26, %v3359_v6 }
 0xc0e   : > { %v3386_v38 = vpop.xlane.xlu0 %3385 }
 0xc0f   : > { %6501 = vpow2.f32 %v3380_v34  ;;  %v3382_v5 = vmul.f32 1.442695, %v3367_v1 }
 0xc10   : > { %6503 = vpow2.f32 %v3376_v18  ;;  %v3389_v51 = vpop.xlane.xlu1 %3388 }
 0xc11   : > { %6505 = vpow2.f32 %v3382_v5 }
 0xc12   : > { %6507 = vpow2.f32 %v3378_v32 }
 0xc14   : > { %v3395_v52 = vpop.xlane.xlu1 %3394 }
 0xc15   : > { %6509 = vrcp.f32 %v3395_v52  ;;  %v6670_v52 = vld [vmem:[#allocation2 + $0x10] sm:$0xff] }
 0xc16   : > { %6511 = vrcp.f32 %v3389_v51 }
 0xc19   : > { %v6502_v9 = vpop.eup %6501 }
 0xc1a   : > { %v7928_v28 = vpop.eup %6503  ;;  %v3402_v59 = vsel %vm1544_vm3, %v6502_v9, 0.0 }
 0xc1b   : > { %v6506_v16 = vpop.eup %6505  ;;  %3403 = vadd.xlane.f32.xlu0 %v3402_v59  ;;  %v3396_v36 = vsel %vm1544_vm3, %v7928_v28, 0.0 }
 0xc1c   : > { %v3405_v3 = vsel %vm1544_vm3, %v6506_v16, 0.0  ;;  %v6508_v30 = vpop.eup %6507 }
 0xc1d   : > { %3406 = vadd.xlane.f32.xlu1 %v3405_v3  ;;  %v3399_v25 = vsel %vm1544_vm3, %v6508_v30, 0.0 }
 0xc1f   : > { %3397 = vadd.xlane.f32.xlu0 %v3396_v36 }
 0xc2e   : > { %3475 = vrot.lane.b32.xlu1 %v7398_v44, %s6914_s22  ;;  %v3392_v44 = vpop.xlane.xlu0 %3391 }
 0xc2f   : > { %6513 = vrcp.f32 %v3392_v44 }
 0xc30   : > { %6515 = vrcp.f32 %v3386_v38 }
 0xc32   : > { %3522 = vrot.lane.b32.xlu1 %v7419_v33, %s6914_s22 }
 0xc35   : > { %3428 = vrot.lane.b32.xlu0 %v7400_v24, %s6914_s22  ;;  %v6510_v24 = vpop.eup %6509 }
 0xc36   : > { %v6512_v14 = vpop.eup %6511  ;;  %v3419_v57 = vmul.f32 %v6510_v24, %v6500_v20  ;;  %v6671_v24 = vld [vmem:[#allocation2 + $0x8] sm:$0xff] }
 0xc37   : > { %v3417_v12 = vmul.f32 %v6512_v14, %v6496_v42  ;;  %v6299_v42 = vld [vmem:[%s7257_s17 + $0x30] sm:$0xff]  }
 0xc39   : > { %v6514_v31 = vpop.eup %6513 }
 0xc3a   : > { %v6516_v39 = vpop.eup %6515  ;;  %v3418_v62 = vmul.f32 %v6514_v31, %v6498_v19 }
 0xc3c   : > { %v3425_v53 = vpack.c.bf16 %v3419_v57, %v3418_v62  ;;  %v6672_v57 = vld [vmem:[#allocation2 + $0x18] sm:$0xff] }
 0xc56   : > { %3400 = vadd.xlane.f32.xlu1 %v3399_v25 }
 0xc67   : > { %3569 = vrot.lane.b32.xlu1 %v7415_v0, %s6914_s22  ;;  %v3416_v0 = vmul.f32 %v6516_v39, %v7920_v43  ;;  %s8537_s22 = sld [smem:[#allocation34_spill]] (!%p5642_p4) }
 0xc69   : > { %v3424_v56 = vpack.c.bf16 %v3417_v12, %v3416_v0 }
 0xca8   : > { %v3404_v33 = vpop.xlane.xlu0 %3403 }
 0xcaa   : > { %v3407_v49 = vpop.xlane.xlu1 %3406 }
 0xcab   : > { %6517 = vrcp.f32 %v3407_v49 }
 0xcac   : > { %v3398_v41 = vpop.xlane.xlu0 %3397  ;;  %6519 = vrcp.f32 %v3404_v33 }
 0xcad   : > { %6521 = vrcp.f32 %v3398_v41 }
 0xcae   : > { %v3476_v8 = vpop.permute.xlu1 %3475 }
 0xcaf   : > { %6084 = vmatpush3.bf16.msra.mxu1 %v3476_v8  ;;  %v6673_v8 = vld [vmem:[#allocation2 + $0x20] sm:$0xff] }
 0xcb0   : > { %v3429_v54 = vpop.permute.xlu0 %3428  ;;  %6095 = vmatprep.subr.bf16.mxu1 %v6910_v48 }
 0xcb1   : > { %6078 = vmatpush3.bf16.msra.mxu0 %v3429_v54 }
 0xcb2   : > { %6086 = vmatmul.mubr.msk.bf16.vlgmr.msra.gmra.mrb[80].mxu1 %vm1544_vm3, %v3425_v53  ;;  %6089 = vmatprep.subr.bf16.mxu0 %v6910_v48  ;;  %v3523_v61 = vpop.permute.xlu1 %3522 }
 0xcb3   : > { %6097 = vmatprep.mubr.msk.bf16.mxu1 %vm6911_vm0, %v6910_v48 }
 0xcb4   : > { %6080 = vmatmul.mubr.msk.bf16.vlgmr.msra.gmra.mrb[64].mxu0 %vm1544_vm3, %v3424_v56  ;;  %v6674_v56 = vld [vmem:[#allocation2 + $0x30] sm:$0xff] }
 0xcb5   : > { %6090 = vmatpush3.bf16.msra.mxu0 %v3523_v61  ;;  %6091 = vmatprep.mubr.msk.bf16.mxu0 %vm6911_vm0, %v6910_v48  ;;  %v6518_v63 = vpop.eup %6517 }
 0xcb6   : > { %v6520_v29 = vpop.eup %6519  ;;  %v3423_v17 = vmul.f32 %v6518_v63, %v6506_v16  ;;  %6101 = vmatprep.subr.bf16.mxu0 %v6299_v42 }
 0xcb7   : > { %v3422_v55 = vmul.f32 %v6520_v29, %v6502_v9  ;;  %v6522_v26 = vpop.eup %6521 }
 0xcb8   : > { %v3420_v37 = vmul.f32 %v6522_v26, %v7928_v28 }
 0xcb9   : > { %v3427_v35 = vpack.c.bf16 %v3423_v17, %v3422_v55  ;;  %v6676_v17 = vld [vmem:[#allocation2 + $0x38] sm:$0xff] }
 0xce3   : > { %v3401_v40 = vpop.xlane.xlu1 %3400 }
 0xce4   : > { %6523 = vrcp.f32 %v3401_v40  ;;  %v6675_v40 = vld [vmem:[#allocation2 + $0x28] sm:$0xff] }
 0xce7   : > { %v3570_v27 = vpop.permute.xlu1 %3569 }
 0xce8   : > { %6096 = vmatpush3.bf16.msra.mxu1 %v3570_v27 }
 0xceb   : > { %6098 = vmatmul.mubr.msk.bf16.vlgmr.msra.gmra.mrb[84].mxu1 %vm1544_vm3, %v3427_v35 }
 0xcec   : > { %4108 = vmatprep.mubr.bf16.mxu1 %v6909_v7 }
 0xcee   : > { %v6524_v48 = vpop.eup %6523 }
 0xcef   : > { %v3421_v43 = vmul.f32 %v6524_v48, %v6508_v30  ;;  %v6669_v30 = vld [vmem:[#allocation2] sm:$0xff] }
 0xcf0   : > { %v6301_v48 = vld [vmem:[%s7232_s1] ss:$16 sps:$4 sm:$0xff]  }
 0xcf1   : > { %v3426_v47 = vpack.c.bf16 %v3421_v43, %v3420_v37  ;;  %v6303_v37 = vld [vmem:[%s7232_s1 + $0x4] ss:$16 sps:$4 sm:$0xff]   ;;  %v6304_v43 = vld [vmem:[%s7232_s1 + $0x8] ss:$16 sps:$4 sm:$0xff]  }
 0xcf2   : > { %4076 = vmatprep.subr.bf16.mxu1 %v6303_v37 }
 0xcf3   : > { %6092 = vmatmul.mubr.msk.bf16.vlgmr.msra.gmra.mrb[68].mxu0 %vm1544_vm3, %v3426_v47  ;;  %v6306_v47 = vld [vmem:[%s7232_s1 + $0xc] ss:$16 sps:$4 sm:$0xff]   ;;  %4077 = vmatpush1.bf16.msra.mxu1 %v6301_v48 }
 0xcf4   : > { %6102 = vmatpush3.bf16.msra.mxu0 %v6299_v42  ;;  %v6309_v42 = vld [vmem:[%s7232_s1 + $0x24] ss:$16 sps:$4 sm:$0xff]  }
 0xcf5   : > { %6103 = vmatprep.subr.bf16.mxu0 %v6300_v46  ;;  %4078 = vmatprep.subr.bf16.mxu1 %v6309_v42 }
 0xcf8   : > { %6104 = vmatpush3.bf16.msra.mxu0 %v6300_v46  ;;  %v6312_v46 = vld [vmem:[%s7232_s1 + $0x2c] ss:$16 sps:$4 sm:$0xff]  }
 0xcf9   : > { %4149 = vmatprep.subr.bf16.mxu0 %v6306_v47 }
 0xd85   : > { %v3515_v19 = vpop.f32.mrb[80].mxu1 }
 0xd86   : > { %v6087_v2 = vpop.f32.mrb[81].mxu1 }
 0xd87   : > { %v3468_v20 = vpop.f32.mrb[64].mxu0  ;;  %v3518_v50 = vpop.f32.mrb[82].mxu1  ;;  %v6310_v2 = vld [vmem:[%s7232_s1 + $0x28] ss:$16 sps:$4 sm:$0xff]  }
 0xd88   : > { %v3617_v21 = vpack.c.bf16 %v3518_v50, %v3515_v19  ;;  %v6081_v22 = vpop.f32.mrb[65].mxu0  ;;  %v6088_v60 = vpop.f32.mrb[83].mxu1  ;;  %v6307_v19 = vld [vmem:[%s7232_s1 + $0x20] ss:$16 sps:$4 sm:$0xff]  }
 0xd89   : > { %v3471_v58 = vpop.f32.mrb[66].mxu0  ;;  %4079 = vmatpush1.bf16.msra.mxu1 %v6307_v19 }
 0xd8a   : > { %v3616_v45 = vpack.c.bf16 %v3471_v58, %v3468_v20  ;;  %v6082_v23 = vpop.f32.mrb[67].mxu0 }
 0xd8c   : > { %6105 = vmatprep.mubr.msk.bf16.mxu0 %vm1335_vm1, %v3616_v45 }
 0xd8d   : > { %6106 = vmatmul.mubr.msk.bf16.vlgmr.msra.gmra.mrb[44].mxu0 %vm1335_vm1, %v3617_v21 }
 0xd8e   : > { %4150 = vmatpush1.bf16.msra.mxu0 %v6304_v43 }
 0xd8f   : > { %4151 = vmatprep.subr.bf16.mxu0 %v6312_v46 }
 0xd92   : > { %4152 = vmatpush1.bf16.msra.mxu0 %v6310_v2 }
 0xdbe   : > { %v3609_v18 = vpop.f32.mrb[84].mxu1 }
 0xdbf   : > { %v6099_v6 = vpop.f32.mrb[85].mxu1 }
 0xdc0   : > { %v3612_v34 = vpop.f32.mrb[86].mxu1 }
 0xdc1   : > { %v3619_v1 = vpack.c.bf16 %v3612_v34, %v3609_v18  ;;  %v6100_v5 = vpop.f32.mrb[87].mxu1 }
 0xdc6   : > { %v3562_v9 = vpop.f32.mrb[68].mxu0 }
 0xdc7   : > { %v6093_v28 = vpop.f32.mrb[69].mxu0 }
 0xdc8   : > { %v3565_v59 = vpop.f32.mrb[70].mxu0 }
 0xdc9   : > { %v3618_v16 = vpack.c.bf16 %v3565_v59, %v3562_v9  ;;  %v6094_v3 = vpop.f32.mrb[71].mxu0 }
 0xdca   : > { %v6318_v3 = vld [vmem:[%s7232_s1 + $0x4c] ss:$16 sps:$4 sm:$0xff]  }
 0xdcb   : > { %6109 = vmatprep.mubr.msk.bf16.mxu0 %vm1335_vm1, %v3618_v16  ;;  %v6315_v16 = vld [vmem:[%s7232_s1 + $0x44] ss:$16 sps:$4 sm:$0xff]   ;;  %4153 = vmatprep.subr.bf16.mxu0 %v6318_v3 }
 0xdcc   : > { %6110 = vmatmul.mubr.msk.bf16.gmra.mrb[48].mxu0 %vm1335_vm1, %v3619_v1  ;;  %4080 = vmatprep.subr.bf16.mxu1 %v6315_v16 }
 0xdcd   : > { %4181 = vmatprep.mubr.bf16.mxu0 %v6909_v7 }
 0xe60   : > { %v6107_v36 = vpop.f32.mrb[44].mxu0 }
 0xe61   : > { %v3678_v32 = vpop.f32.mrb[45].mxu0  ;;  %v3719_v44 = vadd.f32 %v6670_v52, %v6107_v36  ;;  %v6313_v36 = vld [vmem:[%s7232_s1 + $0x40] ss:$16 sps:$4 sm:$0xff]   ;;  %v6330_v52 = vld [vmem:[%s7232_s1 + $0x8c] ss:$16 sps:$4 sm:$0xff]  }
 0xe62   : > { %v3717_v25 = vadd.f32 %v6669_v30, %v3678_v32  ;;  %v6108_v51 = vpop.f32.mrb[46].mxu0  ;;  %4081 = vmatpush1.bf16.msra.mxu1 %v6313_v36  ;;  %v6321_v32 = vld [vmem:[%s7232_s1 + $0x64] ss:$16 sps:$4 sm:$0xff]   ;;  %v6324_v30 = vld [vmem:[%s7232_s1 + $0x6c] ss:$16 sps:$4 sm:$0xff]  }
 0xe63   : > { %v3681_v38 = vpop.f32.mrb[47].mxu0  ;;  %v7973_v31 = vadd.f32 %v5542_v4, %v3719_v44  ;;  %v3720_v41 = vadd.f32 %v6672_v57, %v6108_v51  ;;  %v6322_v51 = vld [vmem:[%s7232_s1 + $0x68] ss:$16 sps:$4 sm:$0xff]   ;;  %4082 = vmatprep.subr.bf16.mxu1 %v6321_v32  ;;  %v6325_v44 = vld [vmem:[%s7232_s1 + $0x80] ss:$16 sps:$4 sm:$0xff]  }
 0xe64   : > { %v7968_v33 = vadd.f32 %v5542_v4, %v3717_v25  ;;  %v3718_v14 = vadd.f32 %v6671_v24, %v3681_v38  ;;  %v6319_v25 = vld [vmem:[%s7232_s1 + $0x60] ss:$16 sps:$4 sm:$0xff]   ;;  %v6327_v38 = vld [vmem:[%s7232_s1 + $0x84] ss:$16 sps:$4 sm:$0xff]   ;;  %v6328_v24 = vld [vmem:[%s7232_s1 + $0x88] ss:$16 sps:$4 sm:$0xff]  }
 0xe65   : > { %v7977_v39 = vadd.f32 %v5542_v4, %v3720_v41  ;;  %v6336_v57 = vld [vmem:[%s7232_s1 + $0xac] ss:$16 sps:$4 sm:$0xff]   ;;  %v6331_v41 = vld [vmem:[%s7232_s1 + $0xa0] ss:$16 sps:$4 sm:$0xff]  }
 0xe66   : > { %v7970_v49 = vadd.f32 %v5542_v4, %v3718_v14  ;;  %3742 = vadd.xlane.f32.xlu0 %v7968_v33  ;;  %4083 = vmatpush1.bf16.msra.mxu1 %v6319_v25  ;;  %v6333_v14 = vld [vmem:[%s7232_s1 + $0xa4] ss:$16 sps:$4 sm:$0xff]   ;;  %v5543_v25 = vld [vmem:[%s826_s9] ss:$0 sm:$0xff] }
 0xe67   : > { %4084 = vmatprep.subr.bf16.mxu1 %v6327_v38 }
 0xe68   : > { %3744 = vadd.xlane.f32.xlu1 %v7970_v49 }
 0xe6a   : > { %3746 = vadd.xlane.f32.xlu0 %v7973_v31  ;;  %4085 = vmatpush1.bf16.msra.mxu1 %v6325_v44 }
 0xe6b   : > { %4086 = vmatprep.subr.bf16.mxu1 %v6333_v14  ;;  %v5544_v14 = vld [vmem:[%s829_s28] ss:$0 sm:$0xff] }
 0xe6e   : > { %3748 = vadd.xlane.f32.xlu0 %v7977_v39  ;;  %4087 = vmatpush1.bf16.msra.mxu1 %v6331_v41 }
 0xe9f   : > { %v6111_v12 = vpop.f32.mrb[48].mxu0 }
 0xea0   : > { %v3694_v62 = vpop.f32.mrb[49].mxu0  ;;  %v3723_v61 = vadd.f32 %v6674_v56, %v6111_v12  ;;  %v6334_v12 = vld [vmem:[%s7232_s1 + $0xa8] ss:$16 sps:$4 sm:$0xff]   ;;  %v6348_v56 = vld [vmem:[%s7232_s1 + $0xec] ss:$16 sps:$4 sm:$0xff]  }
 0xea1   : > { %v3721_v0 = vadd.f32 %v6673_v8, %v3694_v62  ;;  %v6112_v54 = vpop.f32.mrb[50].mxu0  ;;  %v6339_v62 = vld [vmem:[%s7232_s1 + $0xc4] ss:$16 sps:$4 sm:$0xff]   ;;  %v6342_v8 = vld [vmem:[%s7232_s1 + $0xcc] ss:$16 sps:$4 sm:$0xff]  }
 0xea2   : > { %v3697_v53 = vpop.f32.mrb[51].mxu0  ;;  %v3724_v55 = vadd.f32 %v6676_v17, %v6112_v54  ;;  %v7985_v35 = vadd.f32 %v5542_v4, %v3723_v61  ;;  %v6340_v54 = vld [vmem:[%s7232_s1 + $0xc8] ss:$16 sps:$4 sm:$0xff]   ;;  %4088 = vmatprep.subr.bf16.mxu1 %v6339_v62  ;;  %v6343_v61 = vld [vmem:[%s7232_s1 + $0xe0] ss:$16 sps:$4 sm:$0xff]  }
 0xea3   : > { %v7980_v63 = vadd.f32 %v5542_v4, %v3721_v0  ;;  %v3722_v29 = vadd.f32 %v6675_v40, %v3697_v53  ;;  %v6337_v0 = vld [vmem:[%s7232_s1 + $0xc0] ss:$16 sps:$4 sm:$0xff]   ;;  %v6345_v53 = vld [vmem:[%s7232_s1 + $0xe4] ss:$16 sps:$4 sm:$0xff]   ;;  %v6346_v40 = vld [vmem:[%s7232_s1 + $0xe8] ss:$16 sps:$4 sm:$0xff]  }
 0xea4   : > { %v7988_v26 = vadd.f32 %v5542_v4, %v3724_v55  ;;  %4089 = vmatpush1.bf16.msra.mxu1 %v6337_v0 }
 0xea5   : > { %v7982_v27 = vadd.f32 %v5542_v4, %v3722_v29  ;;  %3750 = vadd.xlane.f32.xlu0 %v7980_v63  ;;  %v6316_v4 = vld [vmem:[%s7232_s1 + $0x48] ss:$16 sps:$4 sm:$0xff]   ;;  %4090 = vmatprep.subr.bf16.mxu1 %v6345_v53 }
 0xea6   : > { %4154 = vmatpush1.bf16.msra.mxu0 %v6316_v4 }
 0xea7   : > { %3752 = vadd.xlane.f32.xlu1 %v7982_v27  ;;  %4155 = vmatprep.subr.bf16.mxu0 %v6324_v30 }
 0xea8   : > { %4091 = vmatpush1.bf16.msra.mxu1 %v6343_v61 }
 0xea9   : > { %3754 = vadd.xlane.f32.xlu0 %v7985_v35 }
 0xeaa   : > { %4156 = vmatpush1.bf16.msra.mxu0 %v6322_v51 }
 0xeab   : > { %3756 = vadd.xlane.f32.xlu1 %v7988_v26  ;;  %4157 = vmatprep.subr.bf16.mxu0 %v6330_v52 }
 0xeae   : > { %4158 = vmatpush1.bf16.msra.mxu0 %v6328_v24 }
 0xeaf   : > { %4159 = vmatprep.subr.bf16.mxu0 %v6336_v57 }
 0xeb2   : > { %4160 = vmatpush1.bf16.msra.mxu0 %v6334_v12 }
 0xeb3   : > { %4161 = vmatprep.subr.bf16.mxu0 %v6342_v8 }
 0xeb6   : > { %4162 = vmatpush1.bf16.msra.mxu0 %v6340_v54 }
 0xeb7   : > { %4163 = vmatprep.subr.bf16.mxu0 %v6348_v56 }
 0xeba   : > { %4164 = vmatpush1.bf16.msra.mxu0 %v6346_v40 }
 0xef3   : > { %v3743_v20 = vpop.xlane.xlu0 %3742 }
 0xef4   : > { %v3758_v50 = vmul.f32 0.0078125, %v3743_v20 }
 0xef5   : > { %v3745_v21 = vpop.xlane.xlu1 %3744 }
 0xef6   : > { %v8001_v22 = vsub.f32 %v7968_v33, %v3758_v50  ;;  %v3759_v60 = vmul.f32 0.0078125, %v3745_v21 }
 0xef7   : > { %v3747_v58 = vpop.xlane.xlu0 %3746 }
 0xef8   : > { %v8004_v45 = vsub.f32 %v7970_v49, %v3759_v60  ;;  %v3760_v23 = vmul.f32 0.0078125, %v3747_v58  ;;  %v3774_v18 = vmul.f32 %v8001_v22, %v8001_v22 }
 0xefa   : > { %v8009_v6 = vsub.f32 %v7973_v31, %v3760_v23  ;;  %3782 = vadd.xlane.f32.xlu0 %v3774_v18  ;;  %v3775_v34 = vmul.f32 %v8004_v45, %v8004_v45 }
 0xefb   : > { %v3749_v1 = vpop.xlane.xlu0 %3748 }
 0xefc   : > { %v3761_v5 = vmul.f32 0.0078125, %v3749_v1  ;;  %3784 = vadd.xlane.f32.xlu1 %v3775_v34  ;;  %v3776_v9 = vmul.f32 %v8009_v6, %v8009_v6 }
 0xefe   : > { %v8016_v28 = vsub.f32 %v7977_v39, %v3761_v5  ;;  %3786 = vadd.xlane.f32.xlu0 %v3776_v9 }
 0xf00   : > { %v3777_v59 = vmul.f32 %v8016_v28, %v8016_v28 }
 0xf02   : > { %3788 = vadd.xlane.f32.xlu1 %v3777_v59 }
 0xf32   : > { %v3751_v29 = vpop.xlane.xlu0 %3750 }
 0xf33   : > { %v3762_v17 = vmul.f32 0.0078125, %v3751_v29 }
 0xf34   : > { %v3753_v55 = vpop.xlane.xlu1 %3752 }
 0xf35   : > { %v8045_v48 = vsub.f32 %v7980_v63, %v3762_v17  ;;  %v3763_v37 = vmul.f32 0.0078125, %v3753_v55 }
 0xf36   : > { %v3755_v43 = vpop.xlane.xlu0 %3754 }
 0xf37   : > { %v8048_v47 = vsub.f32 %v7982_v27, %v3763_v37  ;;  %v3764_v42 = vmul.f32 0.0078125, %v3755_v43  ;;  %v3778_v46 = vmul.f32 %v8045_v48, %v8045_v48 }
 0xf38   : > { %v3757_v19 = vpop.xlane.xlu1 %3756 }
 0xf39   : > { %v8053_v2 = vsub.f32 %v7985_v35, %v3764_v42  ;;  %v3765_v20 = vmul.f32 0.0078125, %v3757_v19  ;;  %3790 = vadd.xlane.f32.xlu0 %v3778_v46  ;;  %v3779_v50 = vmul.f32 %v8048_v47, %v8048_v47 }
 0xf3b   : > { %v8058_v21 = vsub.f32 %v7988_v26, %v3765_v20  ;;  %3792 = vadd.xlane.f32.xlu1 %v3779_v50  ;;  %v3780_v60 = vmul.f32 %v8053_v2, %v8053_v2 }
 0xf3d   : > { %3794 = vadd.xlane.f32.xlu0 %v3780_v60  ;;  %v3781_v58 = vmul.f32 %v8058_v21, %v8058_v21 }
 0xf3f   : > { %3796 = vadd.xlane.f32.xlu1 %v3781_v58 }
 0xf87   : > { %v3783_v23 = vpop.xlane.xlu0 %3782 }
 0xf88   : > { %v3798_v18 = vmul.f32 0.0078125, %v3783_v23 }
 0xf89   : > { %v3785_v34 = vpop.xlane.xlu1 %3784 }
 0xf8a   : > { %v3806_v1 = vadd.f32 1e-05, %v3798_v18  ;;  %v3799_v5 = vmul.f32 0.0078125, %v3785_v34 }
 0xf8b   : > { %v3787_v9 = vpop.xlane.xlu0 %3786 }
 0xf8c   : > { %6525 = vrsqrt.f32 %v3806_v1  ;;  %v3807_v59 = vadd.f32 1e-05, %v3799_v5  ;;  %v3800_v16 = vmul.f32 0.0078125, %v3787_v9 }
 0xf8e   : > { %6527 = vrsqrt.f32 %v3807_v59  ;;  %v3808_v3 = vadd.f32 1e-05, %v3800_v16 }
 0xf8f   : > { %v3789_v36 = vpop.xlane.xlu1 %3788 }
 0xf90   : > { %6529 = vrsqrt.f32 %v3808_v3  ;;  %v3801_v4 = vmul.f32 0.0078125, %v3789_v36 }
 0xf92   : > { %v3809_v32 = vadd.f32 1e-05, %v3801_v4 }
 0xf94   : > { %6531 = vrsqrt.f32 %v3809_v32 }
 0xf96   : > { %v6526_v30 = vpop.eup %6525 }
 0xf97   : > { %v3822_v51 = vmul.f32 %v6526_v30, %v8001_v22  ;;  %v6350_v30 = vld [vmem:[%s7234_s24 + $0xc0] sm:$0xff]  }
 0xf98   : > { %v6528_v38 = vpop.eup %6527  ;;  %5800 = vmatprep.subr.bf16.mxu0 %v6350_v30 }
 0xf99   : > { %v3823_v52 = vmul.f32 %v6528_v38, %v8004_v45  ;;  %v3836_v44 = vmul.f32 %v5543_v25, %v3822_v51  ;;  %v6351_v51 = vld [vmem:[%s7234_s24] sm:$0xff]   ;;  %v6354_v38 = vld [vmem:[%s7234_s24 + $0xc8] sm:$0xff]  }
 0xf9a   : > { %v6530_v24 = vpop.eup %6529 }
 0xf9b   : > { %v3837_v57 = vmul.f32 %v5543_v25, %v3823_v52  ;;  %v3850_v41 = vadd.f32 %v5544_v14, %v3836_v44  ;;  %v3824_v62 = vmul.f32 %v6530_v24, %v8009_v6  ;;  %v6355_v52 = vld [vmem:[%s7234_s24 + $0x8] sm:$0xff]   ;;  %v6357_v24 = vld [vmem:[%s7234_s24 + $0x50] sm:$0xff]  }
 0xf9c   : > { %v6356_v44 = vld [vmem:[%s7234_s24 + $0x88] sm:$0xff]  }
 0xf9d   : > { %v3851_v12 = vadd.f32 %v5544_v14, %v3837_v57  ;;  %v3838_v22 = vmul.f32 %v5543_v25, %v3824_v62  ;;  %v6359_v57 = vld [vmem:[%s7234_s24 + $0x10] sm:$0xff]   ;;  %v6362_v62 = vld [vmem:[%s7234_s24 + $0xd8] sm:$0xff]  }
 0xf9e   : > { %v6532_v8 = vpop.eup %6531 }
 0xf9f   : > { %v3858_v0 = vpack.c.bf16 %v3851_v12, %v3850_v41  ;;  %v3825_v54 = vmul.f32 %v6532_v8, %v8016_v28  ;;  %v3852_v56 = vadd.f32 %v5544_v14, %v3838_v22  ;;  %v6360_v41 = vld [vmem:[%s7234_s24 + $0x90] sm:$0xff]   ;;  %v6361_v12 = vld [vmem:[%s7234_s24 + $0x58] sm:$0xff]   ;;  %v6366_v22 = vld [vmem:[%s7234_s24 + $0xe0] sm:$0xff]  }
 0xfa0   : > { %v6363_v8 = vld [vmem:[%s7234_s24 + $0x18] sm:$0xff]  }
 0xfa1   : > { %4109 = vmatmul.mubr.bf16.vlgmr.msra.gmra.mrb[88].mxu1 %v3858_v0  ;;  %4182 = vmatmul.mubr.bf16.vlgmr.msra.gmra.mrb[72].mxu0 %v3858_v0  ;;  %v3839_v45 = vmul.f32 %v5543_v25, %v3825_v54  ;;  %v6364_v0 = vld [vmem:[%s7234_s24 + $0x98] sm:$0xff]   ;;  %v6365_v54 = vld [vmem:[%s7234_s24 + $0x60] sm:$0xff]  }
 0xfa2   : > { %4118 = vmatprep.mubr.bf16.mxu1 %v6909_v7  ;;  %4191 = vmatprep.mubr.bf16.mxu0 %v6909_v7 }
 0xfa3   : > { %v3853_v53 = vadd.f32 %v5544_v14, %v3839_v45  ;;  %v6367_v45 = vld [vmem:[%s7234_s24 + $0x20] sm:$0xff]  }
 0xfa5   : > { %v3859_v61 = vpack.c.bf16 %v3853_v53, %v3852_v56  ;;  %v6368_v53 = vld [vmem:[%s7234_s24 + $0xa0] sm:$0xff]   ;;  %v6369_v56 = vld [vmem:[%s7234_s24 + $0x68] sm:$0xff]  }
 0xfa9   : > { %4119 = vmatmul.mubr.bf16.gmra.mrb[92].mxu1 %v3859_v61  ;;  %4192 = vmatmul.mubr.bf16.gmra.mrb[76].mxu0 %v3859_v61  ;;  %v6370_v61 = vld [vmem:[%s7234_s24 + $0xe8] sm:$0xff]  }
 0xfaa   : > { %4128 = vmatprep.mubr.bf16.mxu1 %v6909_v7  ;;  %4201 = vmatprep.mubr.bf16.mxu0 %v6909_v7 }
 0xfc6   : > { %v3791_v6 = vpop.xlane.xlu0 %3790 }
 0xfc7   : > { %v3802_v40 = vmul.f32 0.0078125, %v3791_v6  ;;  %v6371_v6 = vld [vmem:[%s7234_s24 + $0x28] sm:$0xff]  }
 0xfc8   : > { %v3793_v28 = vpop.xlane.xlu1 %3792 }
 0xfc9   : > { %v3810_v29 = vadd.f32 1e-05, %v3802_v40  ;;  %v3803_v17 = vmul.f32 0.0078125, %v3793_v28  ;;  %v6372_v40 = vld [vmem:[%s7234_s24 + $0xa8] sm:$0xff]   ;;  %v6373_v28 = vld [vmem:[%s7234_s24 + $0x70] sm:$0xff]  }
 0xfca   : > { %v3795_v55 = vpop.xlane.xlu0 %3794 }
 0xfcb   : > { %6533 = vrsqrt.f32 %v3810_v29  ;;  %v3811_v37 = vadd.f32 1e-05, %v3803_v17  ;;  %v3804_v43 = vmul.f32 0.0078125, %v3795_v55  ;;  %v6374_v29 = vld [vmem:[%s7234_s24 + $0xf0] sm:$0xff]  }
 0xfcc   : > { %v3797_v42 = vpop.xlane.xlu1 %3796  ;;  %v6375_v17 = vld [vmem:[%s7234_s24 + $0x30] sm:$0xff]  }
 0xfcd   : > { %6535 = vrsqrt.f32 %v3811_v37  ;;  %v3812_v46 = vadd.f32 1e-05, %v3804_v43  ;;  %v3805_v19 = vmul.f32 0.0078125, %v3797_v42  ;;  %v6376_v55 = vld [vmem:[%s7234_s24 + $0xb0] sm:$0xff]   ;;  %v6377_v37 = vld [vmem:[%s7234_s24 + $0x78] sm:$0xff]  }
 0xfce   : > { %v6378_v43 = vld [vmem:[%s7234_s24 + $0xf8] sm:$0xff]  }
 0xfcf   : > { %6537 = vrsqrt.f32 %v3812_v46  ;;  %v3813_v20 = vadd.f32 1e-05, %v3805_v19  ;;  %v6379_v42 = vld [vmem:[%s7234_s24 + $0x38] sm:$0xff]   ;;  %v3894_v19 = vld [vmem:[%s7280_s25] sm:$0xf] }
 0xfd0   : > { %v6380_v46 = vld [vmem:[%s7234_s24 + $0xb8] sm:$0xff]  }
 0xfd1   : > { %6539 = vrsqrt.f32 %v3813_v20  ;;  %v3910_v20 = vsub.s32 3, %v7372_v10 }
 0xfd5   : > { %v6534_v50 = vpop.eup %6533 }
 0xfd6   : > { %v3826_v60 = vmul.f32 %v6534_v50, %v8045_v48  ;;  %v8124_v50 = vrot.slane %v3894_v19, %v1025_v11 }
 0xfd7   : > { %v6536_v58 = vpop.eup %6535 }
 0xfd8   : > { %v3827_v23 = vmul.f32 %v6536_v58, %v8048_v47  ;;  %v3840_v18 = vmul.f32 %v5543_v25, %v3826_v60  ;;  %v8128_v60 = vrot.slane %v3894_v19, %v1033_v15  ;;  %v8132_v58 = vrot.slane %v3894_v19, %v1029_v13 }
 0xfd9   : > { %v6538_v34 = vpop.eup %6537 }
 0xfda   : > { %v3841_v1 = vmul.f32 %v5543_v25, %v3827_v23  ;;  %v3854_v9 = vadd.f32 %v5544_v14, %v3840_v18  ;;  %v3828_v16 = vmul.f32 %v6538_v34, %v8053_v2  ;;  %v8134_v23 = vrot.slane %v3894_v19, %v3910_v20 }
 0xfdb   : > { %v6540_v5 = vpop.eup %6539 }
 0xfdc   : > { %v3855_v59 = vadd.f32 %v5544_v14, %v3841_v1  ;;  %v3829_v3 = vmul.f32 %v6540_v5, %v8058_v21  ;;  %v3842_v48 = vmul.f32 %v5543_v25, %v3828_v16  ;;  %v6349_v21 = vld [vmem:[%s7234_s24 + $0x40] sm:$0xff]  }
 0xfdd   : > { %5760 = vmatprep.subr.bf16.mxu1 %v6349_v21 }
 0xfde   : > { %v3860_v36 = vpack.c.bf16 %v3855_v59, %v3854_v9  ;;  %v3843_v4 = vmul.f32 %v5543_v25, %v3829_v3  ;;  %v3856_v32 = vadd.f32 %v5544_v14, %v3842_v48  ;;  %v6352_v25 = vld [vmem:[%s7234_s24 + $0x80] sm:$0xff]   ;;  %5761 = vmatpush3.bf16.msra.mxu1 %v6351_v51 }
 0xfdf   : > { %5801 = vmatpush3.bf16.msra.mxu0 %v6352_v25 }
 0xfe0   : > { %4129 = vmatmul.mubr.bf16.gmra.mrb[96].mxu1 %v3860_v36  ;;  %4202 = vmatmul.mubr.bf16.gmra.mrb[80].mxu0 %v3860_v36  ;;  %v3857_v47 = vadd.f32 %v5544_v14, %v3843_v4  ;;  %v6358_v14 = vld [vmem:[%s7234_s24 + $0xd0] sm:$0xff]  }
 0xfe1   : > { %4138 = vmatprep.mubr.bf16.mxu1 %v6909_v7  ;;  %4211 = vmatprep.mubr.bf16.mxu0 %v6909_v7  ;;  %v6353_v7 = vld [vmem:[%s7234_s24 + $0x48] sm:$0xff]  }
 0xfe2   : > { %v3861_v2 = vpack.c.bf16 %v3857_v47, %v3856_v32  ;;  %5762 = vmatprep.subr.bf16.mxu1 %v6353_v7  ;;  %5802 = vmatprep.subr.bf16.mxu0 %v6354_v38 }
 0xfe3   : > { %5763 = vmatpush3.bf16.msra.mxu1 %v6355_v52  ;;  %5803 = vmatpush3.bf16.msra.mxu0 %v6356_v44 }
 0xfe4   : > { %5764 = vmatprep.subr.bf16.mxu1 %v6357_v24  ;;  %5804 = vmatprep.subr.bf16.mxu0 %v6358_v14 }
 0xfe7   : > { %5765 = vmatpush3.bf16.msra.mxu1 %v6359_v57  ;;  %5805 = vmatpush3.bf16.msra.mxu0 %v6360_v41 }
 0xfe8   : > { %4139 = vmatmul.mubr.bf16.gmra.mrb[100].mxu1 %v3861_v2  ;;  %4212 = vmatmul.mubr.bf16.gmra.mrb[84].mxu0 %v3861_v2 }
 0xfe9   : > { %5766 = vmatprep.subr.bf16.mxu1 %v6361_v12  ;;  %5806 = vmatprep.subr.bf16.mxu0 %v6362_v62 }
 0xfeb   : > { %5767 = vmatpush3.bf16.msra.mxu1 %v6363_v8  ;;  %5807 = vmatpush3.bf16.msra.mxu0 %v6364_v0 }
 0xfec   : > { %5768 = vmatprep.subr.bf16.mxu1 %v6365_v54  ;;  %5808 = vmatprep.subr.bf16.mxu0 %v6366_v22 }
 0xfef   : > { %5769 = vmatpush3.bf16.msra.mxu1 %v6367_v45  ;;  %5809 = vmatpush3.bf16.msra.mxu0 %v6368_v53 }
 0xff0   : > { %5770 = vmatprep.subr.bf16.mxu1 %v6369_v56  ;;  %5810 = vmatprep.subr.bf16.mxu0 %v6370_v61 }
 0xff3   : > { %5771 = vmatpush3.bf16.msra.mxu1 %v6371_v6  ;;  %5811 = vmatpush3.bf16.msra.mxu0 %v6372_v40 }
 0xff4   : > { %5772 = vmatprep.subr.bf16.mxu1 %v6373_v28  ;;  %5812 = vmatprep.subr.bf16.mxu0 %v6374_v29 }
 0xff7   : > { %5773 = vmatpush3.bf16.msra.mxu1 %v6375_v17  ;;  %5813 = vmatpush3.bf16.msra.mxu0 %v6376_v55 }
 0xff8   : > { %5774 = vmatprep.subr.bf16.mxu1 %v6377_v37  ;;  %5814 = vmatprep.subr.bf16.mxu0 %v6378_v43 }
 0xffb   : > { %5775 = vmatpush3.bf16.msra.mxu1 %v6379_v42  ;;  %5815 = vmatpush3.bf16.msra.mxu0 %v6380_v46 }
0x1074   : > { %v4110_v18 = vpop.f32.mrb[88].mxu1  ;;  %v4183_v34 = vpop.f32.mrb[72].mxu0 }
0x1075   : > { %v8137_v1 = vadd.f32 %v4110_v18, %v8124_v50  ;;  %v8140_v5 = vadd.f32 %v4183_v34, %v8128_v60  ;;  %v4112_v11 = vpop.f32.mrb[89].mxu1  ;;  %v4185_v9 = vpop.f32.mrb[73].mxu0 }
0x1076   : > { %v8143_v59 = vadd.f32 %v4112_v11, %v8132_v58  ;;  %v8146_v15 = vadd.f32 %v4185_v9, %v8134_v23  ;;  %v4114_v10 = vpop.f32.mrb[90].mxu1  ;;  %v4187_v13 = vpop.f32.mrb[74].mxu0 }
0x1077   : > { %v5577_v16 = vmul.f32 -1.702, %v8137_v1  ;;  %v5579_v3 = vmul.f32 -1.702, %v8140_v5  ;;  %v8151_v36 = vadd.f32 %v4114_v10, %v8124_v50  ;;  %v8154_v4 = vadd.f32 %v4187_v13, %v8128_v60  ;;  %v4116_v48 = vpop.f32.mrb[91].mxu1  ;;  %v4189_v47 = vpop.f32.mrb[75].mxu0 }
0x1078   : > { %v5578_v32 = vmul.f32 -1.702, %v8143_v59  ;;  %v5580_v2 = vmul.f32 -1.702, %v8146_v15  ;;  %v8159_v21 = vadd.f32 %v4116_v48, %v8132_v58  ;;  %v8162_v30 = vadd.f32 %v4189_v47, %v8134_v23 }
0x1079   : > { %v4286_v51 = vmul.f32 1.442695, %v5577_v16  ;;  %v4290_v25 = vmul.f32 1.442695, %v5579_v3  ;;  %v5581_v7 = vmul.f32 -1.702, %v8151_v36 }
0x107a   : > { %v4288_v38 = vmul.f32 1.442695, %v5578_v32  ;;  %v4292_v52 = vmul.f32 1.442695, %v5580_v2  ;;  %v5583_v44 = vmul.f32 -1.702, %v8154_v4 }
0x107b   : > { %6541 = vpow2.f32 %v4286_v51  ;;  %v4294_v24 = vmul.f32 1.442695, %v5581_v7  ;;  %v5582_v14 = vmul.f32 -1.702, %v8159_v21  ;;  %v5584_v57 = vmul.f32 -1.702, %v8162_v30 }
0x107c   : > { %6543 = vpow2.f32 %v4290_v25  ;;  %v4298_v41 = vmul.f32 1.442695, %v5583_v44  ;;  %v4120_v12 = vpop.f32.mrb[92].mxu1  ;;  %v4193_v62 = vpop.f32.mrb[76].mxu0 }
0x107d   : > { %6545 = vpow2.f32 %v4288_v38  ;;  %v4296_v8 = vmul.f32 1.442695, %v5582_v14  ;;  %v8169_v0 = vadd.f32 %v4120_v12, %v8124_v50  ;;  %v4122_v54 = vpop.f32.mrb[93].mxu1  ;;  %v4195_v22 = vpop.f32.mrb[77].mxu0  ;;  %v4300_v45 = vmul.f32 1.442695, %v5584_v57 }
0x107e   : > { %6547 = vpow2.f32 %v4292_v52  ;;  %v8172_v53 = vadd.f32 %v4193_v62, %v8128_v60  ;;  %v8175_v56 = vadd.f32 %v4122_v54, %v8132_v58  ;;  %v4124_v61 = vpop.f32.mrb[94].mxu1  ;;  %v4197_v6 = vpop.f32.mrb[78].mxu0  ;;  %v8185_v18 = vadd.f32 %v4195_v22, %v8134_v23 }
0x107f   : > { %6549 = vpow2.f32 %v4294_v24  ;;  %v5585_v40 = vmul.f32 -1.702, %v8169_v0  ;;  %v8179_v28 = vadd.f32 %v4124_v61, %v8124_v50  ;;  %v4126_v29 = vpop.f32.mrb[95].mxu1  ;;  %v4199_v17 = vpop.f32.mrb[79].mxu0  ;;  %v8189_v2 = vadd.f32 %v4197_v6, %v8128_v60 }
0x1080   : > { %6551 = vpow2.f32 %v4298_v41  ;;  %v5587_v55 = vmul.f32 -1.702, %v8172_v53  ;;  %v5586_v37 = vmul.f32 -1.702, %v8175_v56  ;;  %v5588_v48 = vmul.f32 -1.702, %v8185_v18 }
0x1081   : > { %6553 = vpow2.f32 %v4296_v8  ;;  %v4302_v43 = vmul.f32 1.442695, %v5585_v40  ;;  %v5589_v42 = vmul.f32 -1.702, %v8179_v28  ;;  %v8192_v7 = vadd.f32 %v4126_v29, %v8132_v58 }
0x1082   : > { %6555 = vpow2.f32 %v4300_v45  ;;  %v4306_v46 = vmul.f32 1.442695, %v5587_v55  ;;  %v4304_v19 = vmul.f32 1.442695, %v5586_v37  ;;  %v8195_v44 = vadd.f32 %v4199_v17, %v8134_v23 }
0x1083   : > { %6557 = vpow2.f32 %v4302_v43  ;;  %v4310_v20 = vmul.f32 1.442695, %v5589_v42  ;;  %v4308_v57 = vmul.f32 1.442695, %v5588_v48  ;;  %v5591_v62 = vmul.f32 -1.702, %v8189_v2 }
0x1084   : > { %6559 = vpow2.f32 %v4306_v46  ;;  %v5590_v54 = vmul.f32 -1.702, %v8192_v7  ;;  %v5592_v45 = vmul.f32 -1.702, %v8195_v44 }
0x1085   : > { %v6542_v34 = vpop.eup %6541  ;;  %6561 = vpow2.f32 %v4304_v19  ;;  %v4314_v40 = vmul.f32 1.442695, %v5591_v62 }
0x1086   : > { %v6544_v11 = vpop.eup %6543  ;;  %v4350_v9 = vadd.f32 1.0, %v6542_v34  ;;  %6563 = vpow2.f32 %v4310_v20  ;;  %v4312_v55 = vmul.f32 1.442695, %v5590_v54  ;;  %v4316_v43 = vmul.f32 1.442695, %v5592_v45 }
0x1087   : > { %v6546_v10 = vpop.eup %6545  ;;  %v4352_v13 = vadd.f32 1.0, %v6544_v11 }
0x1088   : > { %v6548_v16 = vpop.eup %6547  ;;  %6565 = vrcp.f32 %v4350_v9  ;;  %v4351_v3 = vadd.f32 1.0, %v6546_v10 }
0x1089   : > { %v6550_v47 = vpop.eup %6549  ;;  %6567 = vrcp.f32 %v4352_v13  ;;  %v4353_v32 = vadd.f32 1.0, %v6548_v16 }
0x108a   : > { %v6552_v51 = vpop.eup %6551  ;;  %6569 = vrcp.f32 %v4351_v3  ;;  %v4354_v25 = vadd.f32 1.0, %v6550_v47 }
0x108b   : > { %v6554_v38 = vpop.eup %6553  ;;  %6571 = vrcp.f32 %v4353_v32  ;;  %v4356_v52 = vadd.f32 1.0, %v6552_v51 }
0x108c   : > { %v6556_v24 = vpop.eup %6555  ;;  %6573 = vrcp.f32 %v4354_v25  ;;  %v4355_v14 = vadd.f32 1.0, %v6554_v38 }
0x108d   : > { %v6558_v41 = vpop.eup %6557  ;;  %6575 = vrcp.f32 %v4356_v52  ;;  %v4357_v12 = vadd.f32 1.0, %v6556_v24 }
0x108e   : > { %6577 = vrcp.f32 %v4355_v14  ;;  %v4358_v8 = vadd.f32 1.0, %v6558_v41  ;;  %v6560_v22 = vpop.eup %6559 }
0x108f   : > { %6579 = vrcp.f32 %v4357_v12  ;;  %v6562_v61 = vpop.eup %6561  ;;  %v4360_v38 = vadd.f32 1.0, %v6560_v22 }
0x1090   : > { %6581 = vpow2.f32 %v4308_v57  ;;  %v6564_v6 = vpop.eup %6563  ;;  %v4359_v24 = vadd.f32 1.0, %v6562_v61 }
0x1091   : > { %6583 = vrcp.f32 %v4358_v8  ;;  %v4362_v17 = vadd.f32 1.0, %v6564_v6 }
0x1092   : > { %v6566_v29 = vpop.eup %6565 }
0x1093   : > { %v6568_v37 = vpop.eup %6567  ;;  %6585 = vrcp.f32 %v4362_v17  ;;  %v4446_v34 = vmul.f32 %v6566_v29, %v8137_v1 }
0x1094   : > { %v6570_v42 = vpop.eup %6569  ;;  %6587 = vpow2.f32 %v4314_v40  ;;  %v4448_v10 = vmul.f32 %v6568_v37, %v8140_v5 }
0x1095   : > { %v6572_v46 = vpop.eup %6571  ;;  %6589 = vpow2.f32 %v4312_v55  ;;  %v4447_v3 = vmul.f32 %v6570_v42, %v8143_v59 }
0x1096   : > { %v6574_v19 = vpop.eup %6573  ;;  %6591 = vpow2.f32 %v4316_v43  ;;  %v4449_v51 = vmul.f32 %v6572_v46, %v8146_v15 }
0x1097   : > { %v6576_v20 = vpop.eup %6575  ;;  %v4450_v11 = vmul.f32 %v6574_v19, %v8151_v36  ;;  %6593 = vrcp.f32 %v4360_v38 }
0x1098   : > { %v6578_v9 = vpop.eup %6577  ;;  %v4452_v13 = vmul.f32 %v6576_v20, %v8154_v4  ;;  %6595 = vrcp.f32 %v4359_v24 }
0x1099   : > { %v6580_v16 = vpop.eup %6579  ;;  %v4478_v48 = vpack.c.bf16 %v4450_v11, %v4446_v34  ;;  %v4451_v47 = vmul.f32 %v6578_v9, %v8159_v21 }
0x109a   : > { %v6582_v32 = vpop.eup %6581  ;;  %v4480_v25 = vpack.c.bf16 %v4452_v13, %v4448_v10  ;;  %v4453_v1 = vmul.f32 %v6580_v16, %v8162_v30 }
0x109b   : > { %v4479_v36 = vpack.c.bf16 %v4451_v47, %v4447_v3  ;;  %v6584_v52 = vpop.eup %6583  ;;  %v4361_v5 = vadd.f32 1.0, %v6582_v32 }
0x109c   : > { %v4481_v14 = vpack.c.bf16 %v4453_v1, %v4449_v51  ;;  %v4454_v57 = vmul.f32 %v6584_v52, %v8169_v0 }
0x109d   : > { %4782 = vmatprep.mubr.bf16.mxu1 %v4479_v36  ;;  %v6586_v4 = vpop.eup %6585  ;;  %6597 = vrcp.f32 %v4361_v5 }
0x109e   : > { %4847 = vmatprep.mubr.bf16.mxu0 %v4481_v14  ;;  %4783 = vmatmul.mubr.bf16.vlgmr.msra.gmra.mrb[104].mxu1 %v4478_v48  ;;  %v6588_v59 = vpop.eup %6587  ;;  %v4458_v21 = vmul.f32 %v6586_v4, %v8179_v28 }
0x109f   : > { %4848 = vmatmul.mubr.bf16.vlgmr.msra.gmra.mrb[88].mxu0 %v4480_v25  ;;  %v6590_v15 = vpop.eup %6589  ;;  %v4364_v30 = vadd.f32 1.0, %v6588_v59 }
0x10a0   : > { %v6592_v41 = vpop.eup %6591  ;;  %v4363_v12 = vadd.f32 1.0, %v6590_v15  ;;  %v4482_v62 = vpack.c.bf16 %v4458_v21, %v4454_v57 }
0x10a1   : > { %6599 = vrcp.f32 %v4364_v30  ;;  %v4365_v8 = vadd.f32 1.0, %v6592_v41  ;;  %v6594_v54 = vpop.eup %6593 }
0x10a2   : > { %6601 = vrcp.f32 %v4363_v12  ;;  %v6596_v22 = vpop.eup %6595  ;;  %v4456_v6 = vmul.f32 %v6594_v54, %v8172_v53 }
0x10a3   : > { %6603 = vrcp.f32 %v4365_v8  ;;  %v4455_v29 = vmul.f32 %v6596_v22, %v8175_v56 }
0x10a7   : > { %v6598_v45 = vpop.eup %6597 }
0x10a8   : > { %v4457_v55 = vmul.f32 %v6598_v45, %v8185_v18 }
0x10ab   : > { %v6600_v61 = vpop.eup %6599 }
0x10ac   : > { %v6602_v0 = vpop.eup %6601  ;;  %v4460_v28 = vmul.f32 %v6600_v61, %v8189_v2 }
0x10ad   : > { %v6604_v40 = vpop.eup %6603  ;;  %v4459_v17 = vmul.f32 %v6602_v0, %v8192_v7 }
0x10ae   : > { %v4461_v37 = vmul.f32 %v6604_v40, %v8195_v44  ;;  %v4484_v43 = vpack.c.bf16 %v4460_v28, %v4456_v6 }
0x10af   : > { %v4483_v42 = vpack.c.bf16 %v4459_v17, %v4455_v29 }
0x10b0   : > { %v4485_v46 = vpack.c.bf16 %v4461_v37, %v4457_v55 }
0x10b1   : > { %4790 = vmatprep.mubr.bf16.mxu1 %v4483_v42 }
0x10b2   : > { %4855 = vmatprep.mubr.bf16.mxu0 %v4485_v46  ;;  %4791 = vmatmul.mubr.bf16.gmra.mrb[108].mxu1 %v4482_v62 }
0x10b3   : > { %v4130_v19 = vpop.f32.mrb[96].mxu1  ;;  %v4203_v20 = vpop.f32.mrb[80].mxu0  ;;  %4856 = vmatmul.mubr.bf16.gmra.mrb[92].mxu0 %v4484_v43 }
0x10b4   : > { %v8217_v53 = vadd.f32 %v4130_v19, %v8124_v50  ;;  %v8220_v56 = vadd.f32 %v4203_v20, %v8128_v60  ;;  %v4132_v2 = vpop.f32.mrb[97].mxu1  ;;  %v4205_v7 = vpop.f32.mrb[81].mxu0 }
0x10b5   : > { %v8223_v18 = vadd.f32 %v4132_v2, %v8132_v58  ;;  %v8226_v44 = vadd.f32 %v4205_v7, %v8134_v23  ;;  %v4134_v34 = vpop.f32.mrb[98].mxu1  ;;  %v4207_v11 = vpop.f32.mrb[82].mxu0 }
0x10b6   : > { %v5593_v9 = vmul.f32 -1.702, %v8217_v53  ;;  %v5595_v10 = vmul.f32 -1.702, %v8220_v56  ;;  %v8231_v13 = vadd.f32 %v4134_v34, %v8124_v50  ;;  %v8234_v16 = vadd.f32 %v4207_v11, %v8128_v60  ;;  %v4136_v3 = vpop.f32.mrb[99].mxu1  ;;  %v4209_v48 = vpop.f32.mrb[83].mxu0 }
0x10b7   : > { %v5594_v47 = vmul.f32 -1.702, %v8223_v18  ;;  %v5596_v32 = vmul.f32 -1.702, %v8226_v44  ;;  %v8239_v51 = vadd.f32 %v4136_v3, %v8132_v58  ;;  %v8242_v25 = vadd.f32 %v4209_v48, %v8134_v23 }
0x10b8   : > { %v4318_v1 = vmul.f32 1.442695, %v5593_v9  ;;  %v4322_v38 = vmul.f32 1.442695, %v5595_v10  ;;  %v5597_v36 = vmul.f32 -1.702, %v8231_v13 }
0x10b9   : > { %v4320_v52 = vmul.f32 1.442695, %v5594_v47  ;;  %v4324_v24 = vmul.f32 1.442695, %v5596_v32  ;;  %v5599_v14 = vmul.f32 -1.702, %v8234_v16 }
0x10ba   : > { %6605 = vpow2.f32 %v4318_v1  ;;  %v4326_v5 = vmul.f32 1.442695, %v5597_v36  ;;  %v5598_v4 = vmul.f32 -1.702, %v8239_v51  ;;  %v5600_v59 = vmul.f32 -1.702, %v8242_v25 }
0x10bb   : > { %6607 = vpow2.f32 %v4322_v38  ;;  %v4330_v57 = vmul.f32 1.442695, %v5599_v14  ;;  %v4140_v21 = vpop.f32.mrb[100].mxu1  ;;  %v4213_v15 = vpop.f32.mrb[84].mxu0 }
0x10bc   : > { %6609 = vpow2.f32 %v4320_v52  ;;  %v4328_v30 = vmul.f32 1.442695, %v5598_v4  ;;  %v8249_v41 = vadd.f32 %v4140_v21, %v8124_v50  ;;  %v4142_v12 = vpop.f32.mrb[101].mxu1  ;;  %v4215_v62 = vpop.f32.mrb[85].mxu0  ;;  %v4332_v8 = vmul.f32 1.442695, %v5600_v59 }
0x10bd   : > { %6611 = vpow2.f32 %v4324_v24  ;;  %v8252_v54 = vadd.f32 %v4213_v15, %v8128_v60  ;;  %v8255_v22 = vadd.f32 %v4142_v12, %v8132_v58  ;;  %v4144_v45 = vpop.f32.mrb[102].mxu1  ;;  %v4217_v61 = vpop.f32.mrb[86].mxu0  ;;  %v8265_v19 = vadd.f32 %v4215_v62, %v8134_v23 }
0x10be   : > { %6613 = vpow2.f32 %v4326_v5  ;;  %v5601_v0 = vmul.f32 -1.702, %v8249_v41  ;;  %v8259_v6 = vadd.f32 %v4144_v45, %v8124_v50  ;;  %v4146_v28 = vpop.f32.mrb[103].mxu1  ;;  %v4219_v40 = vpop.f32.mrb[87].mxu0  ;;  %v8269_v47 = vadd.f32 %v4217_v61, %v8128_v60 }
0x10bf   : > { %6615 = vpow2.f32 %v4330_v57  ;;  %v5603_v29 = vmul.f32 -1.702, %v8252_v54  ;;  %v5602_v17 = vmul.f32 -1.702, %v8255_v22  ;;  %v5604_v10 = vmul.f32 -1.702, %v8265_v19 }
0x10c0   : > { %6617 = vpow2.f32 %v4328_v30  ;;  %v4334_v55 = vmul.f32 1.442695, %v5601_v0  ;;  %v5605_v37 = vmul.f32 -1.702, %v8259_v6  ;;  %v8272_v38 = vadd.f32 %v4146_v28, %v8132_v58 }
0x10c1   : > { %6619 = vpow2.f32 %v4332_v8  ;;  %v4338_v43 = vmul.f32 1.442695, %v5603_v29  ;;  %v4336_v42 = vmul.f32 1.442695, %v5602_v17  ;;  %v8275_v24 = vadd.f32 %v4219_v40, %v8134_v23 }
0x10c2   : > { %6621 = vpow2.f32 %v4334_v55  ;;  %v4342_v46 = vmul.f32 1.442695, %v5605_v37  ;;  %v4340_v4 = vmul.f32 1.442695, %v5604_v10  ;;  %v5607_v57 = vmul.f32 -1.702, %v8269_v47 }
0x10c3   : > { %6623 = vpow2.f32 %v4338_v43  ;;  %v5606_v58 = vmul.f32 -1.702, %v8272_v38  ;;  %v5608_v30 = vmul.f32 -1.702, %v8275_v24 }
0x10c4   : > { %v6606_v50 = vpop.eup %6605  ;;  %6625 = vpow2.f32 %v4336_v42  ;;  %v4346_v62 = vmul.f32 1.442695, %v5607_v57 }
0x10c5   : > { %v6608_v20 = vpop.eup %6607  ;;  %v4366_v2 = vadd.f32 1.0, %v6606_v50  ;;  %6627 = vpow2.f32 %v4342_v46  ;;  %v4344_v61 = vmul.f32 1.442695, %v5606_v58  ;;  %v4348_v28 = vmul.f32 1.442695, %v5608_v30 }
0x10c6   : > { %v6610_v7 = vpop.eup %6609  ;;  %v4368_v34 = vadd.f32 1.0, %v6608_v20 }
0x10c7   : > { %v6612_v11 = vpop.eup %6611  ;;  %6629 = vrcp.f32 %v4366_v2  ;;  %v4367_v9 = vadd.f32 1.0, %v6610_v7 }
0x10c8   : > { %v6614_v3 = vpop.eup %6613  ;;  %6631 = vrcp.f32 %v4368_v34  ;;  %v4369_v48 = vadd.f32 1.0, %v6612_v11 }
0x10c9   : > { %v6616_v32 = vpop.eup %6615  ;;  %6633 = vrcp.f32 %v4367_v9  ;;  %v4370_v1 = vadd.f32 1.0, %v6614_v3 }
0x10ca   : > { %v6618_v36 = vpop.eup %6617  ;;  %6635 = vrcp.f32 %v4369_v48  ;;  %v4372_v52 = vadd.f32 1.0, %v6616_v32 }
0x10cb   : > { %v6620_v14 = vpop.eup %6619  ;;  %6637 = vrcp.f32 %v4370_v1  ;;  %v4371_v5 = vadd.f32 1.0, %v6618_v36 }
0x10cc   : > { %v6622_v59 = vpop.eup %6621  ;;  %6639 = vrcp.f32 %v4372_v52  ;;  %v4373_v60 = vadd.f32 1.0, %v6620_v14 }
0x10cd   : > { %6641 = vrcp.f32 %v4371_v5  ;;  %v4374_v21 = vadd.f32 1.0, %v6622_v59  ;;  %v6624_v15 = vpop.eup %6623 }
0x10ce   : > { %6643 = vrcp.f32 %v4373_v60  ;;  %v6626_v12 = vpop.eup %6625  ;;  %v4376_v3 = vadd.f32 1.0, %v6624_v15 }
0x10cf   : > { %6645 = vpow2.f32 %v4340_v4  ;;  %v6628_v23 = vpop.eup %6627  ;;  %v4375_v32 = vadd.f32 1.0, %v6626_v12 }
0x10d0   : > { %6647 = vrcp.f32 %v4374_v21  ;;  %v4378_v45 = vadd.f32 1.0, %v6628_v23 }
0x10d1   : > { %v6630_v8 = vpop.eup %6629 }
0x10d2   : > { %v6632_v0 = vpop.eup %6631  ;;  %6649 = vrcp.f32 %v4378_v45  ;;  %v4462_v37 = vmul.f32 %v6630_v8, %v8217_v53 }
0x10d3   : > { %v6634_v40 = vpop.eup %6633  ;;  %6651 = vpow2.f32 %v4346_v62  ;;  %v4464_v46 = vmul.f32 %v6632_v0, %v8220_v56 }
0x10d4   : > { %v6636_v29 = vpop.eup %6635  ;;  %6653 = vpow2.f32 %v4344_v61  ;;  %v4463_v2 = vmul.f32 %v6634_v40, %v8223_v18 }
0x10d5   : > { %v6638_v17 = vpop.eup %6637  ;;  %6655 = vpow2.f32 %v4348_v28  ;;  %v4465_v9 = vmul.f32 %v6636_v29, %v8226_v44 }
0x10d6   : > { %v6640_v55 = vpop.eup %6639  ;;  %v4466_v43 = vmul.f32 %v6638_v17, %v8231_v13  ;;  %6657 = vrcp.f32 %v4376_v3 }
0x10d7   : > { %v6642_v42 = vpop.eup %6641  ;;  %v4468_v50 = vmul.f32 %v6640_v55, %v8234_v16  ;;  %6659 = vrcp.f32 %v4375_v32 }
0x10d8   : > { %v6644_v20 = vpop.eup %6643  ;;  %v4467_v7 = vmul.f32 %v6642_v42, %v8239_v51  ;;  %v4486_v34 = vpack.c.bf16 %v4466_v43, %v4462_v37  ;;  %v8301_v43 = vld [vmem:[%s836_s0] ss:$0 sm:$0xff] }
0x10d9   : > { %v6646_v11 = vpop.eup %6645  ;;  %v4469_v10 = vmul.f32 %v6644_v20, %v8242_v25  ;;  %v4488_v53 = vpack.c.bf16 %v4468_v50, %v4464_v46 }
0x10da   : > { %v4487_v13 = vpack.c.bf16 %v4467_v7, %v4463_v2  ;;  %v6648_v48 = vpop.eup %6647  ;;  %v4377_v56 = vadd.f32 1.0, %v6646_v11 }
0x10db   : > { %v4489_v1 = vpack.c.bf16 %v4469_v10, %v4465_v9  ;;  %v4470_v51 = vmul.f32 %v6648_v48, %v8249_v41 }
0x10dc   : > { %4798 = vmatprep.mubr.bf16.mxu1 %v4487_v13  ;;  %v6650_v16 = vpop.eup %6649  ;;  %6661 = vrcp.f32 %v4377_v56 }
0x10dd   : > { %4863 = vmatprep.mubr.bf16.mxu0 %v4489_v1  ;;  %4799 = vmatmul.mubr.bf16.gmra.mrb[112].mxu1 %v4486_v34  ;;  %v6652_v18 = vpop.eup %6651  ;;  %v4474_v36 = vmul.f32 %v6650_v16, %v8259_v6 }
0x10de   : > { %4864 = vmatmul.mubr.bf16.gmra.mrb[96].mxu0 %v4488_v53  ;;  %v6654_v44 = vpop.eup %6653  ;;  %v4380_v25 = vadd.f32 1.0, %v6652_v18 }
0x10df   : > { %v6656_v52 = vpop.eup %6655  ;;  %v4379_v14 = vadd.f32 1.0, %v6654_v44  ;;  %v4490_v5 = vpack.c.bf16 %v4474_v36, %v4470_v51 }
0x10e0   : > { %6663 = vrcp.f32 %v4380_v25  ;;  %v4381_v4 = vadd.f32 1.0, %v6656_v52  ;;  %v6658_v59 = vpop.eup %6657 }
0x10e1   : > { %6665 = vrcp.f32 %v4379_v14  ;;  %v6660_v60 = vpop.eup %6659  ;;  %v4472_v58 = vmul.f32 %v6658_v59, %v8252_v54 }
0x10e2   : > { %6667 = vrcp.f32 %v4381_v4  ;;  %v4471_v30 = vmul.f32 %v6660_v60, %v8255_v22 }
0x10e6   : > { %v6662_v57 = vpop.eup %6661 }
0x10e7   : > { %v4473_v23 = vmul.f32 %v6662_v57, %v8265_v19 }
0x10ea   : > { %v6664_v21 = vpop.eup %6663 }
0x10eb   : > { %v6666_v41 = vpop.eup %6665  ;;  %v4476_v6 = vmul.f32 %v6664_v21, %v8269_v47 }
0x10ec   : > { %v6668_v15 = vpop.eup %6667  ;;  %v4475_v12 = vmul.f32 %v6666_v41, %v8272_v38 }
0x10ed   : > { %v4477_v62 = vmul.f32 %v6668_v15, %v8275_v24  ;;  %v4492_v8 = vpack.c.bf16 %v4476_v6, %v4472_v58 }
0x10ee   : > { %v4491_v45 = vpack.c.bf16 %v4475_v12, %v4471_v30 }
0x10ef   : > { %v4493_v61 = vpack.c.bf16 %v4477_v62, %v4473_v23 }
0x10f0   : > { %4806 = vmatprep.mubr.bf16.mxu1 %v4491_v45 }
0x10f1   : > { %4871 = vmatprep.mubr.bf16.mxu0 %v4493_v61  ;;  %4807 = vmatmul.mubr.bf16.gmra.mrb[116].mxu1 %v4490_v5 }
0x10f2   : > { %4872 = vmatmul.mubr.bf16.gmra.mrb[100].mxu0 %v4492_v8 }
0x1171   : > { %v5776_v54 = vpop.f32.mrb[104].mxu1 }
0x1172   : > { %v5816_v0 = vpop.f32.mrb[88].mxu0  ;;  %v5777_v47 = vpop.f32.mrb[105].mxu1 }
0x1173   : > { %v5778_v28 = vadd.f32 %v5777_v47, %v5776_v54  ;;  %v5817_v40 = vpop.f32.mrb[89].mxu0  ;;  %v5779_v22 = vpop.f32.mrb[106].mxu1 }
0x1174   : > { %v5818_v29 = vadd.f32 %v5817_v40, %v5816_v0  ;;  %v5819_v38 = vpop.f32.mrb[90].mxu0  ;;  %v5780_v17 = vpop.f32.mrb[107].mxu1 }
0x1175   : > { %v5781_v19 = vadd.f32 %v5780_v17, %v5779_v22  ;;  %v5820_v55 = vpop.f32.mrb[91].mxu0 }
0x1176   : > { %v4850_v24 = vadd.f32 %v5818_v29, %v5778_v28  ;;  %v5821_v37 = vadd.f32 %v5820_v55, %v5819_v38 }
0x1178   : > { %v4880_v42 = vadd.f32 %v4850_v24, %v7968_v33  ;;  %v4853_v46 = vadd.f32 %v5821_v37, %v5781_v19  ;;  %v4917_v24 = vld [vmem:[%s8533_s5 + $0x10] sm:$0xff] (!%p5642_p4)  ;;  %v6915_v37 = vmov (!%p5642_p4), 0  }
0x1179   : > { %6678 = vset.pattern.permute.xlu1 (!%p5642_p4), %v6915_v37  ;;  %6677 = vset.pattern.permute.xlu0 (!%p5642_p4), %v6915_v37 }
0x117a   : > { %v8305_v50 = vadd.f32 %v8301_v43, %v4880_v42  ;;  %v4881_v20 = vadd.f32 %v4853_v46, %v7970_v49  ;;  %4935 = vperm.xlu1 (!%p5642_p4), %6678, %v4917_v24   ;;  %v4920_v42 = vld [vmem:[%s8533_s5 + $0x28] sm:$0xff] (!%p5642_p4)  ;;  %v4919_v46 = vld [vmem:[%s8533_s5 + $0x20] sm:$0xff] (!%p5642_p4) }
0x117c   : > { %4903 = vst [vmem:[#allocation2] sm:$0xff] %v8305_v50  ;;  %v8310_v2 = vadd.f32 %v8301_v43, %v4881_v20  ;;  %v4922_v20 = vld [vmem:[%s8533_s5 + $0x38] sm:$0xff] (!%p5642_p4) }
0x117e   : > { %4904 = vst [vmem:[#allocation2 + $0x8] sm:$0xff] %v8310_v2 }
0x1185   : > { %v5782_v7 = vpop.f32.mrb[108].mxu1 }
0x1186   : > { %v5822_v34 = vpop.f32.mrb[92].mxu0  ;;  %v5783_v11 = vpop.f32.mrb[109].mxu1 }
0x1187   : > { %v5784_v9 = vadd.f32 %v5783_v11, %v5782_v7  ;;  %v5823_v10 = vpop.f32.mrb[93].mxu0  ;;  %v5785_v53 = vpop.f32.mrb[110].mxu1  ;;  %v4921_v7 = vld [vmem:[%s8533_s5 + $0x30] sm:$0xff] (!%p5642_p4) }
0x1188   : > { %v5824_v33 = vadd.f32 %v5823_v10, %v5822_v34  ;;  %v5825_v3 = vpop.f32.mrb[94].mxu0  ;;  %v5786_v13 = vpop.f32.mrb[111].mxu1 }
0x1189   : > { %v5787_v48 = vadd.f32 %v5786_v13, %v5785_v53  ;;  %v5826_v32 = vpop.f32.mrb[95].mxu0 }
0x118a   : > { %v4858_v1 = vadd.f32 %v5824_v33, %v5784_v9  ;;  %v5827_v49 = vadd.f32 %v5826_v32, %v5825_v3 }
0x118c   : > { %v4882_v56 = vadd.f32 %v4858_v1, %v7973_v31  ;;  %v4861_v16 = vadd.f32 %v5827_v49, %v5787_v48 }
0x118e   : > { %v8315_v18 = vadd.f32 %v8301_v43, %v4882_v56  ;;  %v4883_v51 = vadd.f32 %v4861_v16, %v7977_v39 }
0x1190   : > { %4905 = vst [vmem:[#allocation2 + $0x10] sm:$0xff] %v8315_v18  ;;  %v8320_v36 = vadd.f32 %v8301_v43, %v4883_v51 }
0x1192   : > { %4906 = vst [vmem:[#allocation2 + $0x18] sm:$0xff] %v8320_v36 }
0x11b0   : > { %v5788_v44 = vpop.f32.mrb[112].mxu1 }
0x11b1   : > { %v5828_v25 = vpop.f32.mrb[96].mxu0  ;;  %v5789_v52 = vpop.f32.mrb[113].mxu1 }
0x11b2   : > { %v5790_v14 = vadd.f32 %v5789_v52, %v5788_v44  ;;  %v5829_v5 = vpop.f32.mrb[97].mxu0  ;;  %v5791_v4 = vpop.f32.mrb[114].mxu1 }
0x11b3   : > { %v5830_v31 = vadd.f32 %v5829_v5, %v5828_v25  ;;  %v5831_v59 = vpop.f32.mrb[98].mxu0  ;;  %v5792_v60 = vpop.f32.mrb[115].mxu1 }
0x11b4   : > { %v5793_v57 = vadd.f32 %v5792_v60, %v5791_v4  ;;  %v5832_v21 = vpop.f32.mrb[99].mxu0 }
0x11b5   : > { %v4866_v41 = vadd.f32 %v5830_v31, %v5790_v14  ;;  %v5833_v39 = vadd.f32 %v5832_v21, %v5831_v59 }
0x11b7   : > { %v4884_v58 = vadd.f32 %v4866_v41, %v7980_v63  ;;  %v4869_v6 = vadd.f32 %v5833_v39, %v5793_v57 }
0x11b9   : > { %v4899_v15 = vadd.f32 %v8301_v43, %v4884_v58  ;;  %v4885_v30 = vadd.f32 %v4869_v6, %v7982_v27 }
0x11bb   : > { %4907 = vst [vmem:[#allocation2 + $0x20] sm:$0xff] %v4899_v15  ;;  %v4900_v12 = vadd.f32 %v8301_v43, %v4885_v30 }
0x11bd   : > { %4908 = vst [vmem:[#allocation2 + $0x28] sm:$0xff] %v4900_v12 }
0x11c4   : > { %v5794_v23 = vpop.f32.mrb[116].mxu1 }
0x11c5   : > { %v5834_v62 = vpop.f32.mrb[100].mxu0  ;;  %v5795_v8 = vpop.f32.mrb[117].mxu1 }
0x11c6   : > { %v5796_v45 = vadd.f32 %v5795_v8, %v5794_v23  ;;  %v5835_v61 = vpop.f32.mrb[101].mxu0  ;;  %v5797_v54 = vpop.f32.mrb[118].mxu1 }
0x11c7   : > { %v5836_v0 = vadd.f32 %v5835_v61, %v5834_v62  ;;  %v5837_v47 = vpop.f32.mrb[102].mxu0  ;;  %v5798_v28 = vpop.f32.mrb[119].mxu1 }
0x11c8   : > { %v5799_v40 = vadd.f32 %v5798_v28, %v5797_v54  ;;  %v5838_v63 = vpop.f32.mrb[103].mxu0 }
0x11c9   : > { %v4874_v22 = vadd.f32 %v5836_v0, %v5796_v45  ;;  %v5839_v29 = vadd.f32 %v5838_v63, %v5837_v47 }
0x11cb   : > { %v4886_v38 = vadd.f32 %v4874_v22, %v7985_v35  ;;  %v4877_v27 = vadd.f32 %v5839_v29, %v5799_v40  ;;  %4914 = sbr.rel (%p5642_p4) target bundleno = 5261 (0x148d), region = 112  ;;  %v4915_v35 = vld [vmem:[%s8533_s5] sm:$0xff] (!%p5642_p4) }
0x11cc   : > { %4925 = vperm.xlu0 (!%p5642_p4), %6677, %v4915_v35  }
0x11cd   : > { %v4901_v17 = vadd.f32 %v8301_v43, %v4886_v38  ;;  %v4887_v19 = vadd.f32 %v4877_v27, %v7988_v26  ;;  %v4918_v26 = vld [vmem:[%s8533_s5 + $0x18] sm:$0xff] (!%p5642_p4) }
0x11ce   : > { %4940 = vperm.xlu1 (!%p5642_p4), %6678, %v4918_v26  }
0x11cf   : > { %4909 = vst [vmem:[#allocation2 + $0x30] sm:$0xff] %v4901_v17  ;;  %v4902_v55 = vadd.f32 %v8301_v43, %v4887_v19  ;;  %v4916_v43 = vld [vmem:[%s8533_s5 + $0x8] sm:$0xff] (!%p5642_p4) }
0x11d0   : > { %4930 = vperm.xlu0 (!%p5642_p4), %6677, %v4916_v43  }
0x11d1   : > { %4910 = vst [vmem:[#allocation2 + $0x38] sm:$0xff] %v4902_v55 }
0x11d2   : > { %4950 = vperm.xlu1 %6678, %v4920_v42  }
0x11d4   : > { %4945 = vperm.xlu0 %6677, %v4919_v46  }
0x11d6   : > { %4960 = vperm.xlu1 %6678, %v4922_v20  }
0x11d8   : > { %4955 = vperm.xlu0 %6677, %v4921_v7  }
0x11f9   : > { %v4936_v34 = vpop.permute.xlu1 %4935 }
0x11fa   : > { %v4965_v53 = vmul.f32 %v4936_v34, %v8315_v18 }
0x124b   : > { %v4926_v11 = vpop.permute.xlu0 %4925 }
0x124c   : > { %v4963_v33 = vmul.f32 %v4926_v11, %v8305_v50 }
0x124d   : > { %v4941_v9 = vpop.permute.xlu1 %4940 }
0x124e   : > { %v4966_v3 = vmul.f32 %v4941_v9, %v8320_v36 }
0x124f   : > { %v4931_v10 = vpop.permute.xlu0 %4930 }
0x1250   : > { %v4964_v13 = vmul.f32 %v4931_v10, %v8310_v2  ;;  %v4978_v48 = vadd.f32 %v4966_v3, %v4965_v53  ;;  %v6679_v53 = vld [vmem:[%s8534_s26] sm:$0xff]   ;;  %v6680_v3 = vld [vmem:[%s8535_s19 + $0x8] sm:$0xff]  }
0x1251   : > { %v4951_v1 = vpop.permute.xlu1 %4950 }
0x1252   : > { %v4971_v32 = vadd.f32 %v4964_v13, %v4963_v33  ;;  %v4979_v56 = vrot.slane %v4978_v48, 4  ;;  %v4968_v51 = vmul.f32 %v4951_v1, %v4900_v12  ;;  %v6916_v33 = vmov 0.0   ;;  %v6681_v13 = vld [vmem:[%s8535_s19 + $0x10] sm:$0xff]   ;;  %v6684_v1 = vld [vmem:[%s8535_s19 + $0x28] sm:$0xff]  }
0x1253   : > { %v4946_v49 = vpop.permute.xlu0 %4945  ;;  %6113 = vmatprep.subr.bf16.mxu0 %v6916_v33  ;;  %6129 = vmatprep.mubr.msk.bf16.mxu0 %vm6917_vm9, %v6916_v33 }
0x1254   : > { %v4972_v16 = vrot.slane %v4971_v32, 4  ;;  %v4967_v44 = vmul.f32 %v4946_v49, %v4899_v15  ;;  %v4980_v25 = vadd.f32 %v4979_v56, %v4978_v48  ;;  %6114 = vmatpush3.bf16.msra.mxu0 %v6679_v53  ;;  %v6682_v48 = vld [vmem:[%s8535_s19 + $0x18] sm:$0xff]   ;;  %v6685_v49 = vld [vmem:[%s8535_s19 + $0x30] sm:$0xff]  }
0x1255   : > { %v4961_v5 = vpop.permute.xlu1 %4960  ;;  %6115 = vmatprep.subr.bf16.mxu0 %v6916_v33  ;;  %v6686_v56 = vld [vmem:[%s8535_s19 + $0x38] sm:$0xff]  }
0x1256   : > { %v4973_v52 = vadd.f32 %v4972_v16, %v4971_v32  ;;  %v4985_v14 = vadd.f32 %v4968_v51, %v4967_v44  ;;  %v4981_v18 = vrot.slane %v4980_v25, 2  ;;  %v4970_v59 = vmul.f32 %v4961_v5, %v4902_v55  ;;  %v6683_v32 = vld [vmem:[%s8535_s19 + $0x20] sm:$0xff]  }
0x1257   : > { %v4956_v4 = vpop.permute.xlu0 %4955 }
0x1258   : > { %v4974_v31 = vrot.slane %v4973_v52, 2  ;;  %v4986_v50 = vrot.slane %v4985_v14, 4  ;;  %v4969_v36 = vmul.f32 %v4956_v4, %v4901_v17  ;;  %v4982_v2 = vadd.f32 %v4981_v18, %v4980_v25  ;;  %6116 = vmatpush3.bf16.msra.mxu0 %v6680_v3 }
0x1259   : > { %6117 = vmatprep.subr.bf16.mxu0 %v6916_v33 }
0x125a   : > { %v4987_v60 = vadd.f32 %v4986_v50, %v4985_v14  ;;  %v4975_v57 = vadd.f32 %v4974_v31, %v4973_v52  ;;  %v4992_v21 = vadd.f32 %v4970_v59, %v4969_v36  ;;  %v4983_v6 = vrot.slane %v4982_v2, 1  ;;  %v5643_v52 = vld [vmem:[%s8536_s8] ss:$0 sm:$0xff] }
0x125b   : > { %v5644_v31 = vld [vmem:[%s8537_s22] ss:$0 sm:$0xff] }
0x125c   : > { %v4988_v41 = vrot.slane %v4987_v60, 2  ;;  %v4993_v39 = vrot.slane %v4992_v21, 4  ;;  %v4976_v30 = vrot.slane %v4975_v57, 1  ;;  %v4984_v62 = vadd.f32 %v4983_v6, %v4982_v2  ;;  %6118 = vmatpush3.bf16.msra.mxu0 %v6681_v13 }
0x125d   : > { %6119 = vmatprep.subr.bf16.mxu0 %v6916_v33 }
0x125e   : > { %v4989_v58 = vadd.f32 %v4988_v41, %v4987_v60  ;;  %v4994_v15 = vadd.f32 %v4993_v39, %v4992_v21  ;;  %v4977_v8 = vadd.f32 %v4976_v30, %v4975_v57 }
0x1260   : > { %v4990_v12 = vrot.slane %v4989_v58, 1  ;;  %v4995_v23 = vrot.slane %v4994_v15, 2  ;;  %v5006_v47 = vsel %vm5005_vm5, %v4984_v62, %v4977_v8  ;;  %6120 = vmatpush3.bf16.msra.mxu0 %v6682_v48 }
0x1261   : > { %6121 = vmatprep.subr.bf16.mxu0 %v6916_v33 }
0x1262   : > { %v4996_v45 = vadd.f32 %v4995_v23, %v4994_v15  ;;  %v4991_v61 = vadd.f32 %v4990_v12, %v4989_v58 }
0x1264   : > { %v4997_v54 = vrot.slane %v4996_v45, 1  ;;  %v5008_v28 = vsel %vm5007_vm6, %v4991_v61, %v5006_v47  ;;  %6122 = vmatpush3.bf16.msra.mxu0 %v6683_v32 }
0x1265   : > { %6123 = vmatprep.subr.bf16.mxu0 %v6916_v33 }
0x1266   : > { %v4998_v0 = vadd.f32 %v4997_v54, %v4996_v45 }
0x1268   : > { %v5010_v40 = vsel %vm5009_vm7, %v4998_v0, %v5008_v28  ;;  %6124 = vmatpush3.bf16.msra.mxu0 %v6684_v1 }
0x1269   : > { %v5013_v63 = vsel %vm5012_vm8, %v5010_v40, 0.0  ;;  %6125 = vmatprep.subr.bf16.mxu0 %v6916_v33 }
0x126a   : > { %5014 = vadd.xlane.f32.xlu0 %v5013_v63 }
0x126c   : > { %6126 = vmatpush3.bf16.msra.mxu0 %v6685_v49 }
0x126d   : > { %6127 = vmatprep.subr.bf16.mxu0 %v6916_v33 }
0x1270   : > { %6128 = vmatpush3.bf16.msra.mxu0 %v6686_v56 }
0x12f7   : > { %v5015_v22 = vpop.xlane.xlu0 %5014 }
0x12f8   : > { %v5016_v29 = vmul.f32 0.0078125, %v5015_v22 }
0x12fa   : > { %v5018_v38 = vrot.slane %v5016_v29, 1  ;;  %v5019_v27 = vrot.slane %v5016_v29, 2  ;;  %v5020_v17 = vrot.slane %v5016_v29, 3  ;;  %v5025_v19 = vsub.f32 %v4977_v8, %v5016_v29 }
0x12fc   : > { %v5026_v55 = vsub.f32 %v4984_v62, %v5018_v38  ;;  %v5027_v24 = vsub.f32 %v4991_v61, %v5019_v27  ;;  %v5028_v35 = vsub.f32 %v4998_v0, %v5020_v17  ;;  %v5029_v42 = vmul.f32 %v5025_v19, %v5025_v19 }
0x12fe   : > { %v5030_v37 = vmul.f32 %v5026_v55, %v5026_v55  ;;  %v5031_v26 = vmul.f32 %v5027_v24, %v5027_v24  ;;  %v5032_v43 = vmul.f32 %v5028_v35, %v5028_v35 }
0x1300   : > { %v5037_v46 = vrot.slane %v5030_v37, 7  ;;  %v5039_v20 = vrot.slane %v5031_v26, 6  ;;  %v5041_v34 = vrot.slane %v5032_v43, 5 }
0x1302   : > { %v5038_v7 = vsel %vm5005_vm5, %v5037_v46, %v5029_v42 }
0x1303   : > { %v5040_v11 = vsel %vm5007_vm6, %v5039_v20, %v5038_v7 }
0x1304   : > { %v5042_v9 = vsel %vm5009_vm7, %v5041_v34, %v5040_v11 }
0x1305   : > { %v5044_v10 = vsel %vm5012_vm8, %v5042_v9, 0.0 }
0x1306   : > { %5045 = vadd.xlane.f32.xlu1 %v5044_v10 }
0x1393   : > { %v5046_v16 = vpop.xlane.xlu1 %5045 }
0x1394   : > { %v5047_v51 = vmul.f32 0.0078125, %v5046_v16 }
0x1396   : > { %v5048_v44 = vadd.f32 1e-05, %v5047_v51 }
0x1398   : > { %6687 = vrsqrt.f32 %v5048_v44 }
0x13a2   : > { %v6688_v25 = vpop.eup %6687 }
0x13a3   : > { %v5051_v14 = vrot.slane %v6688_v25, 1  ;;  %v5052_v5 = vrot.slane %v6688_v25, 2  ;;  %v5053_v4 = vrot.slane %v6688_v25, 3  ;;  %v5058_v18 = vmul.f32 %v6688_v25, %v5025_v19 }
0x13a5   : > { %v5059_v50 = vmul.f32 %v5051_v14, %v5026_v55  ;;  %v5060_v59 = vmul.f32 %v5052_v5, %v5027_v24  ;;  %v5061_v36 = vmul.f32 %v5053_v4, %v5028_v35  ;;  %v5068_v60 = vmul.f32 %v5643_v52, %v5058_v18 }
0x13a7   : > { %v5069_v2 = vmul.f32 %v5643_v52, %v5059_v50  ;;  %v5070_v57 = vmul.f32 %v5643_v52, %v5060_v59  ;;  %v5071_v21 = vmul.f32 %v5643_v52, %v5061_v36  ;;  %v5078_v41 = vadd.f32 %v5644_v31, %v5068_v60 }
0x13a9   : > { %v5079_v39 = vadd.f32 %v5644_v31, %v5069_v2  ;;  %v5080_v58 = vadd.f32 %v5644_v31, %v5070_v57  ;;  %v5081_v6 = vadd.f32 %v5644_v31, %v5071_v21  ;;  %v5082_v30 = vpack.c.bf16 %v5078_v41, %v5078_v41 }
0x13ab   : > { %v5083_v15 = vpack.c.bf16 %v5079_v39, %v5079_v39  ;;  %v5084_v12 = vpack.c.bf16 %v5080_v58, %v5080_v58  ;;  %v5085_v23 = vpack.c.bf16 %v5081_v6, %v5081_v6  ;;  %v5106_v61 = vunpack.c.l.b16 %v5082_v30 }
0x13ad   : > { %v5107_v62 = vunpack.c.l.b16 %v5083_v15  ;;  %v5108_v8 = vunpack.c.l.b16 %v5084_v12  ;;  %v5109_v45 = vunpack.c.l.b16 %v5085_v23 }
0x13af   : > { %v5110_v54 = vrot.slane %v5107_v62, 7  ;;  %v5112_v0 = vrot.slane %v5108_v8, 6  ;;  %v5114_v28 = vrot.slane %v5109_v45, 5 }
0x13b1   : > { %v5111_v47 = vsel %vm5005_vm5, %v5110_v54, %v5106_v61 }
0x13b2   : > { %v5113_v40 = vsel %vm5007_vm6, %v5112_v0, %v5111_v47 }
0x13b3   : > { %v5115_v63 = vsel %vm5009_vm7, %v5114_v28, %v5113_v40 }
0x13b4   : > { %v5116_v22 = vpack.c.b16 %v5115_v63, %v5115_v63 }
0x13b6   : > { %6130 = vmatmul.mubr.bf16.vlgmr.msra.gmra.mrb[0].mxu0 %v5116_v22 }
0x1489   : > { %v5200_v29 = vpop.f32.mrb[0].mxu0 }
0x148a   : > { %5207 = vst.msk [vmem:[#allocation11] sm:$0xf] %vm5206_vm10, %v5200_v29  ;;  %v6131_v38 = vpop.f32.mrb[1].mxu0 }
0x148b   : > { %v5203_v27 = vpop.f32.mrb[2].mxu0 }
0x148c   : > { %v6132_v17 = vpop.f32.mrb[3].mxu0 }
0x148d PF: > { %p6192_p2 = scmp.eq.s32.totalorder %s7100_s18, 1  ;;  %s6918_s17 = smov [#allocation11]  }
0x148e   : > { %s5217_s20 = sshll.u32 %s6918_s17, 4  ;;  %s5218_s20 = int_to_ptr.vmem [resolvable:$true] %s5217_s20 }
0x148f   : > { %s6807_s23 = scalar_lea.vmem %s5218_s20, 64  ;;  %p6814_p9 = scmp.lt.s32.totalorder %s5218_s20, %s5218_s20 }
0x1490   : > { %p6808_p8 = scmp.ne.s32.totalorder %s5218_s20, %s6807_s23  ;;  %p6815_p12 = scmp.lt.s32.totalorder %s6807_s23, %s6807_s23 }
0x1492   : > { %p6809_p3 = pnand %p6808_p8, %p6192_p2  ;;  %p6816_p5 = por %p6815_p12, %p6814_p9 }
0x1494   : > { %p6810_p7 = pneg %p6809_p3 }
0x1496   : > { %p6817_p6 = pnand %p6816_p5, %p6810_p7 }
0x1498   : > { %6820 = shalt.err (!%p6817_p6)
}
0x1499   : > { %s8538_s21 = sld [smem:[#allocation36_spill]] }
0x149f   : > { %s6821_s29 = scalar_lea.hbm %s8538_s21, 64 }
0x14a0   : > { %p6822_p11 = scmp.ne.s32.totalorder %s8538_s21, %s6821_s29  ;;  %p6827_p13 = scmp.lt.u32.totalorder %s6821_s29, %s8538_s21 }
0x14a2   : > { %p6823_p10 = pnand %p6822_p11, %p6192_p2 }
0x14a4   : > { %p6824_p0 = pneg %p6823_p10 }
0x14a6   : > { %p6829_p1 = pnand %p6827_p13, %p6824_p0 }
0x14a8   : > { %6832 = shalt.err (!%p6829_p1)
}
0x14a9   : > { %6172 = dma.vmem_to_hbm [thread:$0]  (%p6192_p2), %s5218_s20, 64, %s8538_s21, [#allocation5]  }
0x14aa   : > { %6870 = dma.done.wait (%p6192_p2), [#allocation5], 64  }
0x14ab   : > { %6872 = vsyncadd (%p6192_p2), [#allocation5], 4294967232 }
0x14ac PF: > { %s8539_s30 = sld [smem:[#allocation19_spill]]  ;;  %s8540_s24 = sld [smem:[#allocation16_spill]] }
0x14ad   : > { %s8541_s25 = sld [smem:[#allocation17_spill]]  ;;  %s8542_s26 = sld [smem:[#allocation21_spill]] }
0x14ae   : > { %s8543_s27 = sld [smem:[#allocation18_spill]]  ;;  %s8544_s28 = sld [smem:[#allocation20_spill]] }
0x14b2   : > { %s35_s29 = sadd.s32 1, %s8539_s30  }
0x14b3   : > { %p32_p4 = scmp.ge.s32.totalorder %s35_s29, 4  }
0x14b5   :  { %34 = sbr.rel (!%p32_p4) target bundleno = 24 (0x18), region = 194 }
0x14bc   :  { %5230 = vsyncpa [#allocation4], 1 }
0x14bd   :  { %5232 = vsyncpa [#allocation4 + $0x1], 1 }
0x14be   :  { %5233 = vsyncpa [#allocation7], 1 }
0x14bf   :  { %5235 = vsyncpa [#allocation7 + $0x1], 1 }
0x14c0   :  { %5236 = vsyncpa [#allocation10], 1 }
0x14c1   :  { %5238 = vsyncpa [#allocation10 + $0x1], 1 }
0x14c2   :  { %5239 = vsyncpa [#allocation5], 1 }
0x14c3   :  { %5241 = vsyncpa [#allocation5 + $0x1], 1 }

</bundles_post_ra>
